<compile_context>
chip_gen: v6e
topology: v6e:2x2x1
jax: 0.10.0
libtpu: 0.0.40
codegen_flags: <defaults>
</compile_context>

<pallas_src>
import jax
import jax.numpy as jnp
from jax.experimental import pallas as pl
from jax.experimental.pallas import tpu as pltpu

# ---- Model / problem sizes ---------------------------------------------------
SEQ_LEN     = 8
BATCH       = 4
INPUT_SIZE  = 2            # obs_traj feature size (x, y)
EMB_SIZE    = 32           # input_embedded_size
RNN_SIZE    = 32           # rnn_size
NUM_LAYERS  = 2            # num_rnn_layer (kernel structure assumes 2)
OUTPUT_SIZE = INPUT_SIZE   # residual add forces output_size == input_size
PRED_LEN    = 8
MLP_H1      = 32           # output_seq hidden sizes
MLP_H2      = 16

assert NUM_LAYERS == 2, "wavefront/block-diagonal structure is written for 2 layers"

GATE_W  = 4 * RNN_SIZE            # 128
FUSED_K = EMB_SIZE + RNN_SIZE     # 64 : per-layer GEMM contraction width

# ---- Packed parameter blob layout: one (BLOB_ROWS, 128) f32 array ------------
ROW_EMB_W  = 0                                     # rows 0..1 : w_emb (2, 32)
ROW_EMB_B  = 2                                     # row  2    : b_emb (1, 32)
ROW_B3E    = 3                                     # row  3    : b3 @ w_emb (1, 32)
ROW_LSTM_W = 8                                     # rows 8..135 : [W0; W1] (128, 128)
ROW_LSTM_B = ROW_LSTM_W + NUM_LAYERS * FUSED_K     # 136..137 : fused biases b0, b1
ROW_W1     = 144                                   # w1 (32, 32)
ROW_B1     = ROW_W1 + RNN_SIZE                     # 176
ROW_W2     = 184                                   # w2 (32, 16)
ROW_B2     = ROW_W2 + MLP_H1                       # 216
ROW_W3E    = 224                                   # w3 @ w_emb (16, 32)
ROW_W3     = ROW_W3E + MLP_H2                      # 240 : w3 (16, 2)
ROW_B3     = ROW_W3 + MLP_H2                       # 256 : b3 (1, 2)
BLOB_ROWS  = 264


# -----------------------------------------------------------------------------
# Pallas kernel: whole forward (batched embedding, wavefronted 2-layer LSTM
# warm-up, autoregressive prediction loop with the folded output MLP, epilogue).
# -----------------------------------------------------------------------------
def simple_lstm_kernel(obs_ref, blob_ref, out_ref, lhs_ref, y2_ref):
    f32, bf16 = jnp.float32, jnp.bfloat16
    B, H, E, S, P = BATCH, RNN_SIZE, EMB_SIZE, SEQ_LEN, PRED_LEN
    EH = E + H                       # 64
    G = 4 * H                        # 128 gate width

    # ---- hoist every weight/bias load, broadcast and bf16 cast (done once) ----
    Wl_stack = blob_ref[ROW_LSTM_W:ROW_LSTM_W + 2 * EH, :G].astype(bf16)   # (128,128) [W0;W1]
    Wl0 = blob_ref[ROW_LSTM_W:ROW_LSTM_W + EH, :G].astype(bf16)            # (64,128)
    Wl1 = blob_ref[ROW_LSTM_W + EH:ROW_LSTM_W + 2 * EH, :G].astype(bf16)   # (64,128)
    bl0 = jnp.broadcast_to(blob_ref[ROW_LSTM_B:ROW_LSTM_B + 1, :G], (B, G))
    bl1 = jnp.broadcast_to(blob_ref[ROW_LSTM_B + 1:ROW_LSTM_B + 2, :G], (B, G))
    bl_stack = jnp.concatenate([bl0, bl1], axis=0)                         # (2B, 128)

    w_m1 = blob_ref[ROW_W1:ROW_W1 + RNN_SIZE, :MLP_H1].astype(bf16)
    b_m1 = jnp.broadcast_to(blob_ref[ROW_B1:ROW_B1 + 1, :MLP_H1], (B, MLP_H1))
    w_m2 = blob_ref[ROW_W2:ROW_W2 + MLP_H1, :MLP_H2].astype(bf16)
    b_m2 = jnp.broadcast_to(blob_ref[ROW_B2:ROW_B2 + 1, :MLP_H2], (B, MLP_H2))
    w3e = blob_ref[ROW_W3E:ROW_W3E + MLP_H2, :E].astype(bf16)              # w3 @ w_emb
    b3e = jnp.broadcast_to(blob_ref[ROW_B3E:ROW_B3E + 1, :E], (B, E))      # b3 @ w_emb

    # ---- batched warm-up embedding: one off-chain VPU pass over all S steps ---
    obs = obs_ref[...]                                                     # (S*B, 2) f32
    we0 = jnp.broadcast_to(blob_ref[ROW_EMB_W:ROW_EMB_W + 1, :E], (S * B, E))
    we1 = jnp.broadcast_to(blob_ref[ROW_EMB_W + 1:ROW_EMB_W + 2, :E], (S * B, E))
    be  = jnp.broadcast_to(blob_ref[ROW_EMB_B:ROW_EMB_B + 1, :E], (S * B, E))
    pre_all = obs[:, 0:1] * we0 + obs[:, 1:2] * we1 + be                   # (S*B, E) pre-ReLU
    emb_all = jnp.maximum(pre_all, 0.0)                                    # (S*B, E)
    acc = pre_all[(S - 1) * B:S * B, :]          # embedding pre-activation of obs[-1]

    def combine(sg, c_prev):
        # sg = sigmoid(gates) for one layer; g-gate columns were pre-scaled by 2
        # so tanh(z) = 2*sigmoid(2z) - 1  ->  1 sigmoid + 1 tanh on the EUP.
        i_g = sg[:, 0:H]
        f_g = sg[:, H:2 * H]
        g_g = 2.0 * sg[:, 2 * H:3 * H] - 1.0
        o_g = sg[:, 3 * H:4 * H]
        c_new = f_g * c_prev + i_g * g_g
        h_new = o_g * jnp.tanh(c_new)
        return h_new, c_new

    # ---- init states; zero the block-diagonal LHS scratch once ----------------
    h0 = c0 = h1 = c1 = jnp.zeros((B, H), f32)
    lhs_ref[...] = jnp.zeros((2 * B, 2 * EH), f32)

    # ---- wavefronted warm-up: wave w = layer-0 @ step w  +  layer-1 @ step w-1
    # (independent) as one block-diagonal GEMM.  Wave S additionally performs
    # layer-0 of prediction step 0 (input embed(obs[-1]) is known up front).
    for w in range(S + 1):
        emb_w = (emb_all[w * B:(w + 1) * B, :] if w < S
                 else jnp.maximum(acc, 0.0))
        lhs_ref[0:B, 0:E] = emb_w                      # layer-0 input
        lhs_ref[0:B, E:EH] = h0                        # layer-0 recurrent h
        lhs_ref[B:2 * B, EH:EH + H] = h0               # layer-1 input (= layer-0 h, prev step)
        lhs_ref[B:2 * B, EH + H:2 * EH] = h1           # layer-1 recurrent h
        gates = jnp.dot(lhs_ref[...].astype(bf16), Wl_stack,
                        preferred_element_type=f32) + bl_stack             # (2B, 128)
        sg = jax.nn.sigmoid(gates)                     # one EUP pass for both layers
        h0, c0 = combine(sg[0:B], c0)
        if w >= 1:                                     # wave 0 has no valid layer-1 work
            h1, c1 = combine(sg[B:2 * B], c1)

    # ---- autoregressive prediction loop (inherently serial through the MLP) ---
    # Per-step chain: LSTM0 -> LSTM1 -> (32->32) -> (32->16) -> (16->32 folded
    # embedding update).  The (16->2) displacement matmul + residual are deferred
    # to the off-chain epilogue.
    for t in range(P):
        if t > 0:                                      # t == 0: layer-0 done in wave S
            lhs_ref[0:B, 0:E] = jnp.maximum(acc, 0.0)
            lhs_ref[0:B, E:EH] = h0
            g0 = jnp.dot(lhs_ref[0:B, 0:EH].astype(bf16), Wl0,
                         preferred_element_type=f32) + bl0
            h0, c0 = combine(jax.nn.sigmoid(g0), c0)
        lhs_ref[B:2 * B, EH:EH + H] = h0
        lhs_ref[B:2 * B, EH + H:2 * EH] = h1
        g1 = jnp.dot(lhs_ref[B:2 * B, EH:2 * EH].astype(bf16), Wl1,
                     preferred_element_type=f32) + bl1
        h1, c1 = combine(jax.nn.sigmoid(g1), c1)       # h1 == top-layer hidden
        y1 = jnp.maximum(jnp.dot(h1.astype(bf16), w_m1,
                                 preferred_element_type=f32) + b_m1, 0.0)
        y2 = jnp.maximum(jnp.dot(y1.astype(bf16), w_m2,
                                 preferred_element_type=f32) + b_m2, 0.0)
        y2_ref[t * B:(t + 1) * B, :] = y2              # stash for the epilogue
        if t + 1 < P:                                  # folded next-step embedding pre-act
            acc = acc + jnp.dot(y2.astype(bf16), w3e,
                                preferred_element_type=f32) + b3e

    # ---- off-chain epilogue: one (P*B,16)x(16,2) GEMM + running residual sum ---
    w_m3 = blob_ref[ROW_W3:ROW_W3 + MLP_H2, :OUTPUT_SIZE].astype(bf16)
    b_m3 = jnp.broadcast_to(blob_ref[ROW_B3:ROW_B3 + 1, :OUTPUT_SIZE],
                            (P * B, OUTPUT_SIZE))
    disp = jnp.dot(y2_ref[...].astype(bf16), w_m3,
                   preferred_element_type=f32) + b_m3                       # (P*B, 2)
    run = obs_ref[(S - 1) * B:S * B, :]                # last observed positions (B, 2)
    rows = []
    for t in range(P):
        run = run + disp[t * B:(t + 1) * B, :]
        rows.append(run)
    out_ref[...] = jnp.stack(rows, axis=0)             # single (P, B, O) store


# -----------------------------------------------------------------------------
# Wrapper: 2 inputs (flattened obs + packed weight blob), grid-less, all-VMEM.
# -----------------------------------------------------------------------------
def simple_lstm_forward(obs_traj, blob):
    S, B, I = obs_traj.shape
    obs_flat = obs_traj.reshape(S * B, I)              # free layout change outside the kernel
    vmem = pl.BlockSpec(memory_space=pltpu.MemorySpace.VMEM)
    return pl.pallas_call(
        simple_lstm_kernel,
        out_shape=jax.ShapeDtypeStruct((PRED_LEN, B, OUTPUT_SIZE), jnp.float32),
        in_specs=[vmem, vmem],
        out_specs=vmem,
        scratch_shapes=[
            pltpu.VMEM((2 * BATCH, 2 * FUSED_K), jnp.float32),   # block-diagonal GEMM LHS
            pltpu.VMEM((PRED_LEN * BATCH, MLP_H2), jnp.float32),  # stashed y2 activations
        ],
    )(obs_flat, blob)


# -----------------------------------------------------------------------------
# Parameter packing: fuse [W_ih; W_hh] and b_ih+b_hh per layer, pre-scale the
# g-gate columns by 2 (tanh-via-sigmoid identity), fold w3/b3 into the embedding
# (w3e = w3 @ w_emb, b3e = b3 @ w_emb), and pack everything into one
# (BLOB_ROWS, 128) f32 array (single HBM->VMEM DMA).
# -----------------------------------------------------------------------------
def pack_params(p):
    H = RNN_SIZE
    blob = jnp.zeros((BLOB_ROWS, 128), jnp.float32)

    def put(b, row, arr):
        r, c = arr.shape
        return b.at[row:row + r, :c].set(arr)

    blob = put(blob, ROW_EMB_W, p["w_emb"])
    blob = put(blob, ROW_EMB_B, p["b_emb"])
    blob = put(blob, ROW_B3E, p["b3"] @ p["w_emb"])          # folded b3 . w_emb

    # g-gate (columns 2H:3H) scaled by 2 so tanh(z) == 2*sigmoid(2z) - 1
    gate_scale = jnp.concatenate([jnp.ones((2 * H,)), 2.0 * jnp.ones((H,)),
                                  jnp.ones((H,))]).astype(jnp.float32)[None, :]
    for l in range(NUM_LAYERS):
        w_fused = jnp.concatenate([p["w_ih"][l], p["w_hh"][l]], axis=0) * gate_scale
        b_fused = (p["b_ih"][l] + p["b_hh"][l]) * gate_scale
        blob = put(blob, ROW_LSTM_W + l * FUSED_K, w_fused)  # contiguous [W0; W1] slab
        blob = put(blob, ROW_LSTM_B + l, b_fused)

    blob = put(blob, ROW_W1, p["w1"])
    blob = put(blob, ROW_B1, p["b1"])
    blob = put(blob, ROW_W2, p["w2"])
    blob = put(blob, ROW_B2, p["b2"])
    blob = put(blob, ROW_W3E, p["w3"] @ p["w_emb"])          # folded w3 . w_emb
    blob = put(blob, ROW_W3, p["w3"])
    blob = put(blob, ROW_B3, p["b3"])
    return blob


# -----------------------------------------------------------------------------
# Deterministic parameter init (Linear weights stored pre-transposed (in, out);
# LSTM weights stacked per layer, gate order i,f,g,o).
# -----------------------------------------------------------------------------
def init_params(key):
    ks = jax.random.split(key, 13)
    s = 0.1

    def rnd(k, shape):
        return jax.random.normal(k, shape, dtype=jnp.float32) * s

    assert EMB_SIZE == RNN_SIZE, "stacking W_ih across layers requires EMB_SIZE == RNN_SIZE"
    return {
        "w_emb": rnd(ks[0], (INPUT_SIZE, EMB_SIZE)),
        "b_emb": rnd(ks[1], (1, EMB_SIZE)),
        "w_ih":  rnd(ks[2], (NUM_LAYERS, EMB_SIZE, 4 * RNN_SIZE)),
        "w_hh":  rnd(ks[3], (NUM_LAYERS, RNN_SIZE, 4 * RNN_SIZE)),
        "b_ih":  rnd(ks[4], (NUM_LAYERS, 1, 4 * RNN_SIZE)),
        "b_hh":  rnd(ks[5], (NUM_LAYERS, 1, 4 * RNN_SIZE)),
        "w1":    rnd(ks[6], (RNN_SIZE, MLP_H1)),
        "b1":    rnd(ks[7], (1, MLP_H1)),
        "w2":    rnd(ks[8], (MLP_H1, MLP_H2)),
        "b2":    rnd(ks[9], (1, MLP_H2)),
        "w3":    rnd(ks[10], (MLP_H2, OUTPUT_SIZE)),
        "b3":    rnd(ks[11], (1, OUTPUT_SIZE)),
    }


# -----------------------------------------------------------------------------
# Pure-JAX reference (mirrors the PyTorch forward in eval mode, plain f32,
# un-fused weights, standard tanh gates) — validates every kernel rewrite
# (wavefront, block-diagonal GEMM, MLP fold, batched embedding).
# -----------------------------------------------------------------------------
def reference_forward(obs, p):
    L, H = NUM_LAYERS, RNN_SIZE

    def embed(x):
        return jax.nn.relu(x @ p["w_emb"] + p["b_emb"])

    def lstm_step(x, h, c):
        inp = x
        new_h, new_c = [], []
        for l in range(L):
            gates = inp @ p["w_ih"][l] + p["b_ih"][l] + h[l] @ p["w_hh"][l] + p["b_hh"][l]
            i_g = jax.nn.sigmoid(gates[:, 0:H])
            f_g = jax.nn.sigmoid(gates[:, H:2 * H])
            g_g = jnp.tanh(gates[:, 2 * H:3 * H])
            o_g = jax.nn.sigmoid(gates[:, 3 * H:4 * H])
            cn = f_g * c[l] + i_g * g_g
            hn = o_g * jnp.tanh(cn)
            new_h.append(hn)
            new_c.append(cn)
            inp = hn
        return inp, new_h, new_c

    def out_seq(x):
        y = jax.nn.relu(x @ p["w1"] + p["b1"])
        y = jax.nn.relu(y @ p["w2"] + p["b2"])
        return y @ p["w3"] + p["b3"]

    B = obs.shape[1]
    h = [jnp.zeros((B, H), jnp.float32) for _ in range(L)]
    c = [jnp.zeros((B, H), jnp.float32) for _ in range(L)]
    for t in range(obs.shape[0]):
        _, h, c = lstm_step(embed(obs[t]), h, c)
    curr = obs[-1]
    emb = embed(curr)
    preds = []
    for _ in range(PRED_LEN):
        top, h, c = lstm_step(emb, h, c)
        curr = curr + out_seq(top)
        preds.append(curr)
        emb = embed(curr)
    return jnp.stack(preds, 0)


if __name__ == "__main__":
    key = jax.random.PRNGKey(0)
    k_param, k_obs = jax.random.split(key)
    params = init_params(k_param)
    blob = pack_params(params)
    obs_traj = jax.random.normal(k_obs, (SEQ_LEN, BATCH, INPUT_SIZE), dtype=jnp.float32)

    out = jax.block_until_ready(simple_lstm_forward(obs_traj, blob))
    ref = jax.block_until_ready(reference_forward(obs_traj, params))

    assert out.shape == (PRED_LEN, BATCH, OUTPUT_SIZE), out.shape
    max_diff = float(jnp.max(jnp.abs(out - ref)))
    # bf16 MXU operands + tanh-via-sigmoid + folded w3@w_emb slightly change rounding.
    assert jnp.allclose(out, ref, atol=2e-2, rtol=2e-2), f"max abs diff {max_diff}"

    print("KERNEL_OK")
</pallas_src>

<mosaic_0001>
module attributes {stable_mosaic.version = 11 : i64} {
  func.func @simple_lstm_kernel(%arg0: memref<32x2xf32, #tpu.memory_space<vmem>>, %arg1: memref<264x128xf32, #tpu.memory_space<vmem>>, %arg2: memref<8x4x2xf32, #tpu.memory_space<vmem>>, %arg3: memref<8x128xf32, #tpu.memory_space<vmem>>, %arg4: memref<32x16xf32, #tpu.memory_space<vmem>>) attributes {dimension_semantics = [], scalar_prefetch = 0 : i64, scratch_operands = 2 : i64, tpu.core_type = #tpu.core_type<tc>} {
    %c8 = arith.constant 8 : index
    %c0 = arith.constant 0 : index
    %0 = vector.load %arg1[%c8, %c0] : memref<264x128xf32, #tpu.memory_space<vmem>>, vector<128x128xf32>
    %1 = arith.truncf %0 : vector<128x128xf32> to vector<128x128xbf16>
    %c8_0 = arith.constant 8 : index
    %c0_1 = arith.constant 0 : index
    %2 = vector.load %arg1[%c8_0, %c0_1] : memref<264x128xf32, #tpu.memory_space<vmem>>, vector<64x128xf32>
    %3 = arith.truncf %2 : vector<64x128xf32> to vector<64x128xbf16>
    %c72 = arith.constant 72 : index
    %c0_2 = arith.constant 0 : index
    %4 = vector.load %arg1[%c72, %c0_2] : memref<264x128xf32, #tpu.memory_space<vmem>>, vector<64x128xf32>
    %5 = arith.truncf %4 : vector<64x128xf32> to vector<64x128xbf16>
    %c136 = arith.constant 136 : index
    %c0_3 = arith.constant 0 : index
    %6 = vector.load %arg1[%c136, %c0_3] : memref<264x128xf32, #tpu.memory_space<vmem>>, vector<1x128xf32>
    %7 = vector.shape_cast %6 : vector<1x128xf32> to vector<1x128xf32>
    %8 = vector.broadcast %7 : vector<1x128xf32> to vector<4x128xf32>
    %c137 = arith.constant 137 : index
    %c0_4 = arith.constant 0 : index
    %9 = vector.load %arg1[%c137, %c0_4] : memref<264x128xf32, #tpu.memory_space<vmem>>, vector<1x128xf32>
    %10 = vector.shape_cast %9 : vector<1x128xf32> to vector<1x128xf32>
    %11 = vector.broadcast %10 : vector<1x128xf32> to vector<4x128xf32>
    %12 = tpu.concatenate %8, %11 in 0 : vector<4x128xf32>, vector<4x128xf32> -> vector<8x128xf32>
    %c144 = arith.constant 144 : index
    %c0_5 = arith.constant 0 : index
    %13 = vector.load %arg1[%c144, %c0_5] : memref<264x128xf32, #tpu.memory_space<vmem>>, vector<32x32xf32>
    %14 = arith.truncf %13 : vector<32x32xf32> to vector<32x32xbf16>
    %c176 = arith.constant 176 : index
    %c0_6 = arith.constant 0 : index
    %15 = vector.load %arg1[%c176, %c0_6] : memref<264x128xf32, #tpu.memory_space<vmem>>, vector<1x32xf32>
    %16 = vector.shape_cast %15 : vector<1x32xf32> to vector<1x32xf32>
    %17 = vector.broadcast %16 : vector<1x32xf32> to vector<4x32xf32>
    %c184 = arith.constant 184 : index
    %c0_7 = arith.constant 0 : index
    %18 = vector.load %arg1[%c184, %c0_7] : memref<264x128xf32, #tpu.memory_space<vmem>>, vector<32x16xf32>
    %19 = arith.truncf %18 : vector<32x16xf32> to vector<32x16xbf16>
    %c216 = arith.constant 216 : index
    %c0_8 = arith.constant 0 : index
    %20 = vector.load %arg1[%c216, %c0_8] : memref<264x128xf32, #tpu.memory_space<vmem>>, vector<1x16xf32>
    %21 = vector.shape_cast %20 : vector<1x16xf32> to vector<1x16xf32>
    %22 = vector.broadcast %21 : vector<1x16xf32> to vector<4x16xf32>
    %c224 = arith.constant 224 : index
    %c0_9 = arith.constant 0 : index
    %23 = vector.load %arg1[%c224, %c0_9] : memref<264x128xf32, #tpu.memory_space<vmem>>, vector<16x32xf32>
    %24 = arith.truncf %23 : vector<16x32xf32> to vector<16x32xbf16>
    %c3 = arith.constant 3 : index
    %c0_10 = arith.constant 0 : index
    %25 = vector.load %arg1[%c3, %c0_10] : memref<264x128xf32, #tpu.memory_space<vmem>>, vector<1x32xf32>
    %26 = vector.shape_cast %25 : vector<1x32xf32> to vector<1x32xf32>
    %27 = vector.broadcast %26 : vector<1x32xf32> to vector<4x32xf32>
    %c0_11 = arith.constant 0 : index
    %c0_12 = arith.constant 0 : index
    %28 = vector.load %arg0[%c0_11, %c0_12] : memref<32x2xf32, #tpu.memory_space<vmem>>, vector<32x2xf32>
    %c0_13 = arith.constant 0 : index
    %c0_14 = arith.constant 0 : index
    %29 = vector.load %arg1[%c0_13, %c0_14] : memref<264x128xf32, #tpu.memory_space<vmem>>, vector<1x32xf32>
    %30 = vector.shape_cast %29 : vector<1x32xf32> to vector<1x32xf32>
    %31 = vector.broadcast %30 : vector<1x32xf32> to vector<32x32xf32>
    %c1 = arith.constant 1 : index
    %c0_15 = arith.constant 0 : index
    %32 = vector.load %arg1[%c1, %c0_15] : memref<264x128xf32, #tpu.memory_space<vmem>>, vector<1x32xf32>
    %33 = vector.shape_cast %32 : vector<1x32xf32> to vector<1x32xf32>
    %34 = vector.broadcast %33 : vector<1x32xf32> to vector<32x32xf32>
    %c2 = arith.constant 2 : index
    %c0_16 = arith.constant 0 : index
    %35 = vector.load %arg1[%c2, %c0_16] : memref<264x128xf32, #tpu.memory_space<vmem>>, vector<1x32xf32>
    %36 = vector.shape_cast %35 : vector<1x32xf32> to vector<1x32xf32>
    %37 = vector.broadcast %36 : vector<1x32xf32> to vector<32x32xf32>
    %38 = vector.extract_strided_slice %28 {offsets = [0, 0], sizes = [32, 1], strides = [1, 1]} : vector<32x2xf32> to vector<32x1xf32>
    %39 = vector.broadcast %38 : vector<32x1xf32> to vector<32x32xf32>
    %40 = arith.mulf %39, %31 : vector<32x32xf32>
    %41 = vector.extract_strided_slice %28 {offsets = [0, 1], sizes = [32, 1], strides = [1, 1]} : vector<32x2xf32> to vector<32x1xf32>
    %42 = vector.broadcast %41 : vector<32x1xf32> to vector<32x32xf32>
    %43 = arith.mulf %42, %34 : vector<32x32xf32>
    %44 = arith.addf %40, %43 : vector<32x32xf32>
    %45 = arith.addf %44, %37 : vector<32x32xf32>
    %cst = arith.constant 0.000000e+00 : f32
    %46 = vector.broadcast %cst : f32 to vector<32x32xf32>
    %47 = arith.maximumf %45, %46 : vector<32x32xf32>
    %48 = vector.extract_strided_slice %45 {offsets = [28, 0], sizes = [4, 32], strides = [1, 1]} : vector<32x32xf32> to vector<4x32xf32>
    %cst_17 = arith.constant 0.000000e+00 : f32
    %49 = vector.broadcast %cst_17 : f32 to vector<4x32xf32>
    %cst_18 = arith.constant 0.000000e+00 : f32
    %50 = vector.broadcast %cst_18 : f32 to vector<8x128xf32>
    %c0_19 = arith.constant 0 : index
    %c0_20 = arith.constant 0 : index
    %51 = vector.load %arg3[%c0_19, %c0_20] : memref<8x128xf32, #tpu.memory_space<vmem>>, vector<8x128xf32>
    tpu.vector_store %arg3[%c0_19, %c0_20], %50 {strides = array<i32>} : memref<8x128xf32, #tpu.memory_space<vmem>>, vector<8x128xf32>,
    %52 = vector.extract_strided_slice %47 {offsets = [0, 0], sizes = [4, 32], strides = [1, 1]} : vector<32x32xf32> to vector<4x32xf32>
    %c0_21 = arith.constant 0 : index
    %c0_22 = arith.constant 0 : index
    %53 = vector.load %arg3[%c0_21, %c0_22] : memref<8x128xf32, #tpu.memory_space<vmem>>, vector<4x32xf32>
    tpu.vector_store %arg3[%c0_21, %c0_22], %52 {strides = array<i32>} : memref<8x128xf32, #tpu.memory_space<vmem>>, vector<4x32xf32>,
    %c0_23 = arith.constant 0 : index
    %c32 = arith.constant 32 : index
    %54 = vector.load %arg3[%c0_23, %c32] : memref<8x128xf32, #tpu.memory_space<vmem>>, vector<4x32xf32>
    tpu.vector_store %arg3[%c0_23, %c32], %49 {strides = array<i32>} : memref<8x128xf32, #tpu.memory_space<vmem>>, vector<4x32xf32>,
    %c4 = arith.constant 4 : index
    %c64 = arith.constant 64 : index
    %55 = vector.load %arg3[%c4, %c64] : memref<8x128xf32, #tpu.memory_space<vmem>>, vector<4x32xf32>
    tpu.vector_store %arg3[%c4, %c64], %49 {strides = array<i32>} : memref<8x128xf32, #tpu.memory_space<vmem>>, vector<4x32xf32>,
    %c4_24 = arith.constant 4 : index
    %c96 = arith.constant 96 : index
    %56 = vector.load %arg3[%c4_24, %c96] : memref<8x128xf32, #tpu.memory_space<vmem>>, vector<4x32xf32>
    tpu.vector_store %arg3[%c4_24, %c96], %49 {strides = array<i32>} : memref<8x128xf32, #tpu.memory_space<vmem>>, vector<4x32xf32>,
    %c0_25 = arith.constant 0 : index
    %c0_26 = arith.constant 0 : index
    %57 = vector.load %arg3[%c0_25, %c0_26] : memref<8x128xf32, #tpu.memory_space<vmem>>, vector<8x128xf32>
    %58 = arith.truncf %57 : vector<8x128xf32> to vector<8x128xbf16>
    %cst_27 = arith.constant dense<0.000000e+00> : vector<8x128xf32>
    %59 = tpu.matmul %58, %1, %cst_27 {dimension_numbers = #tpu.dot_dimension_numbers<[1], [0], [0], [1], [0, 0, 1, 1], [], []>} : vector<8x128xbf16>, vector<128x128xbf16>, vector<8x128xf32> -> vector<8x128xf32>
    %60 = arith.addf %59, %12 : vector<8x128xf32>
    %61 = arith.negf %60 : vector<8x128xf32>
    %62 = math.exp %61 : vector<8x128xf32>
    %cst_28 = arith.constant 1.000000e+00 : f32
    %63 = vector.broadcast %cst_28 : f32 to vector<8x128xf32>
    %64 = arith.addf %63, %62 : vector<8x128xf32>
    %65 = arith.divf %63, %64 : vector<8x128xf32>
    %66 = vector.extract_strided_slice %65 {offsets = [0, 0], sizes = [4, 128], strides = [1, 1]} : vector<8x128xf32> to vector<4x128xf32>
    %67 = vector.extract_strided_slice %66 {offsets = [0, 0], sizes = [4, 32], strides = [1, 1]} : vector<4x128xf32> to vector<4x32xf32>
    %68 = vector.extract_strided_slice %66 {offsets = [0, 32], sizes = [4, 32], strides = [1, 1]} : vector<4x128xf32> to vector<4x32xf32>
    %69 = vector.extract_strided_slice %66 {offsets = [0, 64], sizes = [4, 32], strides = [1, 1]} : vector<4x128xf32> to vector<4x32xf32>
    %cst_29 = arith.constant 2.000000e+00 : f32
    %70 = vector.broadcast %cst_29 : f32 to vector<4x32xf32>
    %71 = arith.mulf %70, %69 : vector<4x32xf32>
    %cst_30 = arith.constant 1.000000e+00 : f32
    %72 = vector.broadcast %cst_30 : f32 to vector<4x32xf32>
    %73 = arith.subf %71, %72 : vector<4x32xf32>
    %74 = vector.extract_strided_slice %66 {offsets = [0, 96], sizes = [4, 32], strides = [1, 1]} : vector<4x128xf32> to vector<4x32xf32>
    %75 = arith.mulf %68, %49 : vector<4x32xf32>
    %76 = arith.mulf %67, %73 : vector<4x32xf32>
    %77 = arith.addf %75, %76 : vector<4x32xf32>
    %78 = math.tanh %77 : vector<4x32xf32>
    %79 = arith.mulf %74, %78 : vector<4x32xf32>
    %80 = vector.extract_strided_slice %47 {offsets = [4, 0], sizes = [4, 32], strides = [1, 1]} : vector<32x32xf32> to vector<4x32xf32>
    %c0_31 = arith.constant 0 : index
    %c0_32 = arith.constant 0 : index
    %81 = vector.load %arg3[%c0_31, %c0_32] : memref<8x128xf32, #tpu.memory_space<vmem>>, vector<4x32xf32>
    tpu.vector_store %arg3[%c0_31, %c0_32], %80 {strides = array<i32>} : memref<8x128xf32, #tpu.memory_space<vmem>>, vector<4x32xf32>,
    %c0_33 = arith.constant 0 : index
    %c32_34 = arith.constant 32 : index
    %82 = vector.load %arg3[%c0_33, %c32_34] : memref<8x128xf32, #tpu.memory_space<vmem>>, vector<4x32xf32>
    tpu.vector_store %arg3[%c0_33, %c32_34], %79 {strides = array<i32>} : memref<8x128xf32, #tpu.memory_space<vmem>>, vector<4x32xf32>,
    %c4_35 = arith.constant 4 : index
    %c64_36 = arith.constant 64 : index
    %83 = vector.load %arg3[%c4_35, %c64_36] : memref<8x128xf32, #tpu.memory_space<vmem>>, vector<4x32xf32>
    tpu.vector_store %arg3[%c4_35, %c64_36], %79 {strides = array<i32>} : memref<8x128xf32, #tpu.memory_space<vmem>>, vector<4x32xf32>,
    %c4_37 = arith.constant 4 : index
    %c96_38 = arith.constant 96 : index
    %84 = vector.load %arg3[%c4_37, %c96_38] : memref<8x128xf32, #tpu.memory_space<vmem>>, vector<4x32xf32>
    tpu.vector_store %arg3[%c4_37, %c96_38], %49 {strides = array<i32>} : memref<8x128xf32, #tpu.memory_space<vmem>>, vector<4x32xf32>,
    %c0_39 = arith.constant 0 : index
    %c0_40 = arith.constant 0 : index
    %85 = vector.load %arg3[%c0_39, %c0_40] : memref<8x128xf32, #tpu.memory_space<vmem>>, vector<8x128xf32>
    %86 = arith.truncf %85 : vector<8x128xf32> to vector<8x128xbf16>
    %cst_41 = arith.constant dense<0.000000e+00> : vector<8x128xf32>
    %87 = tpu.matmul %86, %1, %cst_41 {dimension_numbers = #tpu.dot_dimension_numbers<[1], [0], [0], [1], [0, 0, 1, 1], [], []>} : vector<8x128xbf16>, vector<128x128xbf16>, vector<8x128xf32> -> vector<8x128xf32>
    %88 = arith.addf %87, %12 : vector<8x128xf32>
    %89 = arith.negf %88 : vector<8x128xf32>
    %90 = math.exp %89 : vector<8x128xf32>
    %cst_42 = arith.constant 1.000000e+00 : f32
    %91 = vector.broadcast %cst_42 : f32 to vector<8x128xf32>
    %92 = arith.addf %91, %90 : vector<8x128xf32>
    %93 = arith.divf %91, %92 : vector<8x128xf32>
    %94 = vector.extract_strided_slice %93 {offsets = [0, 0], sizes = [4, 128], strides = [1, 1]} : vector<8x128xf32> to vector<4x128xf32>
    %95 = vector.extract_strided_slice %94 {offsets = [0, 0], sizes = [4, 32], strides = [1, 1]} : vector<4x128xf32> to vector<4x32xf32>
    %96 = vector.extract_strided_slice %94 {offsets = [0, 32], sizes = [4, 32], strides = [1, 1]} : vector<4x128xf32> to vector<4x32xf32>
    %97 = vector.extract_strided_slice %94 {offsets = [0, 64], sizes = [4, 32], strides = [1, 1]} : vector<4x128xf32> to vector<4x32xf32>
    %cst_43 = arith.constant 2.000000e+00 : f32
    %98 = vector.broadcast %cst_43 : f32 to vector<4x32xf32>
    %99 = arith.mulf %98, %97 : vector<4x32xf32>
    %cst_44 = arith.constant 1.000000e+00 : f32
    %100 = vector.broadcast %cst_44 : f32 to vector<4x32xf32>
    %101 = arith.subf %99, %100 : vector<4x32xf32>
    %102 = vector.extract_strided_slice %94 {offsets = [0, 96], sizes = [4, 32], strides = [1, 1]} : vector<4x128xf32> to vector<4x32xf32>
    %103 = arith.mulf %96, %77 : vector<4x32xf32>
    %104 = arith.mulf %95, %101 : vector<4x32xf32>
    %105 = arith.addf %103, %104 : vector<4x32xf32>
    %106 = math.tanh %105 : vector<4x32xf32>
    %107 = arith.mulf %102, %106 : vector<4x32xf32>
    %108 = vector.extract_strided_slice %93 {offsets = [4, 0], sizes = [4, 128], strides = [1, 1]} : vector<8x128xf32> to vector<4x128xf32>
    %109 = vector.extract_strided_slice %108 {offsets = [0, 0], sizes = [4, 32], strides = [1, 1]} : vector<4x128xf32> to vector<4x32xf32>
    %110 = vector.extract_strided_slice %108 {offsets = [0, 32], sizes = [4, 32], strides = [1, 1]} : vector<4x128xf32> to vector<4x32xf32>
    %111 = vector.extract_strided_slice %108 {offsets = [0, 64], sizes = [4, 32], strides = [1, 1]} : vector<4x128xf32> to vector<4x32xf32>
    %cst_45 = arith.constant 2.000000e+00 : f32
    %112 = vector.broadcast %cst_45 : f32 to vector<4x32xf32>
    %113 = arith.mulf %112, %111 : vector<4x32xf32>
    %cst_46 = arith.constant 1.000000e+00 : f32
    %114 = vector.broadcast %cst_46 : f32 to vector<4x32xf32>
    %115 = arith.subf %113, %114 : vector<4x32xf32>
    %116 = vector.extract_strided_slice %108 {offsets = [0, 96], sizes = [4, 32], strides = [1, 1]} : vector<4x128xf32> to vector<4x32xf32>
    %117 = arith.mulf %110, %49 : vector<4x32xf32>
    %118 = arith.mulf %109, %115 : vector<4x32xf32>
    %119 = arith.addf %117, %118 : vector<4x32xf32>
    %120 = math.tanh %119 : vector<4x32xf32>
    %121 = arith.mulf %116, %120 : vector<4x32xf32>
    %122 = vector.extract_strided_slice %47 {offsets = [8, 0], sizes = [4, 32], strides = [1, 1]} : vector<32x32xf32> to vector<4x32xf32>
    %c0_47 = arith.constant 0 : index
    %c0_48 = arith.constant 0 : index
    %123 = vector.load %arg3[%c0_47, %c0_48] : memref<8x128xf32, #tpu.memory_space<vmem>>, vector<4x32xf32>
    tpu.vector_store %arg3[%c0_47, %c0_48], %122 {strides = array<i32>} : memref<8x128xf32, #tpu.memory_space<vmem>>, vector<4x32xf32>,
    %c0_49 = arith.constant 0 : index
    %c32_50 = arith.constant 32 : index
    %124 = vector.load %arg3[%c0_49, %c32_50] : memref<8x128xf32, #tpu.memory_space<vmem>>, vector<4x32xf32>
    tpu.vector_store %arg3[%c0_49, %c32_50], %107 {strides = array<i32>} : memref<8x128xf32, #tpu.memory_space<vmem>>, vector<4x32xf32>,
    %c4_51 = arith.constant 4 : index
    %c64_52 = arith.constant 64 : index
    %125 = vector.load %arg3[%c4_51, %c64_52] : memref<8x128xf32, #tpu.memory_space<vmem>>, vector<4x32xf32>
    tpu.vector_store %arg3[%c4_51, %c64_52], %107 {strides = array<i32>} : memref<8x128xf32, #tpu.memory_space<vmem>>, vector<4x32xf32>,
    %c4_53 = arith.constant 4 : index
    %c96_54 = arith.constant 96 : index
    %126 = vector.load %arg3[%c4_53, %c96_54] : memref<8x128xf32, #tpu.memory_space<vmem>>, vector<4x32xf32>
    tpu.vector_store %arg3[%c4_53, %c96_54], %121 {strides = array<i32>} : memref<8x128xf32, #tpu.memory_space<vmem>>, vector<4x32xf32>,
    %c0_55 = arith.constant 0 : index
    %c0_56 = arith.constant 0 : index
    %127 = vector.load %arg3[%c0_55, %c0_56] : memref<8x128xf32, #tpu.memory_space<vmem>>, vector<8x128xf32>
    %128 = arith.truncf %127 : vector<8x128xf32> to vector<8x128xbf16>
    %cst_57 = arith.constant dense<0.000000e+00> : vector<8x128xf32>
    %129 = tpu.matmul %128, %1, %cst_57 {dimension_numbers = #tpu.dot_dimension_numbers<[1], [0], [0], [1], [0, 0, 1, 1], [], []>} : vector<8x128xbf16>, vector<128x128xbf16>, vector<8x128xf32> -> vector<8x128xf32>
    %130 = arith.addf %129, %12 : vector<8x128xf32>
    %131 = arith.negf %130 : vector<8x128xf32>
    %132 = math.exp %131 : vector<8x128xf32>
    %cst_58 = arith.constant 1.000000e+00 : f32
    %133 = vector.broadcast %cst_58 : f32 to vector<8x128xf32>
    %134 = arith.addf %133, %132 : vector<8x128xf32>
    %135 = arith.divf %133, %134 : vector<8x128xf32>
    %136 = vector.extract_strided_slice %135 {offsets = [0, 0], sizes = [4, 128], strides = [1, 1]} : vector<8x128xf32> to vector<4x128xf32>
    %137 = vector.extract_strided_slice %136 {offsets = [0, 0], sizes = [4, 32], strides = [1, 1]} : vector<4x128xf32> to vector<4x32xf32>
    %138 = vector.extract_strided_slice %136 {offsets = [0, 32], sizes = [4, 32], strides = [1, 1]} : vector<4x128xf32> to vector<4x32xf32>
    %139 = vector.extract_strided_slice %136 {offsets = [0, 64], sizes = [4, 32], strides = [1, 1]} : vector<4x128xf32> to vector<4x32xf32>
    %cst_59 = arith.constant 2.000000e+00 : f32
    %140 = vector.broadcast %cst_59 : f32 to vector<4x32xf32>
    %141 = arith.mulf %140, %139 : vector<4x32xf32>
    %cst_60 = arith.constant 1.000000e+00 : f32
    %142 = vector.broadcast %cst_60 : f32 to vector<4x32xf32>
    %143 = arith.subf %141, %142 : vector<4x32xf32>
    %144 = vector.extract_strided_slice %136 {offsets = [0, 96], sizes = [4, 32], strides = [1, 1]} : vector<4x128xf32> to vector<4x32xf32>
    %145 = arith.mulf %138, %105 : vector<4x32xf32>
    %146 = arith.mulf %137, %143 : vector<4x32xf32>
    %147 = arith.addf %145, %146 : vector<4x32xf32>
    %148 = math.tanh %147 : vector<4x32xf32>
    %149 = arith.mulf %144, %148 : vector<4x32xf32>
    %150 = vector.extract_strided_slice %135 {offsets = [4, 0], sizes = [4, 128], strides = [1, 1]} : vector<8x128xf32> to vector<4x128xf32>
    %151 = vector.extract_strided_slice %150 {offsets = [0, 0], sizes = [4, 32], strides = [1, 1]} : vector<4x128xf32> to vector<4x32xf32>
    %152 = vector.extract_strided_slice %150 {offsets = [0, 32], sizes = [4, 32], strides = [1, 1]} : vector<4x128xf32> to vector<4x32xf32>
    %153 = vector.extract_strided_slice %150 {offsets = [0, 64], sizes = [4, 32], strides = [1, 1]} : vector<4x128xf32> to vector<4x32xf32>
    %cst_61 = arith.constant 2.000000e+00 : f32
    %154 = vector.broadcast %cst_61 : f32 to vector<4x32xf32>
    %155 = arith.mulf %154, %153 : vector<4x32xf32>
    %cst_62 = arith.constant 1.000000e+00 : f32
    %156 = vector.broadcast %cst_62 : f32 to vector<4x32xf32>
    %157 = arith.subf %155, %156 : vector<4x32xf32>
    %158 = vector.extract_strided_slice %150 {offsets = [0, 96], sizes = [4, 32], strides = [1, 1]} : vector<4x128xf32> to vector<4x32xf32>
    %159 = arith.mulf %152, %119 : vector<4x32xf32>
    %160 = arith.mulf %151, %157 : vector<4x32xf32>
    %161 = arith.addf %159, %160 : vector<4x32xf32>
    %162 = math.tanh %161 : vector<4x32xf32>
    %163 = arith.mulf %158, %162 : vector<4x32xf32>
    %164 = vector.extract_strided_slice %47 {offsets = [12, 0], sizes = [4, 32], strides = [1, 1]} : vector<32x32xf32> to vector<4x32xf32>
    %c0_63 = arith.constant 0 : index
    %c0_64 = arith.constant 0 : index
    %165 = vector.load %arg3[%c0_63, %c0_64] : memref<8x128xf32, #tpu.memory_space<vmem>>, vector<4x32xf32>
    tpu.vector_store %arg3[%c0_63, %c0_64], %164 {strides = array<i32>} : memref<8x128xf32, #tpu.memory_space<vmem>>, vector<4x32xf32>,
    %c0_65 = arith.constant 0 : index
    %c32_66 = arith.constant 32 : index
    %166 = vector.load %arg3[%c0_65, %c32_66] : memref<8x128xf32, #tpu.memory_space<vmem>>, vector<4x32xf32>
    tpu.vector_store %arg3[%c0_65, %c32_66], %149 {strides = array<i32>} : memref<8x128xf32, #tpu.memory_space<vmem>>, vector<4x32xf32>,
    %c4_67 = arith.constant 4 : index
    %c64_68 = arith.constant 64 : index
    %167 = vector.load %arg3[%c4_67, %c64_68] : memref<8x128xf32, #tpu.memory_space<vmem>>, vector<4x32xf32>
    tpu.vector_store %arg3[%c4_67, %c64_68], %149 {strides = array<i32>} : memref<8x128xf32, #tpu.memory_space<vmem>>, vector<4x32xf32>,
    %c4_69 = arith.constant 4 : index
    %c96_70 = arith.constant 96 : index
    %168 = vector.load %arg3[%c4_69, %c96_70] : memref<8x128xf32, #tpu.memory_space<vmem>>, vector<4x32xf32>
    tpu.vector_store %arg3[%c4_69, %c96_70], %163 {strides = array<i32>} : memref<8x128xf32, #tpu.memory_space<vmem>>, vector<4x32xf32>,
    %c0_71 = arith.constant 0 : index
    %c0_72 = arith.constant 0 : index
    %169 = vector.load %arg3[%c0_71, %c0_72] : memref<8x128xf32, #tpu.memory_space<vmem>>, vector<8x128xf32>
    %170 = arith.truncf %169 : vector<8x128xf32> to vector<8x128xbf16>
    %cst_73 = arith.constant dense<0.000000e+00> : vector<8x128xf32>
    %171 = tpu.matmul %170, %1, %cst_73 {dimension_numbers = #tpu.dot_dimension_numbers<[1], [0], [0], [1], [0, 0, 1, 1], [], []>} : vector<8x128xbf16>, vector<128x128xbf16>, vector<8x128xf32> -> vector<8x128xf32>
    %172 = arith.addf %171, %12 : vector<8x128xf32>
    %173 = arith.negf %172 : vector<8x128xf32>
    %174 = math.exp %173 : vector<8x128xf32>
    %cst_74 = arith.constant 1.000000e+00 : f32
    %175 = vector.broadcast %cst_74 : f32 to vector<8x128xf32>
    %176 = arith.addf %175, %174 : vector<8x128xf32>
    %177 = arith.divf %175, %176 : vector<8x128xf32>
    %178 = vector.extract_strided_slice %177 {offsets = [0, 0], sizes = [4, 128], strides = [1, 1]} : vector<8x128xf32> to vector<4x128xf32>
    %179 = vector.extract_strided_slice %178 {offsets = [0, 0], sizes = [4, 32], strides = [1, 1]} : vector<4x128xf32> to vector<4x32xf32>
    %180 = vector.extract_strided_slice %178 {offsets = [0, 32], sizes = [4, 32], strides = [1, 1]} : vector<4x128xf32> to vector<4x32xf32>
    %181 = vector.extract_strided_slice %178 {offsets = [0, 64], sizes = [4, 32], strides = [1, 1]} : vector<4x128xf32> to vector<4x32xf32>
    %cst_75 = arith.constant 2.000000e+00 : f32
    %182 = vector.broadcast %cst_75 : f32 to vector<4x32xf32>
    %183 = arith.mulf %182, %181 : vector<4x32xf32>
    %cst_76 = arith.constant 1.000000e+00 : f32
    %184 = vector.broadcast %cst_76 : f32 to vector<4x32xf32>
    %185 = arith.subf %183, %184 : vector<4x32xf32>
    %186 = vector.extract_strided_slice %178 {offsets = [0, 96], sizes = [4, 32], strides = [1, 1]} : vector<4x128xf32> to vector<4x32xf32>
    %187 = arith.mulf %180, %147 : vector<4x32xf32>
    %188 = arith.mulf %179, %185 : vector<4x32xf32>
    %189 = arith.addf %187, %188 : vector<4x32xf32>
    %190 = math.tanh %189 : vector<4x32xf32>
    %191 = arith.mulf %186, %190 : vector<4x32xf32>
    %192 = vector.extract_strided_slice %177 {offsets = [4, 0], sizes = [4, 128], strides = [1, 1]} : vector<8x128xf32> to vector<4x128xf32>
    %193 = vector.extract_strided_slice %192 {offsets = [0, 0], sizes = [4, 32], strides = [1, 1]} : vector<4x128xf32> to vector<4x32xf32>
    %194 = vector.extract_strided_slice %192 {offsets = [0, 32], sizes = [4, 32], strides = [1, 1]} : vector<4x128xf32> to vector<4x32xf32>
    %195 = vector.extract_strided_slice %192 {offsets = [0, 64], sizes = [4, 32], strides = [1, 1]} : vector<4x128xf32> to vector<4x32xf32>
    %cst_77 = arith.constant 2.000000e+00 : f32
    %196 = vector.broadcast %cst_77 : f32 to vector<4x32xf32>
    %197 = arith.mulf %196, %195 : vector<4x32xf32>
    %cst_78 = arith.constant 1.000000e+00 : f32
    %198 = vector.broadcast %cst_78 : f32 to vector<4x32xf32>
    %199 = arith.subf %197, %198 : vector<4x32xf32>
    %200 = vector.extract_strided_slice %192 {offsets = [0, 96], sizes = [4, 32], strides = [1, 1]} : vector<4x128xf32> to vector<4x32xf32>
    %201 = arith.mulf %194, %161 : vector<4x32xf32>
    %202 = arith.mulf %193, %199 : vector<4x32xf32>
    %203 = arith.addf %201, %202 : vector<4x32xf32>
    %204 = math.tanh %203 : vector<4x32xf32>
    %205 = arith.mulf %200, %204 : vector<4x32xf32>
    %206 = vector.extract_strided_slice %47 {offsets = [16, 0], sizes = [4, 32], strides = [1, 1]} : vector<32x32xf32> to vector<4x32xf32>
    %c0_79 = arith.constant 0 : index
    %c0_80 = arith.constant 0 : index
    %207 = vector.load %arg3[%c0_79, %c0_80] : memref<8x128xf32, #tpu.memory_space<vmem>>, vector<4x32xf32>
    tpu.vector_store %arg3[%c0_79, %c0_80], %206 {strides = array<i32>} : memref<8x128xf32, #tpu.memory_space<vmem>>, vector<4x32xf32>,
    %c0_81 = arith.constant 0 : index
    %c32_82 = arith.constant 32 : index
    %208 = vector.load %arg3[%c0_81, %c32_82] : memref<8x128xf32, #tpu.memory_space<vmem>>, vector<4x32xf32>
    tpu.vector_store %arg3[%c0_81, %c32_82], %191 {strides = array<i32>} : memref<8x128xf32, #tpu.memory_space<vmem>>, vector<4x32xf32>,
    %c4_83 = arith.constant 4 : index
    %c64_84 = arith.constant 64 : index
    %209 = vector.load %arg3[%c4_83, %c64_84] : memref<8x128xf32, #tpu.memory_space<vmem>>, vector<4x32xf32>
    tpu.vector_store %arg3[%c4_83, %c64_84], %191 {strides = array<i32>} : memref<8x128xf32, #tpu.memory_space<vmem>>, vector<4x32xf32>,
    %c4_85 = arith.constant 4 : index
    %c96_86 = arith.constant 96 : index
    %210 = vector.load %arg3[%c4_85, %c96_86] : memref<8x128xf32, #tpu.memory_space<vmem>>, vector<4x32xf32>
    tpu.vector_store %arg3[%c4_85, %c96_86], %205 {strides = array<i32>} : memref<8x128xf32, #tpu.memory_space<vmem>>, vector<4x32xf32>,
    %c0_87 = arith.constant 0 : index
    %c0_88 = arith.constant 0 : index
    %211 = vector.load %arg3[%c0_87, %c0_88] : memref<8x128xf32, #tpu.memory_space<vmem>>, vector<8x128xf32>
    %212 = arith.truncf %211 : vector<8x128xf32> to vector<8x128xbf16>
    %cst_89 = arith.constant dense<0.000000e+00> : vector<8x128xf32>
    %213 = tpu.matmul %212, %1, %cst_89 {dimension_numbers = #tpu.dot_dimension_numbers<[1], [0], [0], [1], [0, 0, 1, 1], [], []>} : vector<8x128xbf16>, vector<128x128xbf16>, vector<8x128xf32> -> vector<8x128xf32>
    %214 = arith.addf %213, %12 : vector<8x128xf32>
    %215 = arith.negf %214 : vector<8x128xf32>
    %216 = math.exp %215 : vector<8x128xf32>
    %cst_90 = arith.constant 1.000000e+00 : f32
    %217 = vector.broadcast %cst_90 : f32 to vector<8x128xf32>
    %218 = arith.addf %217, %216 : vector<8x128xf32>
    %219 = arith.divf %217, %218 : vector<8x128xf32>
    %220 = vector.extract_strided_slice %219 {offsets = [0, 0], sizes = [4, 128], strides = [1, 1]} : vector<8x128xf32> to vector<4x128xf32>
    %221 = vector.extract_strided_slice %220 {offsets = [0, 0], sizes = [4, 32], strides = [1, 1]} : vector<4x128xf32> to vector<4x32xf32>
    %222 = vector.extract_strided_slice %220 {offsets = [0, 32], sizes = [4, 32], strides = [1, 1]} : vector<4x128xf32> to vector<4x32xf32>
    %223 = vector.extract_strided_slice %220 {offsets = [0, 64], sizes = [4, 32], strides = [1, 1]} : vector<4x128xf32> to vector<4x32xf32>
    %cst_91 = arith.constant 2.000000e+00 : f32
    %224 = vector.broadcast %cst_91 : f32 to vector<4x32xf32>
    %225 = arith.mulf %224, %223 : vector<4x32xf32>
    %cst_92 = arith.constant 1.000000e+00 : f32
    %226 = vector.broadcast %cst_92 : f32 to vector<4x32xf32>
    %227 = arith.subf %225, %226 : vector<4x32xf32>
    %228 = vector.extract_strided_slice %220 {offsets = [0, 96], sizes = [4, 32], strides = [1, 1]} : vector<4x128xf32> to vector<4x32xf32>
    %229 = arith.mulf %222, %189 : vector<4x32xf32>
    %230 = arith.mulf %221, %227 : vector<4x32xf32>
    %231 = arith.addf %229, %230 : vector<4x32xf32>
    %232 = math.tanh %231 : vector<4x32xf32>
    %233 = arith.mulf %228, %232 : vector<4x32xf32>
    %234 = vector.extract_strided_slice %219 {offsets = [4, 0], sizes = [4, 128], strides = [1, 1]} : vector<8x128xf32> to vector<4x128xf32>
    %235 = vector.extract_strided_slice %234 {offsets = [0, 0], sizes = [4, 32], strides = [1, 1]} : vector<4x128xf32> to vector<4x32xf32>
    %236 = vector.extract_strided_slice %234 {offsets = [0, 32], sizes = [4, 32], strides = [1, 1]} : vector<4x128xf32> to vector<4x32xf32>
    %237 = vector.extract_strided_slice %234 {offsets = [0, 64], sizes = [4, 32], strides = [1, 1]} : vector<4x128xf32> to vector<4x32xf32>
    %cst_93 = arith.constant 2.000000e+00 : f32
    %238 = vector.broadcast %cst_93 : f32 to vector<4x32xf32>
    %239 = arith.mulf %238, %237 : vector<4x32xf32>
    %cst_94 = arith.constant 1.000000e+00 : f32
    %240 = vector.broadcast %cst_94 : f32 to vector<4x32xf32>
    %241 = arith.subf %239, %240 : vector<4x32xf32>
    %242 = vector.extract_strided_slice %234 {offsets = [0, 96], sizes = [4, 32], strides = [1, 1]} : vector<4x128xf32> to vector<4x32xf32>
    %243 = arith.mulf %236, %203 : vector<4x32xf32>
    %244 = arith.mulf %235, %241 : vector<4x32xf32>
    %245 = arith.addf %243, %244 : vector<4x32xf32>
    %246 = math.tanh %245 : vector<4x32xf32>
    %247 = arith.mulf %242, %246 : vector<4x32xf32>
    %248 = vector.extract_strided_slice %47 {offsets = [20, 0], sizes = [4, 32], strides = [1, 1]} : vector<32x32xf32> to vector<4x32xf32>
    %c0_95 = arith.constant 0 : index
    %c0_96 = arith.constant 0 : index
    %249 = vector.load %arg3[%c0_95, %c0_96] : memref<8x128xf32, #tpu.memory_space<vmem>>, vector<4x32xf32>
    tpu.vector_store %arg3[%c0_95, %c0_96], %248 {strides = array<i32>} : memref<8x128xf32, #tpu.memory_space<vmem>>, vector<4x32xf32>,
    %c0_97 = arith.constant 0 : index
    %c32_98 = arith.constant 32 : index
    %250 = vector.load %arg3[%c0_97, %c32_98] : memref<8x128xf32, #tpu.memory_space<vmem>>, vector<4x32xf32>
    tpu.vector_store %arg3[%c0_97, %c32_98], %233 {strides = array<i32>} : memref<8x128xf32, #tpu.memory_space<vmem>>, vector<4x32xf32>,
    %c4_99 = arith.constant 4 : index
    %c64_100 = arith.constant 64 : index
    %251 = vector.load %arg3[%c4_99, %c64_100] : memref<8x128xf32, #tpu.memory_space<vmem>>, vector<4x32xf32>
    tpu.vector_store %arg3[%c4_99, %c64_100], %233 {strides = array<i32>} : memref<8x128xf32, #tpu.memory_space<vmem>>, vector<4x32xf32>,
    %c4_101 = arith.constant 4 : index
    %c96_102 = arith.constant 96 : index
    %252 = vector.load %arg3[%c4_101, %c96_102] : memref<8x128xf32, #tpu.memory_space<vmem>>, vector<4x32xf32>
    tpu.vector_store %arg3[%c4_101, %c96_102], %247 {strides = array<i32>} : memref<8x128xf32, #tpu.memory_space<vmem>>, vector<4x32xf32>,
    %c0_103 = arith.constant 0 : index
    %c0_104 = arith.constant 0 : index
    %253 = vector.load %arg3[%c0_103, %c0_104] : memref<8x128xf32, #tpu.memory_space<vmem>>, vector<8x128xf32>
    %254 = arith.truncf %253 : vector<8x128xf32> to vector<8x128xbf16>
    %cst_105 = arith.constant dense<0.000000e+00> : vector<8x128xf32>
    %255 = tpu.matmul %254, %1, %cst_105 {dimension_numbers = #tpu.dot_dimension_numbers<[1], [0], [0], [1], [0, 0, 1, 1], [], []>} : vector<8x128xbf16>, vector<128x128xbf16>, vector<8x128xf32> -> vector<8x128xf32>
    %256 = arith.addf %255, %12 : vector<8x128xf32>
    %257 = arith.negf %256 : vector<8x128xf32>
    %258 = math.exp %257 : vector<8x128xf32>
    %cst_106 = arith.constant 1.000000e+00 : f32
    %259 = vector.broadcast %cst_106 : f32 to vector<8x128xf32>
    %260 = arith.addf %259, %258 : vector<8x128xf32>
    %261 = arith.divf %259, %260 : vector<8x128xf32>
    %262 = vector.extract_strided_slice %261 {offsets = [0, 0], sizes = [4, 128], strides = [1, 1]} : vector<8x128xf32> to vector<4x128xf32>
    %263 = vector.extract_strided_slice %262 {offsets = [0, 0], sizes = [4, 32], strides = [1, 1]} : vector<4x128xf32> to vector<4x32xf32>
    %264 = vector.extract_strided_slice %262 {offsets = [0, 32], sizes = [4, 32], strides = [1, 1]} : vector<4x128xf32> to vector<4x32xf32>
    %265 = vector.extract_strided_slice %262 {offsets = [0, 64], sizes = [4, 32], strides = [1, 1]} : vector<4x128xf32> to vector<4x32xf32>
    %cst_107 = arith.constant 2.000000e+00 : f32
    %266 = vector.broadcast %cst_107 : f32 to vector<4x32xf32>
    %267 = arith.mulf %266, %265 : vector<4x32xf32>
    %cst_108 = arith.constant 1.000000e+00 : f32
    %268 = vector.broadcast %cst_108 : f32 to vector<4x32xf32>
    %269 = arith.subf %267, %268 : vector<4x32xf32>
    %270 = vector.extract_strided_slice %262 {offsets = [0, 96], sizes = [4, 32], strides = [1, 1]} : vector<4x128xf32> to vector<4x32xf32>
    %271 = arith.mulf %264, %231 : vector<4x32xf32>
    %272 = arith.mulf %263, %269 : vector<4x32xf32>
    %273 = arith.addf %271, %272 : vector<4x32xf32>
    %274 = math.tanh %273 : vector<4x32xf32>
    %275 = arith.mulf %270, %274 : vector<4x32xf32>
    %276 = vector.extract_strided_slice %261 {offsets = [4, 0], sizes = [4, 128], strides = [1, 1]} : vector<8x128xf32> to vector<4x128xf32>
    %277 = vector.extract_strided_slice %276 {offsets = [0, 0], sizes = [4, 32], strides = [1, 1]} : vector<4x128xf32> to vector<4x32xf32>
    %278 = vector.extract_strided_slice %276 {offsets = [0, 32], sizes = [4, 32], strides = [1, 1]} : vector<4x128xf32> to vector<4x32xf32>
    %279 = vector.extract_strided_slice %276 {offsets = [0, 64], sizes = [4, 32], strides = [1, 1]} : vector<4x128xf32> to vector<4x32xf32>
    %cst_109 = arith.constant 2.000000e+00 : f32
    %280 = vector.broadcast %cst_109 : f32 to vector<4x32xf32>
    %281 = arith.mulf %280, %279 : vector<4x32xf32>
    %cst_110 = arith.constant 1.000000e+00 : f32
    %282 = vector.broadcast %cst_110 : f32 to vector<4x32xf32>
    %283 = arith.subf %281, %282 : vector<4x32xf32>
    %284 = vector.extract_strided_slice %276 {offsets = [0, 96], sizes = [4, 32], strides = [1, 1]} : vector<4x128xf32> to vector<4x32xf32>
    %285 = arith.mulf %278, %245 : vector<4x32xf32>
    %286 = arith.mulf %277, %283 : vector<4x32xf32>
    %287 = arith.addf %285, %286 : vector<4x32xf32>
    %288 = math.tanh %287 : vector<4x32xf32>
    %289 = arith.mulf %284, %288 : vector<4x32xf32>
    %290 = vector.extract_strided_slice %47 {offsets = [24, 0], sizes = [4, 32], strides = [1, 1]} : vector<32x32xf32> to vector<4x32xf32>
    %c0_111 = arith.constant 0 : index
    %c0_112 = arith.constant 0 : index
    %291 = vector.load %arg3[%c0_111, %c0_112] : memref<8x128xf32, #tpu.memory_space<vmem>>, vector<4x32xf32>
    tpu.vector_store %arg3[%c0_111, %c0_112], %290 {strides = array<i32>} : memref<8x128xf32, #tpu.memory_space<vmem>>, vector<4x32xf32>,
    %c0_113 = arith.constant 0 : index
    %c32_114 = arith.constant 32 : index
    %292 = vector.load %arg3[%c0_113, %c32_114] : memref<8x128xf32, #tpu.memory_space<vmem>>, vector<4x32xf32>
    tpu.vector_store %arg3[%c0_113, %c32_114], %275 {strides = array<i32>} : memref<8x128xf32, #tpu.memory_space<vmem>>, vector<4x32xf32>,
    %c4_115 = arith.constant 4 : index
    %c64_116 = arith.constant 64 : index
    %293 = vector.load %arg3[%c4_115, %c64_116] : memref<8x128xf32, #tpu.memory_space<vmem>>, vector<4x32xf32>
    tpu.vector_store %arg3[%c4_115, %c64_116], %275 {strides = array<i32>} : memref<8x128xf32, #tpu.memory_space<vmem>>, vector<4x32xf32>,
    %c4_117 = arith.constant 4 : index
    %c96_118 = arith.constant 96 : index
    %294 = vector.load %arg3[%c4_117, %c96_118] : memref<8x128xf32, #tpu.memory_space<vmem>>, vector<4x32xf32>
    tpu.vector_store %arg3[%c4_117, %c96_118], %289 {strides = array<i32>} : memref<8x128xf32, #tpu.memory_space<vmem>>, vector<4x32xf32>,
    %c0_119 = arith.constant 0 : index
    %c0_120 = arith.constant 0 : index
    %295 = vector.load %arg3[%c0_119, %c0_120] : memref<8x128xf32, #tpu.memory_space<vmem>>, vector<8x128xf32>
    %296 = arith.truncf %295 : vector<8x128xf32> to vector<8x128xbf16>
    %cst_121 = arith.constant dense<0.000000e+00> : vector<8x128xf32>
    %297 = tpu.matmul %296, %1, %cst_121 {dimension_numbers = #tpu.dot_dimension_numbers<[1], [0], [0], [1], [0, 0, 1, 1], [], []>} : vector<8x128xbf16>, vector<128x128xbf16>, vector<8x128xf32> -> vector<8x128xf32>
    %298 = arith.addf %297, %12 : vector<8x128xf32>
    %299 = arith.negf %298 : vector<8x128xf32>
    %300 = math.exp %299 : vector<8x128xf32>
    %cst_122 = arith.constant 1.000000e+00 : f32
    %301 = vector.broadcast %cst_122 : f32 to vector<8x128xf32>
    %302 = arith.addf %301, %300 : vector<8x128xf32>
    %303 = arith.divf %301, %302 : vector<8x128xf32>
    %304 = vector.extract_strided_slice %303 {offsets = [0, 0], sizes = [4, 128], strides = [1, 1]} : vector<8x128xf32> to vector<4x128xf32>
    %305 = vector.extract_strided_slice %304 {offsets = [0, 0], sizes = [4, 32], strides = [1, 1]} : vector<4x128xf32> to vector<4x32xf32>
    %306 = vector.extract_strided_slice %304 {offsets = [0, 32], sizes = [4, 32], strides = [1, 1]} : vector<4x128xf32> to vector<4x32xf32>
    %307 = vector.extract_strided_slice %304 {offsets = [0, 64], sizes = [4, 32], strides = [1, 1]} : vector<4x128xf32> to vector<4x32xf32>
    %cst_123 = arith.constant 2.000000e+00 : f32
    %308 = vector.broadcast %cst_123 : f32 to vector<4x32xf32>
    %309 = arith.mulf %308, %307 : vector<4x32xf32>
    %cst_124 = arith.constant 1.000000e+00 : f32
    %310 = vector.broadcast %cst_124 : f32 to vector<4x32xf32>
    %311 = arith.subf %309, %310 : vector<4x32xf32>
    %312 = vector.extract_strided_slice %304 {offsets = [0, 96], sizes = [4, 32], strides = [1, 1]} : vector<4x128xf32> to vector<4x32xf32>
    %313 = arith.mulf %306, %273 : vector<4x32xf32>
    %314 = arith.mulf %305, %311 : vector<4x32xf32>
    %315 = arith.addf %313, %314 : vector<4x32xf32>
    %316 = math.tanh %315 : vector<4x32xf32>
    %317 = arith.mulf %312, %316 : vector<4x32xf32>
    %318 = vector.extract_strided_slice %303 {offsets = [4, 0], sizes = [4, 128], strides = [1, 1]} : vector<8x128xf32> to vector<4x128xf32>
    %319 = vector.extract_strided_slice %318 {offsets = [0, 0], sizes = [4, 32], strides = [1, 1]} : vector<4x128xf32> to vector<4x32xf32>
    %320 = vector.extract_strided_slice %318 {offsets = [0, 32], sizes = [4, 32], strides = [1, 1]} : vector<4x128xf32> to vector<4x32xf32>
    %321 = vector.extract_strided_slice %318 {offsets = [0, 64], sizes = [4, 32], strides = [1, 1]} : vector<4x128xf32> to vector<4x32xf32>
    %cst_125 = arith.constant 2.000000e+00 : f32
    %322 = vector.broadcast %cst_125 : f32 to vector<4x32xf32>
    %323 = arith.mulf %322, %321 : vector<4x32xf32>
    %cst_126 = arith.constant 1.000000e+00 : f32
    %324 = vector.broadcast %cst_126 : f32 to vector<4x32xf32>
    %325 = arith.subf %323, %324 : vector<4x32xf32>
    %326 = vector.extract_strided_slice %318 {offsets = [0, 96], sizes = [4, 32], strides = [1, 1]} : vector<4x128xf32> to vector<4x32xf32>
    %327 = arith.mulf %320, %287 : vector<4x32xf32>
    %328 = arith.mulf %319, %325 : vector<4x32xf32>
    %329 = arith.addf %327, %328 : vector<4x32xf32>
    %330 = math.tanh %329 : vector<4x32xf32>
    %331 = arith.mulf %326, %330 : vector<4x32xf32>
    %332 = vector.extract_strided_slice %47 {offsets = [28, 0], sizes = [4, 32], strides = [1, 1]} : vector<32x32xf32> to vector<4x32xf32>
    %c0_127 = arith.constant 0 : index
    %c0_128 = arith.constant 0 : index
    %333 = vector.load %arg3[%c0_127, %c0_128] : memref<8x128xf32, #tpu.memory_space<vmem>>, vector<4x32xf32>
    tpu.vector_store %arg3[%c0_127, %c0_128], %332 {strides = array<i32>} : memref<8x128xf32, #tpu.memory_space<vmem>>, vector<4x32xf32>,
    %c0_129 = arith.constant 0 : index
    %c32_130 = arith.constant 32 : index
    %334 = vector.load %arg3[%c0_129, %c32_130] : memref<8x128xf32, #tpu.memory_space<vmem>>, vector<4x32xf32>
    tpu.vector_store %arg3[%c0_129, %c32_130], %317 {strides = array<i32>} : memref<8x128xf32, #tpu.memory_space<vmem>>, vector<4x32xf32>,
    %c4_131 = arith.constant 4 : index
    %c64_132 = arith.constant 64 : index
    %335 = vector.load %arg3[%c4_131, %c64_132] : memref<8x128xf32, #tpu.memory_space<vmem>>, vector<4x32xf32>
    tpu.vector_store %arg3[%c4_131, %c64_132], %317 {strides = array<i32>} : memref<8x128xf32, #tpu.memory_space<vmem>>, vector<4x32xf32>,
    %c4_133 = arith.constant 4 : index
    %c96_134 = arith.constant 96 : index
    %336 = vector.load %arg3[%c4_133, %c96_134] : memref<8x128xf32, #tpu.memory_space<vmem>>, vector<4x32xf32>
    tpu.vector_store %arg3[%c4_133, %c96_134], %331 {strides = array<i32>} : memref<8x128xf32, #tpu.memory_space<vmem>>, vector<4x32xf32>,
    %c0_135 = arith.constant 0 : index
    %c0_136 = arith.constant 0 : index
    %337 = vector.load %arg3[%c0_135, %c0_136] : memref<8x128xf32, #tpu.memory_space<vmem>>, vector<8x128xf32>
    %338 = arith.truncf %337 : vector<8x128xf32> to vector<8x128xbf16>
    %cst_137 = arith.constant dense<0.000000e+00> : vector<8x128xf32>
    %339 = tpu.matmul %338, %1, %cst_137 {dimension_numbers = #tpu.dot_dimension_numbers<[1], [0], [0], [1], [0, 0, 1, 1], [], []>} : vector<8x128xbf16>, vector<128x128xbf16>, vector<8x128xf32> -> vector<8x128xf32>
    %340 = arith.addf %339, %12 : vector<8x128xf32>
    %341 = arith.negf %340 : vector<8x128xf32>
    %342 = math.exp %341 : vector<8x128xf32>
    %cst_138 = arith.constant 1.000000e+00 : f32
    %343 = vector.broadcast %cst_138 : f32 to vector<8x128xf32>
    %344 = arith.addf %343, %342 : vector<8x128xf32>
    %345 = arith.divf %343, %344 : vector<8x128xf32>
    %346 = vector.extract_strided_slice %345 {offsets = [0, 0], sizes = [4, 128], strides = [1, 1]} : vector<8x128xf32> to vector<4x128xf32>
    %347 = vector.extract_strided_slice %346 {offsets = [0, 0], sizes = [4, 32], strides = [1, 1]} : vector<4x128xf32> to vector<4x32xf32>
    %348 = vector.extract_strided_slice %346 {offsets = [0, 32], sizes = [4, 32], strides = [1, 1]} : vector<4x128xf32> to vector<4x32xf32>
    %349 = vector.extract_strided_slice %346 {offsets = [0, 64], sizes = [4, 32], strides = [1, 1]} : vector<4x128xf32> to vector<4x32xf32>
    %cst_139 = arith.constant 2.000000e+00 : f32
    %350 = vector.broadcast %cst_139 : f32 to vector<4x32xf32>
    %351 = arith.mulf %350, %349 : vector<4x32xf32>
    %cst_140 = arith.constant 1.000000e+00 : f32
    %352 = vector.broadcast %cst_140 : f32 to vector<4x32xf32>
    %353 = arith.subf %351, %352 : vector<4x32xf32>
    %354 = vector.extract_strided_slice %346 {offsets = [0, 96], sizes = [4, 32], strides = [1, 1]} : vector<4x128xf32> to vector<4x32xf32>
    %355 = arith.mulf %348, %315 : vector<4x32xf32>
    %356 = arith.mulf %347, %353 : vector<4x32xf32>
    %357 = arith.addf %355, %356 : vector<4x32xf32>
    %358 = math.tanh %357 : vector<4x32xf32>
    %359 = arith.mulf %354, %358 : vector<4x32xf32>
    %360 = vector.extract_strided_slice %345 {offsets = [4, 0], sizes = [4, 128], strides = [1, 1]} : vector<8x128xf32> to vector<4x128xf32>
    %361 = vector.extract_strided_slice %360 {offsets = [0, 0], sizes = [4, 32], strides = [1, 1]} : vector<4x128xf32> to vector<4x32xf32>
    %362 = vector.extract_strided_slice %360 {offsets = [0, 32], sizes = [4, 32], strides = [1, 1]} : vector<4x128xf32> to vector<4x32xf32>
    %363 = vector.extract_strided_slice %360 {offsets = [0, 64], sizes = [4, 32], strides = [1, 1]} : vector<4x128xf32> to vector<4x32xf32>
    %cst_141 = arith.constant 2.000000e+00 : f32
    %364 = vector.broadcast %cst_141 : f32 to vector<4x32xf32>
    %365 = arith.mulf %364, %363 : vector<4x32xf32>
    %cst_142 = arith.constant 1.000000e+00 : f32
    %366 = vector.broadcast %cst_142 : f32 to vector<4x32xf32>
    %367 = arith.subf %365, %366 : vector<4x32xf32>
    %368 = vector.extract_strided_slice %360 {offsets = [0, 96], sizes = [4, 32], strides = [1, 1]} : vector<4x128xf32> to vector<4x32xf32>
    %369 = arith.mulf %362, %329 : vector<4x32xf32>
    %370 = arith.mulf %361, %367 : vector<4x32xf32>
    %371 = arith.addf %369, %370 : vector<4x32xf32>
    %372 = math.tanh %371 : vector<4x32xf32>
    %373 = arith.mulf %368, %372 : vector<4x32xf32>
    %cst_143 = arith.constant 0.000000e+00 : f32
    %374 = vector.broadcast %cst_143 : f32 to vector<4x32xf32>
    %375 = arith.maximumf %48, %374 : vector<4x32xf32>
    %c0_144 = arith.constant 0 : index
    %c0_145 = arith.constant 0 : index
    %376 = vector.load %arg3[%c0_144, %c0_145] : memref<8x128xf32, #tpu.memory_space<vmem>>, vector<4x32xf32>
    tpu.vector_store %arg3[%c0_144, %c0_145], %375 {strides = array<i32>} : memref<8x128xf32, #tpu.memory_space<vmem>>, vector<4x32xf32>,
    %c0_146 = arith.constant 0 : index
    %c32_147 = arith.constant 32 : index
    %377 = vector.load %arg3[%c0_146, %c32_147] : memref<8x128xf32, #tpu.memory_space<vmem>>, vector<4x32xf32>
    tpu.vector_store %arg3[%c0_146, %c32_147], %359 {strides = array<i32>} : memref<8x128xf32, #tpu.memory_space<vmem>>, vector<4x32xf32>,
    %c4_148 = arith.constant 4 : index
    %c64_149 = arith.constant 64 : index
    %378 = vector.load %arg3[%c4_148, %c64_149] : memref<8x128xf32, #tpu.memory_space<vmem>>, vector<4x32xf32>
    tpu.vector_store %arg3[%c4_148, %c64_149], %359 {strides = array<i32>} : memref<8x128xf32, #tpu.memory_space<vmem>>, vector<4x32xf32>,
    %c4_150 = arith.constant 4 : index
    %c96_151 = arith.constant 96 : index
    %379 = vector.load %arg3[%c4_150, %c96_151] : memref<8x128xf32, #tpu.memory_space<vmem>>, vector<4x32xf32>
    tpu.vector_store %arg3[%c4_150, %c96_151], %373 {strides = array<i32>} : memref<8x128xf32, #tpu.memory_space<vmem>>, vector<4x32xf32>,
    %c0_152 = arith.constant 0 : index
    %c0_153 = arith.constant 0 : index
    %380 = vector.load %arg3[%c0_152, %c0_153] : memref<8x128xf32, #tpu.memory_space<vmem>>, vector<8x128xf32>
    %381 = arith.truncf %380 : vector<8x128xf32> to vector<8x128xbf16>
    %cst_154 = arith.constant dense<0.000000e+00> : vector<8x128xf32>
    %382 = tpu.matmul %381, %1, %cst_154 {dimension_numbers = #tpu.dot_dimension_numbers<[1], [0], [0], [1], [0, 0, 1, 1], [], []>} : vector<8x128xbf16>, vector<128x128xbf16>, vector<8x128xf32> -> vector<8x128xf32>
    %383 = arith.addf %382, %12 : vector<8x128xf32>
    %384 = arith.negf %383 : vector<8x128xf32>
    %385 = math.exp %384 : vector<8x128xf32>
    %cst_155 = arith.constant 1.000000e+00 : f32
    %386 = vector.broadcast %cst_155 : f32 to vector<8x128xf32>
    %387 = arith.addf %386, %385 : vector<8x128xf32>
    %388 = arith.divf %386, %387 : vector<8x128xf32>
    %389 = vector.extract_strided_slice %388 {offsets = [0, 0], sizes = [4, 128], strides = [1, 1]} : vector<8x128xf32> to vector<4x128xf32>
    %390 = vector.extract_strided_slice %389 {offsets = [0, 0], sizes = [4, 32], strides = [1, 1]} : vector<4x128xf32> to vector<4x32xf32>
    %391 = vector.extract_strided_slice %389 {offsets = [0, 32], sizes = [4, 32], strides = [1, 1]} : vector<4x128xf32> to vector<4x32xf32>
    %392 = vector.extract_strided_slice %389 {offsets = [0, 64], sizes = [4, 32], strides = [1, 1]} : vector<4x128xf32> to vector<4x32xf32>
    %cst_156 = arith.constant 2.000000e+00 : f32
    %393 = vector.broadcast %cst_156 : f32 to vector<4x32xf32>
    %394 = arith.mulf %393, %392 : vector<4x32xf32>
    %cst_157 = arith.constant 1.000000e+00 : f32
    %395 = vector.broadcast %cst_157 : f32 to vector<4x32xf32>
    %396 = arith.subf %394, %395 : vector<4x32xf32>
    %397 = vector.extract_strided_slice %389 {offsets = [0, 96], sizes = [4, 32], strides = [1, 1]} : vector<4x128xf32> to vector<4x32xf32>
    %398 = arith.mulf %391, %357 : vector<4x32xf32>
    %399 = arith.mulf %390, %396 : vector<4x32xf32>
    %400 = arith.addf %398, %399 : vector<4x32xf32>
    %401 = math.tanh %400 : vector<4x32xf32>
    %402 = arith.mulf %397, %401 : vector<4x32xf32>
    %403 = vector.extract_strided_slice %388 {offsets = [4, 0], sizes = [4, 128], strides = [1, 1]} : vector<8x128xf32> to vector<4x128xf32>
    %404 = vector.extract_strided_slice %403 {offsets = [0, 0], sizes = [4, 32], strides = [1, 1]} : vector<4x128xf32> to vector<4x32xf32>
    %405 = vector.extract_strided_slice %403 {offsets = [0, 32], sizes = [4, 32], strides = [1, 1]} : vector<4x128xf32> to vector<4x32xf32>
    %406 = vector.extract_strided_slice %403 {offsets = [0, 64], sizes = [4, 32], strides = [1, 1]} : vector<4x128xf32> to vector<4x32xf32>
    %cst_158 = arith.constant 2.000000e+00 : f32
    %407 = vector.broadcast %cst_158 : f32 to vector<4x32xf32>
    %408 = arith.mulf %407, %406 : vector<4x32xf32>
    %cst_159 = arith.constant 1.000000e+00 : f32
    %409 = vector.broadcast %cst_159 : f32 to vector<4x32xf32>
    %410 = arith.subf %408, %409 : vector<4x32xf32>
    %411 = vector.extract_strided_slice %403 {offsets = [0, 96], sizes = [4, 32], strides = [1, 1]} : vector<4x128xf32> to vector<4x32xf32>
    %412 = arith.mulf %405, %371 : vector<4x32xf32>
    %413 = arith.mulf %404, %410 : vector<4x32xf32>
    %414 = arith.addf %412, %413 : vector<4x32xf32>
    %415 = math.tanh %414 : vector<4x32xf32>
    %416 = arith.mulf %411, %415 : vector<4x32xf32>
    %c4_160 = arith.constant 4 : index
    %c64_161 = arith.constant 64 : index
    %417 = vector.load %arg3[%c4_160, %c64_161] : memref<8x128xf32, #tpu.memory_space<vmem>>, vector<4x32xf32>
    tpu.vector_store %arg3[%c4_160, %c64_161], %402 {strides = array<i32>} : memref<8x128xf32, #tpu.memory_space<vmem>>, vector<4x32xf32>,
    %c4_162 = arith.constant 4 : index
    %c96_163 = arith.constant 96 : index
    %418 = vector.load %arg3[%c4_162, %c96_163] : memref<8x128xf32, #tpu.memory_space<vmem>>, vector<4x32xf32>
    tpu.vector_store %arg3[%c4_162, %c96_163], %416 {strides = array<i32>} : memref<8x128xf32, #tpu.memory_space<vmem>>, vector<4x32xf32>,
    %c4_164 = arith.constant 4 : index
    %c64_165 = arith.constant 64 : index
    %419 = vector.load %arg3[%c4_164, %c64_165] : memref<8x128xf32, #tpu.memory_space<vmem>>, vector<4x64xf32>
    %420 = arith.truncf %419 : vector<4x64xf32> to vector<4x64xbf16>
    %cst_166 = arith.constant dense<0.000000e+00> : vector<4x128xf32>
    %421 = tpu.matmul %420, %5, %cst_166 {dimension_numbers = #tpu.dot_dimension_numbers<[1], [0], [0], [1], [0, 0, 1, 1], [], []>} : vector<4x64xbf16>, vector<64x128xbf16>, vector<4x128xf32> -> vector<4x128xf32>
    %422 = arith.addf %421, %11 : vector<4x128xf32>
    %423 = arith.negf %422 : vector<4x128xf32>
    %424 = math.exp %423 : vector<4x128xf32>
    %cst_167 = arith.constant 1.000000e+00 : f32
    %425 = vector.broadcast %cst_167 : f32 to vector<4x128xf32>
    %426 = arith.addf %425, %424 : vector<4x128xf32>
    %427 = arith.divf %425, %426 : vector<4x128xf32>
    %428 = vector.extract_strided_slice %427 {offsets = [0, 0], sizes = [4, 32], strides = [1, 1]} : vector<4x128xf32> to vector<4x32xf32>
    %429 = vector.extract_strided_slice %427 {offsets = [0, 32], sizes = [4, 32], strides = [1, 1]} : vector<4x128xf32> to vector<4x32xf32>
    %430 = vector.extract_strided_slice %427 {offsets = [0, 64], sizes = [4, 32], strides = [1, 1]} : vector<4x128xf32> to vector<4x32xf32>
    %cst_168 = arith.constant 2.000000e+00 : f32
    %431 = vector.broadcast %cst_168 : f32 to vector<4x32xf32>
    %432 = arith.mulf %431, %430 : vector<4x32xf32>
    %cst_169 = arith.constant 1.000000e+00 : f32
    %433 = vector.broadcast %cst_169 : f32 to vector<4x32xf32>
    %434 = arith.subf %432, %433 : vector<4x32xf32>
    %435 = vector.extract_strided_slice %427 {offsets = [0, 96], sizes = [4, 32], strides = [1, 1]} : vector<4x128xf32> to vector<4x32xf32>
    %436 = arith.mulf %429, %414 : vector<4x32xf32>
    %437 = arith.mulf %428, %434 : vector<4x32xf32>
    %438 = arith.addf %436, %437 : vector<4x32xf32>
    %439 = math.tanh %438 : vector<4x32xf32>
    %440 = arith.mulf %435, %439 : vector<4x32xf32>
    %441 = arith.truncf %440 : vector<4x32xf32> to vector<4x32xbf16>
    %cst_170 = arith.constant dense<0.000000e+00> : vector<4x32xf32>
    %442 = tpu.matmul %441, %14, %cst_170 {dimension_numbers = #tpu.dot_dimension_numbers<[1], [0], [0], [1], [0, 0, 1, 1], [], []>} : vector<4x32xbf16>, vector<32x32xbf16>, vector<4x32xf32> -> vector<4x32xf32>
    %443 = arith.addf %442, %17 : vector<4x32xf32>
    %cst_171 = arith.constant 0.000000e+00 : f32
    %444 = vector.broadcast %cst_171 : f32 to vector<4x32xf32>
    %445 = arith.maximumf %443, %444 : vector<4x32xf32>
    %446 = arith.truncf %445 : vector<4x32xf32> to vector<4x32xbf16>
    %cst_172 = arith.constant dense<0.000000e+00> : vector<4x16xf32>
    %447 = tpu.matmul %446, %19, %cst_172 {dimension_numbers = #tpu.dot_dimension_numbers<[1], [0], [0], [1], [0, 0, 1, 1], [], []>} : vector<4x32xbf16>, vector<32x16xbf16>, vector<4x16xf32> -> vector<4x16xf32>
    %448 = arith.addf %447, %22 : vector<4x16xf32>
    %cst_173 = arith.constant 0.000000e+00 : f32
    %449 = vector.broadcast %cst_173 : f32 to vector<4x16xf32>
    %450 = arith.maximumf %448, %449 : vector<4x16xf32>
    %c0_174 = arith.constant 0 : index
    %c0_175 = arith.constant 0 : index
    %451 = vector.load %arg4[%c0_174, %c0_175] : memref<32x16xf32, #tpu.memory_space<vmem>>, vector<4x16xf32>
    tpu.vector_store %arg4[%c0_174, %c0_175], %450 {strides = array<i32>} : memref<32x16xf32, #tpu.memory_space<vmem>>, vector<4x16xf32>,
    %452 = arith.truncf %450 : vector<4x16xf32> to vector<4x16xbf16>
    %cst_176 = arith.constant dense<0.000000e+00> : vector<4x32xf32>
    %453 = tpu.matmul %452, %24, %cst_176 {dimension_numbers = #tpu.dot_dimension_numbers<[1], [0], [0], [1], [0, 0, 1, 1], [], []>} : vector<4x16xbf16>, vector<16x32xbf16>, vector<4x32xf32> -> vector<4x32xf32>
    %454 = arith.addf %48, %453 : vector<4x32xf32>
    %455 = arith.addf %454, %27 : vector<4x32xf32>
    %cst_177 = arith.constant 0.000000e+00 : f32
    %456 = vector.broadcast %cst_177 : f32 to vector<4x32xf32>
    %457 = arith.maximumf %455, %456 : vector<4x32xf32>
    %c0_178 = arith.constant 0 : index
    %c0_179 = arith.constant 0 : index
    %458 = vector.load %arg3[%c0_178, %c0_179] : memref<8x128xf32, #tpu.memory_space<vmem>>, vector<4x32xf32>
    tpu.vector_store %arg3[%c0_178, %c0_179], %457 {strides = array<i32>} : memref<8x128xf32, #tpu.memory_space<vmem>>, vector<4x32xf32>,
    %c0_180 = arith.constant 0 : index
    %c32_181 = arith.constant 32 : index
    %459 = vector.load %arg3[%c0_180, %c32_181] : memref<8x128xf32, #tpu.memory_space<vmem>>, vector<4x32xf32>
    tpu.vector_store %arg3[%c0_180, %c32_181], %402 {strides = array<i32>} : memref<8x128xf32, #tpu.memory_space<vmem>>, vector<4x32xf32>,
    %c0_182 = arith.constant 0 : index
    %c0_183 = arith.constant 0 : index
    %460 = vector.load %arg3[%c0_182, %c0_183] : memref<8x128xf32, #tpu.memory_space<vmem>>, vector<4x64xf32>
    %461 = arith.truncf %460 : vector<4x64xf32> to vector<4x64xbf16>
    %cst_184 = arith.constant dense<0.000000e+00> : vector<4x128xf32>
    %462 = tpu.matmul %461, %3, %cst_184 {dimension_numbers = #tpu.dot_dimension_numbers<[1], [0], [0], [1], [0, 0, 1, 1], [], []>} : vector<4x64xbf16>, vector<64x128xbf16>, vector<4x128xf32> -> vector<4x128xf32>
    %463 = arith.addf %462, %8 : vector<4x128xf32>
    %464 = arith.negf %463 : vector<4x128xf32>
    %465 = math.exp %464 : vector<4x128xf32>
    %cst_185 = arith.constant 1.000000e+00 : f32
    %466 = vector.broadcast %cst_185 : f32 to vector<4x128xf32>
    %467 = arith.addf %466, %465 : vector<4x128xf32>
    %468 = arith.divf %466, %467 : vector<4x128xf32>
    %469 = vector.extract_strided_slice %468 {offsets = [0, 0], sizes = [4, 32], strides = [1, 1]} : vector<4x128xf32> to vector<4x32xf32>
    %470 = vector.extract_strided_slice %468 {offsets = [0, 32], sizes = [4, 32], strides = [1, 1]} : vector<4x128xf32> to vector<4x32xf32>
    %471 = vector.extract_strided_slice %468 {offsets = [0, 64], sizes = [4, 32], strides = [1, 1]} : vector<4x128xf32> to vector<4x32xf32>
    %cst_186 = arith.constant 2.000000e+00 : f32
    %472 = vector.broadcast %cst_186 : f32 to vector<4x32xf32>
    %473 = arith.mulf %472, %471 : vector<4x32xf32>
    %cst_187 = arith.constant 1.000000e+00 : f32
    %474 = vector.broadcast %cst_187 : f32 to vector<4x32xf32>
    %475 = arith.subf %473, %474 : vector<4x32xf32>
    %476 = vector.extract_strided_slice %468 {offsets = [0, 96], sizes = [4, 32], strides = [1, 1]} : vector<4x128xf32> to vector<4x32xf32>
    %477 = arith.mulf %470, %400 : vector<4x32xf32>
    %478 = arith.mulf %469, %475 : vector<4x32xf32>
    %479 = arith.addf %477, %478 : vector<4x32xf32>
    %480 = math.tanh %479 : vector<4x32xf32>
    %481 = arith.mulf %476, %480 : vector<4x32xf32>
    %c4_188 = arith.constant 4 : index
    %c64_189 = arith.constant 64 : index
    %482 = vector.load %arg3[%c4_188, %c64_189] : memref<8x128xf32, #tpu.memory_space<vmem>>, vector<4x32xf32>
    tpu.vector_store %arg3[%c4_188, %c64_189], %481 {strides = array<i32>} : memref<8x128xf32, #tpu.memory_space<vmem>>, vector<4x32xf32>,
    %c4_190 = arith.constant 4 : index
    %c96_191 = arith.constant 96 : index
    %483 = vector.load %arg3[%c4_190, %c96_191] : memref<8x128xf32, #tpu.memory_space<vmem>>, vector<4x32xf32>
    tpu.vector_store %arg3[%c4_190, %c96_191], %440 {strides = array<i32>} : memref<8x128xf32, #tpu.memory_space<vmem>>, vector<4x32xf32>,
    %c4_192 = arith.constant 4 : index
    %c64_193 = arith.constant 64 : index
    %484 = vector.load %arg3[%c4_192, %c64_193] : memref<8x128xf32, #tpu.memory_space<vmem>>, vector<4x64xf32>
    %485 = arith.truncf %484 : vector<4x64xf32> to vector<4x64xbf16>
    %cst_194 = arith.constant dense<0.000000e+00> : vector<4x128xf32>
    %486 = tpu.matmul %485, %5, %cst_194 {dimension_numbers = #tpu.dot_dimension_numbers<[1], [0], [0], [1], [0, 0, 1, 1], [], []>} : vector<4x64xbf16>, vector<64x128xbf16>, vector<4x128xf32> -> vector<4x128xf32>
    %487 = arith.addf %486, %11 : vector<4x128xf32>
    %488 = arith.negf %487 : vector<4x128xf32>
    %489 = math.exp %488 : vector<4x128xf32>
    %cst_195 = arith.constant 1.000000e+00 : f32
    %490 = vector.broadcast %cst_195 : f32 to vector<4x128xf32>
    %491 = arith.addf %490, %489 : vector<4x128xf32>
    %492 = arith.divf %490, %491 : vector<4x128xf32>
    %493 = vector.extract_strided_slice %492 {offsets = [0, 0], sizes = [4, 32], strides = [1, 1]} : vector<4x128xf32> to vector<4x32xf32>
    %494 = vector.extract_strided_slice %492 {offsets = [0, 32], sizes = [4, 32], strides = [1, 1]} : vector<4x128xf32> to vector<4x32xf32>
    %495 = vector.extract_strided_slice %492 {offsets = [0, 64], sizes = [4, 32], strides = [1, 1]} : vector<4x128xf32> to vector<4x32xf32>
    %cst_196 = arith.constant 2.000000e+00 : f32
    %496 = vector.broadcast %cst_196 : f32 to vector<4x32xf32>
    %497 = arith.mulf %496, %495 : vector<4x32xf32>
    %cst_197 = arith.constant 1.000000e+00 : f32
    %498 = vector.broadcast %cst_197 : f32 to vector<4x32xf32>
    %499 = arith.subf %497, %498 : vector<4x32xf32>
    %500 = vector.extract_strided_slice %492 {offsets = [0, 96], sizes = [4, 32], strides = [1, 1]} : vector<4x128xf32> to vector<4x32xf32>
    %501 = arith.mulf %494, %438 : vector<4x32xf32>
    %502 = arith.mulf %493, %499 : vector<4x32xf32>
    %503 = arith.addf %501, %502 : vector<4x32xf32>
    %504 = math.tanh %503 : vector<4x32xf32>
    %505 = arith.mulf %500, %504 : vector<4x32xf32>
    %506 = arith.truncf %505 : vector<4x32xf32> to vector<4x32xbf16>
    %cst_198 = arith.constant dense<0.000000e+00> : vector<4x32xf32>
    %507 = tpu.matmul %506, %14, %cst_198 {dimension_numbers = #tpu.dot_dimension_numbers<[1], [0], [0], [1], [0, 0, 1, 1], [], []>} : vector<4x32xbf16>, vector<32x32xbf16>, vector<4x32xf32> -> vector<4x32xf32>
    %508 = arith.addf %507, %17 : vector<4x32xf32>
    %cst_199 = arith.constant 0.000000e+00 : f32
    %509 = vector.broadcast %cst_199 : f32 to vector<4x32xf32>
    %510 = arith.maximumf %508, %509 : vector<4x32xf32>
    %511 = arith.truncf %510 : vector<4x32xf32> to vector<4x32xbf16>
    %cst_200 = arith.constant dense<0.000000e+00> : vector<4x16xf32>
    %512 = tpu.matmul %511, %19, %cst_200 {dimension_numbers = #tpu.dot_dimension_numbers<[1], [0], [0], [1], [0, 0, 1, 1], [], []>} : vector<4x32xbf16>, vector<32x16xbf16>, vector<4x16xf32> -> vector<4x16xf32>
    %513 = arith.addf %512, %22 : vector<4x16xf32>
    %cst_201 = arith.constant 0.000000e+00 : f32
    %514 = vector.broadcast %cst_201 : f32 to vector<4x16xf32>
    %515 = arith.maximumf %513, %514 : vector<4x16xf32>
    %c4_202 = arith.constant 4 : index
    %c0_203 = arith.constant 0 : index
    %516 = vector.load %arg4[%c4_202, %c0_203] : memref<32x16xf32, #tpu.memory_space<vmem>>, vector<4x16xf32>
    tpu.vector_store %arg4[%c4_202, %c0_203], %515 {strides = array<i32>} : memref<32x16xf32, #tpu.memory_space<vmem>>, vector<4x16xf32>,
    %517 = arith.truncf %515 : vector<4x16xf32> to vector<4x16xbf16>
    %cst_204 = arith.constant dense<0.000000e+00> : vector<4x32xf32>
    %518 = tpu.matmul %517, %24, %cst_204 {dimension_numbers = #tpu.dot_dimension_numbers<[1], [0], [0], [1], [0, 0, 1, 1], [], []>} : vector<4x16xbf16>, vector<16x32xbf16>, vector<4x32xf32> -> vector<4x32xf32>
    %519 = arith.addf %455, %518 : vector<4x32xf32>
    %520 = arith.addf %519, %27 : vector<4x32xf32>
    %cst_205 = arith.constant 0.000000e+00 : f32
    %521 = vector.broadcast %cst_205 : f32 to vector<4x32xf32>
    %522 = arith.maximumf %520, %521 : vector<4x32xf32>
    %c0_206 = arith.constant 0 : index
    %c0_207 = arith.constant 0 : index
    %523 = vector.load %arg3[%c0_206, %c0_207] : memref<8x128xf32, #tpu.memory_space<vmem>>, vector<4x32xf32>
    tpu.vector_store %arg3[%c0_206, %c0_207], %522 {strides = array<i32>} : memref<8x128xf32, #tpu.memory_space<vmem>>, vector<4x32xf32>,
    %c0_208 = arith.constant 0 : index
    %c32_209 = arith.constant 32 : index
    %524 = vector.load %arg3[%c0_208, %c32_209] : memref<8x128xf32, #tpu.memory_space<vmem>>, vector<4x32xf32>
    tpu.vector_store %arg3[%c0_208, %c32_209], %481 {strides = array<i32>} : memref<8x128xf32, #tpu.memory_space<vmem>>, vector<4x32xf32>,
    %c0_210 = arith.constant 0 : index
    %c0_211 = arith.constant 0 : index
    %525 = vector.load %arg3[%c0_210, %c0_211] : memref<8x128xf32, #tpu.memory_space<vmem>>, vector<4x64xf32>
    %526 = arith.truncf %525 : vector<4x64xf32> to vector<4x64xbf16>
    %cst_212 = arith.constant dense<0.000000e+00> : vector<4x128xf32>
    %527 = tpu.matmul %526, %3, %cst_212 {dimension_numbers = #tpu.dot_dimension_numbers<[1], [0], [0], [1], [0, 0, 1, 1], [], []>} : vector<4x64xbf16>, vector<64x128xbf16>, vector<4x128xf32> -> vector<4x128xf32>
    %528 = arith.addf %527, %8 : vector<4x128xf32>
    %529 = arith.negf %528 : vector<4x128xf32>
    %530 = math.exp %529 : vector<4x128xf32>
    %cst_213 = arith.constant 1.000000e+00 : f32
    %531 = vector.broadcast %cst_213 : f32 to vector<4x128xf32>
    %532 = arith.addf %531, %530 : vector<4x128xf32>
    %533 = arith.divf %531, %532 : vector<4x128xf32>
    %534 = vector.extract_strided_slice %533 {offsets = [0, 0], sizes = [4, 32], strides = [1, 1]} : vector<4x128xf32> to vector<4x32xf32>
    %535 = vector.extract_strided_slice %533 {offsets = [0, 32], sizes = [4, 32], strides = [1, 1]} : vector<4x128xf32> to vector<4x32xf32>
    %536 = vector.extract_strided_slice %533 {offsets = [0, 64], sizes = [4, 32], strides = [1, 1]} : vector<4x128xf32> to vector<4x32xf32>
    %cst_214 = arith.constant 2.000000e+00 : f32
    %537 = vector.broadcast %cst_214 : f32 to vector<4x32xf32>
    %538 = arith.mulf %537, %536 : vector<4x32xf32>
    %cst_215 = arith.constant 1.000000e+00 : f32
    %539 = vector.broadcast %cst_215 : f32 to vector<4x32xf32>
    %540 = arith.subf %538, %539 : vector<4x32xf32>
    %541 = vector.extract_strided_slice %533 {offsets = [0, 96], sizes = [4, 32], strides = [1, 1]} : vector<4x128xf32> to vector<4x32xf32>
    %542 = arith.mulf %535, %479 : vector<4x32xf32>
    %543 = arith.mulf %534, %540 : vector<4x32xf32>
    %544 = arith.addf %542, %543 : vector<4x32xf32>
    %545 = math.tanh %544 : vector<4x32xf32>
    %546 = arith.mulf %541, %545 : vector<4x32xf32>
    %c4_216 = arith.constant 4 : index
    %c64_217 = arith.constant 64 : index
    %547 = vector.load %arg3[%c4_216, %c64_217] : memref<8x128xf32, #tpu.memory_space<vmem>>, vector<4x32xf32>
    tpu.vector_store %arg3[%c4_216, %c64_217], %546 {strides = array<i32>} : memref<8x128xf32, #tpu.memory_space<vmem>>, vector<4x32xf32>,
    %c4_218 = arith.constant 4 : index
    %c96_219 = arith.constant 96 : index
    %548 = vector.load %arg3[%c4_218, %c96_219] : memref<8x128xf32, #tpu.memory_space<vmem>>, vector<4x32xf32>
    tpu.vector_store %arg3[%c4_218, %c96_219], %505 {strides = array<i32>} : memref<8x128xf32, #tpu.memory_space<vmem>>, vector<4x32xf32>,
    %c4_220 = arith.constant 4 : index
    %c64_221 = arith.constant 64 : index
    %549 = vector.load %arg3[%c4_220, %c64_221] : memref<8x128xf32, #tpu.memory_space<vmem>>, vector<4x64xf32>
    %550 = arith.truncf %549 : vector<4x64xf32> to vector<4x64xbf16>
    %cst_222 = arith.constant dense<0.000000e+00> : vector<4x128xf32>
    %551 = tpu.matmul %550, %5, %cst_222 {dimension_numbers = #tpu.dot_dimension_numbers<[1], [0], [0], [1], [0, 0, 1, 1], [], []>} : vector<4x64xbf16>, vector<64x128xbf16>, vector<4x128xf32> -> vector<4x128xf32>
    %552 = arith.addf %551, %11 : vector<4x128xf32>
    %553 = arith.negf %552 : vector<4x128xf32>
    %554 = math.exp %553 : vector<4x128xf32>
    %cst_223 = arith.constant 1.000000e+00 : f32
    %555 = vector.broadcast %cst_223 : f32 to vector<4x128xf32>
    %556 = arith.addf %555, %554 : vector<4x128xf32>
    %557 = arith.divf %555, %556 : vector<4x128xf32>
    %558 = vector.extract_strided_slice %557 {offsets = [0, 0], sizes = [4, 32], strides = [1, 1]} : vector<4x128xf32> to vector<4x32xf32>
    %559 = vector.extract_strided_slice %557 {offsets = [0, 32], sizes = [4, 32], strides = [1, 1]} : vector<4x128xf32> to vector<4x32xf32>
    %560 = vector.extract_strided_slice %557 {offsets = [0, 64], sizes = [4, 32], strides = [1, 1]} : vector<4x128xf32> to vector<4x32xf32>
    %cst_224 = arith.constant 2.000000e+00 : f32
    %561 = vector.broadcast %cst_224 : f32 to vector<4x32xf32>
    %562 = arith.mulf %561, %560 : vector<4x32xf32>
    %cst_225 = arith.constant 1.000000e+00 : f32
    %563 = vector.broadcast %cst_225 : f32 to vector<4x32xf32>
    %564 = arith.subf %562, %563 : vector<4x32xf32>
    %565 = vector.extract_strided_slice %557 {offsets = [0, 96], sizes = [4, 32], strides = [1, 1]} : vector<4x128xf32> to vector<4x32xf32>
    %566 = arith.mulf %559, %503 : vector<4x32xf32>
    %567 = arith.mulf %558, %564 : vector<4x32xf32>
    %568 = arith.addf %566, %567 : vector<4x32xf32>
    %569 = math.tanh %568 : vector<4x32xf32>
    %570 = arith.mulf %565, %569 : vector<4x32xf32>
    %571 = arith.truncf %570 : vector<4x32xf32> to vector<4x32xbf16>
    %cst_226 = arith.constant dense<0.000000e+00> : vector<4x32xf32>
    %572 = tpu.matmul %571, %14, %cst_226 {dimension_numbers = #tpu.dot_dimension_numbers<[1], [0], [0], [1], [0, 0, 1, 1], [], []>} : vector<4x32xbf16>, vector<32x32xbf16>, vector<4x32xf32> -> vector<4x32xf32>
    %573 = arith.addf %572, %17 : vector<4x32xf32>
    %cst_227 = arith.constant 0.000000e+00 : f32
    %574 = vector.broadcast %cst_227 : f32 to vector<4x32xf32>
    %575 = arith.maximumf %573, %574 : vector<4x32xf32>
    %576 = arith.truncf %575 : vector<4x32xf32> to vector<4x32xbf16>
    %cst_228 = arith.constant dense<0.000000e+00> : vector<4x16xf32>
    %577 = tpu.matmul %576, %19, %cst_228 {dimension_numbers = #tpu.dot_dimension_numbers<[1], [0], [0], [1], [0, 0, 1, 1], [], []>} : vector<4x32xbf16>, vector<32x16xbf16>, vector<4x16xf32> -> vector<4x16xf32>
    %578 = arith.addf %577, %22 : vector<4x16xf32>
    %cst_229 = arith.constant 0.000000e+00 : f32
    %579 = vector.broadcast %cst_229 : f32 to vector<4x16xf32>
    %580 = arith.maximumf %578, %579 : vector<4x16xf32>
    %c8_230 = arith.constant 8 : index
    %c0_231 = arith.constant 0 : index
    %581 = vector.load %arg4[%c8_230, %c0_231] : memref<32x16xf32, #tpu.memory_space<vmem>>, vector<4x16xf32>
    tpu.vector_store %arg4[%c8_230, %c0_231], %580 {strides = array<i32>} : memref<32x16xf32, #tpu.memory_space<vmem>>, vector<4x16xf32>,
    %582 = arith.truncf %580 : vector<4x16xf32> to vector<4x16xbf16>
    %cst_232 = arith.constant dense<0.000000e+00> : vector<4x32xf32>
    %583 = tpu.matmul %582, %24, %cst_232 {dimension_numbers = #tpu.dot_dimension_numbers<[1], [0], [0], [1], [0, 0, 1, 1], [], []>} : vector<4x16xbf16>, vector<16x32xbf16>, vector<4x32xf32> -> vector<4x32xf32>
    %584 = arith.addf %520, %583 : vector<4x32xf32>
    %585 = arith.addf %584, %27 : vector<4x32xf32>
    %cst_233 = arith.constant 0.000000e+00 : f32
    %586 = vector.broadcast %cst_233 : f32 to vector<4x32xf32>
    %587 = arith.maximumf %585, %586 : vector<4x32xf32>
    %c0_234 = arith.constant 0 : index
    %c0_235 = arith.constant 0 : index
    %588 = vector.load %arg3[%c0_234, %c0_235] : memref<8x128xf32, #tpu.memory_space<vmem>>, vector<4x32xf32>
    tpu.vector_store %arg3[%c0_234, %c0_235], %587 {strides = array<i32>} : memref<8x128xf32, #tpu.memory_space<vmem>>, vector<4x32xf32>,
    %c0_236 = arith.constant 0 : index
    %c32_237 = arith.constant 32 : index
    %589 = vector.load %arg3[%c0_236, %c32_237] : memref<8x128xf32, #tpu.memory_space<vmem>>, vector<4x32xf32>
    tpu.vector_store %arg3[%c0_236, %c32_237], %546 {strides = array<i32>} : memref<8x128xf32, #tpu.memory_space<vmem>>, vector<4x32xf32>,
    %c0_238 = arith.constant 0 : index
    %c0_239 = arith.constant 0 : index
    %590 = vector.load %arg3[%c0_238, %c0_239] : memref<8x128xf32, #tpu.memory_space<vmem>>, vector<4x64xf32>
    %591 = arith.truncf %590 : vector<4x64xf32> to vector<4x64xbf16>
    %cst_240 = arith.constant dense<0.000000e+00> : vector<4x128xf32>
    %592 = tpu.matmul %591, %3, %cst_240 {dimension_numbers = #tpu.dot_dimension_numbers<[1], [0], [0], [1], [0, 0, 1, 1], [], []>} : vector<4x64xbf16>, vector<64x128xbf16>, vector<4x128xf32> -> vector<4x128xf32>
    %593 = arith.addf %592, %8 : vector<4x128xf32>
    %594 = arith.negf %593 : vector<4x128xf32>
    %595 = math.exp %594 : vector<4x128xf32>
    %cst_241 = arith.constant 1.000000e+00 : f32
    %596 = vector.broadcast %cst_241 : f32 to vector<4x128xf32>
    %597 = arith.addf %596, %595 : vector<4x128xf32>
    %598 = arith.divf %596, %597 : vector<4x128xf32>
    %599 = vector.extract_strided_slice %598 {offsets = [0, 0], sizes = [4, 32], strides = [1, 1]} : vector<4x128xf32> to vector<4x32xf32>
    %600 = vector.extract_strided_slice %598 {offsets = [0, 32], sizes = [4, 32], strides = [1, 1]} : vector<4x128xf32> to vector<4x32xf32>
    %601 = vector.extract_strided_slice %598 {offsets = [0, 64], sizes = [4, 32], strides = [1, 1]} : vector<4x128xf32> to vector<4x32xf32>
    %cst_242 = arith.constant 2.000000e+00 : f32
    %602 = vector.broadcast %cst_242 : f32 to vector<4x32xf32>
    %603 = arith.mulf %602, %601 : vector<4x32xf32>
    %cst_243 = arith.constant 1.000000e+00 : f32
    %604 = vector.broadcast %cst_243 : f32 to vector<4x32xf32>
    %605 = arith.subf %603, %604 : vector<4x32xf32>
    %606 = vector.extract_strided_slice %598 {offsets = [0, 96], sizes = [4, 32], strides = [1, 1]} : vector<4x128xf32> to vector<4x32xf32>
    %607 = arith.mulf %600, %544 : vector<4x32xf32>
    %608 = arith.mulf %599, %605 : vector<4x32xf32>
    %609 = arith.addf %607, %608 : vector<4x32xf32>
    %610 = math.tanh %609 : vector<4x32xf32>
    %611 = arith.mulf %606, %610 : vector<4x32xf32>
    %c4_244 = arith.constant 4 : index
    %c64_245 = arith.constant 64 : index
    %612 = vector.load %arg3[%c4_244, %c64_245] : memref<8x128xf32, #tpu.memory_space<vmem>>, vector<4x32xf32>
    tpu.vector_store %arg3[%c4_244, %c64_245], %611 {strides = array<i32>} : memref<8x128xf32, #tpu.memory_space<vmem>>, vector<4x32xf32>,
    %c4_246 = arith.constant 4 : index
    %c96_247 = arith.constant 96 : index
    %613 = vector.load %arg3[%c4_246, %c96_247] : memref<8x128xf32, #tpu.memory_space<vmem>>, vector<4x32xf32>
    tpu.vector_store %arg3[%c4_246, %c96_247], %570 {strides = array<i32>} : memref<8x128xf32, #tpu.memory_space<vmem>>, vector<4x32xf32>,
    %c4_248 = arith.constant 4 : index
    %c64_249 = arith.constant 64 : index
    %614 = vector.load %arg3[%c4_248, %c64_249] : memref<8x128xf32, #tpu.memory_space<vmem>>, vector<4x64xf32>
    %615 = arith.truncf %614 : vector<4x64xf32> to vector<4x64xbf16>
    %cst_250 = arith.constant dense<0.000000e+00> : vector<4x128xf32>
    %616 = tpu.matmul %615, %5, %cst_250 {dimension_numbers = #tpu.dot_dimension_numbers<[1], [0], [0], [1], [0, 0, 1, 1], [], []>} : vector<4x64xbf16>, vector<64x128xbf16>, vector<4x128xf32> -> vector<4x128xf32>
    %617 = arith.addf %616, %11 : vector<4x128xf32>
    %618 = arith.negf %617 : vector<4x128xf32>
    %619 = math.exp %618 : vector<4x128xf32>
    %cst_251 = arith.constant 1.000000e+00 : f32
    %620 = vector.broadcast %cst_251 : f32 to vector<4x128xf32>
    %621 = arith.addf %620, %619 : vector<4x128xf32>
    %622 = arith.divf %620, %621 : vector<4x128xf32>
    %623 = vector.extract_strided_slice %622 {offsets = [0, 0], sizes = [4, 32], strides = [1, 1]} : vector<4x128xf32> to vector<4x32xf32>
    %624 = vector.extract_strided_slice %622 {offsets = [0, 32], sizes = [4, 32], strides = [1, 1]} : vector<4x128xf32> to vector<4x32xf32>
    %625 = vector.extract_strided_slice %622 {offsets = [0, 64], sizes = [4, 32], strides = [1, 1]} : vector<4x128xf32> to vector<4x32xf32>
    %cst_252 = arith.constant 2.000000e+00 : f32
    %626 = vector.broadcast %cst_252 : f32 to vector<4x32xf32>
    %627 = arith.mulf %626, %625 : vector<4x32xf32>
    %cst_253 = arith.constant 1.000000e+00 : f32
    %628 = vector.broadcast %cst_253 : f32 to vector<4x32xf32>
    %629 = arith.subf %627, %628 : vector<4x32xf32>
    %630 = vector.extract_strided_slice %622 {offsets = [0, 96], sizes = [4, 32], strides = [1, 1]} : vector<4x128xf32> to vector<4x32xf32>
    %631 = arith.mulf %624, %568 : vector<4x32xf32>
    %632 = arith.mulf %623, %629 : vector<4x32xf32>
    %633 = arith.addf %631, %632 : vector<4x32xf32>
    %634 = math.tanh %633 : vector<4x32xf32>
    %635 = arith.mulf %630, %634 : vector<4x32xf32>
    %636 = arith.truncf %635 : vector<4x32xf32> to vector<4x32xbf16>
    %cst_254 = arith.constant dense<0.000000e+00> : vector<4x32xf32>
    %637 = tpu.matmul %636, %14, %cst_254 {dimension_numbers = #tpu.dot_dimension_numbers<[1], [0], [0], [1], [0, 0, 1, 1], [], []>} : vector<4x32xbf16>, vector<32x32xbf16>, vector<4x32xf32> -> vector<4x32xf32>
    %638 = arith.addf %637, %17 : vector<4x32xf32>
    %cst_255 = arith.constant 0.000000e+00 : f32
    %639 = vector.broadcast %cst_255 : f32 to vector<4x32xf32>
    %640 = arith.maximumf %638, %639 : vector<4x32xf32>
    %641 = arith.truncf %640 : vector<4x32xf32> to vector<4x32xbf16>
    %cst_256 = arith.constant dense<0.000000e+00> : vector<4x16xf32>
    %642 = tpu.matmul %641, %19, %cst_256 {dimension_numbers = #tpu.dot_dimension_numbers<[1], [0], [0], [1], [0, 0, 1, 1], [], []>} : vector<4x32xbf16>, vector<32x16xbf16>, vector<4x16xf32> -> vector<4x16xf32>
    %643 = arith.addf %642, %22 : vector<4x16xf32>
    %cst_257 = arith.constant 0.000000e+00 : f32
    %644 = vector.broadcast %cst_257 : f32 to vector<4x16xf32>
    %645 = arith.maximumf %643, %644 : vector<4x16xf32>
    %c12 = arith.constant 12 : index
    %c0_258 = arith.constant 0 : index
    %646 = vector.load %arg4[%c12, %c0_258] : memref<32x16xf32, #tpu.memory_space<vmem>>, vector<4x16xf32>
    tpu.vector_store %arg4[%c12, %c0_258], %645 {strides = array<i32>} : memref<32x16xf32, #tpu.memory_space<vmem>>, vector<4x16xf32>,
    %647 = arith.truncf %645 : vector<4x16xf32> to vector<4x16xbf16>
    %cst_259 = arith.constant dense<0.000000e+00> : vector<4x32xf32>
    %648 = tpu.matmul %647, %24, %cst_259 {dimension_numbers = #tpu.dot_dimension_numbers<[1], [0], [0], [1], [0, 0, 1, 1], [], []>} : vector<4x16xbf16>, vector<16x32xbf16>, vector<4x32xf32> -> vector<4x32xf32>
    %649 = arith.addf %585, %648 : vector<4x32xf32>
    %650 = arith.addf %649, %27 : vector<4x32xf32>
    %cst_260 = arith.constant 0.000000e+00 : f32
    %651 = vector.broadcast %cst_260 : f32 to vector<4x32xf32>
    %652 = arith.maximumf %650, %651 : vector<4x32xf32>
    %c0_261 = arith.constant 0 : index
    %c0_262 = arith.constant 0 : index
    %653 = vector.load %arg3[%c0_261, %c0_262] : memref<8x128xf32, #tpu.memory_space<vmem>>, vector<4x32xf32>
    tpu.vector_store %arg3[%c0_261, %c0_262], %652 {strides = array<i32>} : memref<8x128xf32, #tpu.memory_space<vmem>>, vector<4x32xf32>,
    %c0_263 = arith.constant 0 : index
    %c32_264 = arith.constant 32 : index
    %654 = vector.load %arg3[%c0_263, %c32_264] : memref<8x128xf32, #tpu.memory_space<vmem>>, vector<4x32xf32>
    tpu.vector_store %arg3[%c0_263, %c32_264], %611 {strides = array<i32>} : memref<8x128xf32, #tpu.memory_space<vmem>>, vector<4x32xf32>,
    %c0_265 = arith.constant 0 : index
    %c0_266 = arith.constant 0 : index
    %655 = vector.load %arg3[%c0_265, %c0_266] : memref<8x128xf32, #tpu.memory_space<vmem>>, vector<4x64xf32>
    %656 = arith.truncf %655 : vector<4x64xf32> to vector<4x64xbf16>
    %cst_267 = arith.constant dense<0.000000e+00> : vector<4x128xf32>
    %657 = tpu.matmul %656, %3, %cst_267 {dimension_numbers = #tpu.dot_dimension_numbers<[1], [0], [0], [1], [0, 0, 1, 1], [], []>} : vector<4x64xbf16>, vector<64x128xbf16>, vector<4x128xf32> -> vector<4x128xf32>
    %658 = arith.addf %657, %8 : vector<4x128xf32>
    %659 = arith.negf %658 : vector<4x128xf32>
    %660 = math.exp %659 : vector<4x128xf32>
    %cst_268 = arith.constant 1.000000e+00 : f32
    %661 = vector.broadcast %cst_268 : f32 to vector<4x128xf32>
    %662 = arith.addf %661, %660 : vector<4x128xf32>
    %663 = arith.divf %661, %662 : vector<4x128xf32>
    %664 = vector.extract_strided_slice %663 {offsets = [0, 0], sizes = [4, 32], strides = [1, 1]} : vector<4x128xf32> to vector<4x32xf32>
    %665 = vector.extract_strided_slice %663 {offsets = [0, 32], sizes = [4, 32], strides = [1, 1]} : vector<4x128xf32> to vector<4x32xf32>
    %666 = vector.extract_strided_slice %663 {offsets = [0, 64], sizes = [4, 32], strides = [1, 1]} : vector<4x128xf32> to vector<4x32xf32>
    %cst_269 = arith.constant 2.000000e+00 : f32
    %667 = vector.broadcast %cst_269 : f32 to vector<4x32xf32>
    %668 = arith.mulf %667, %666 : vector<4x32xf32>
    %cst_270 = arith.constant 1.000000e+00 : f32
    %669 = vector.broadcast %cst_270 : f32 to vector<4x32xf32>
    %670 = arith.subf %668, %669 : vector<4x32xf32>
    %671 = vector.extract_strided_slice %663 {offsets = [0, 96], sizes = [4, 32], strides = [1, 1]} : vector<4x128xf32> to vector<4x32xf32>
    %672 = arith.mulf %665, %609 : vector<4x32xf32>
    %673 = arith.mulf %664, %670 : vector<4x32xf32>
    %674 = arith.addf %672, %673 : vector<4x32xf32>
    %675 = math.tanh %674 : vector<4x32xf32>
    %676 = arith.mulf %671, %675 : vector<4x32xf32>
    %c4_271 = arith.constant 4 : index
    %c64_272 = arith.constant 64 : index
    %677 = vector.load %arg3[%c4_271, %c64_272] : memref<8x128xf32, #tpu.memory_space<vmem>>, vector<4x32xf32>
    tpu.vector_store %arg3[%c4_271, %c64_272], %676 {strides = array<i32>} : memref<8x128xf32, #tpu.memory_space<vmem>>, vector<4x32xf32>,
    %c4_273 = arith.constant 4 : index
    %c96_274 = arith.constant 96 : index
    %678 = vector.load %arg3[%c4_273, %c96_274] : memref<8x128xf32, #tpu.memory_space<vmem>>, vector<4x32xf32>
    tpu.vector_store %arg3[%c4_273, %c96_274], %635 {strides = array<i32>} : memref<8x128xf32, #tpu.memory_space<vmem>>, vector<4x32xf32>,
    %c4_275 = arith.constant 4 : index
    %c64_276 = arith.constant 64 : index
    %679 = vector.load %arg3[%c4_275, %c64_276] : memref<8x128xf32, #tpu.memory_space<vmem>>, vector<4x64xf32>
    %680 = arith.truncf %679 : vector<4x64xf32> to vector<4x64xbf16>
    %cst_277 = arith.constant dense<0.000000e+00> : vector<4x128xf32>
    %681 = tpu.matmul %680, %5, %cst_277 {dimension_numbers = #tpu.dot_dimension_numbers<[1], [0], [0], [1], [0, 0, 1, 1], [], []>} : vector<4x64xbf16>, vector<64x128xbf16>, vector<4x128xf32> -> vector<4x128xf32>
    %682 = arith.addf %681, %11 : vector<4x128xf32>
    %683 = arith.negf %682 : vector<4x128xf32>
    %684 = math.exp %683 : vector<4x128xf32>
    %cst_278 = arith.constant 1.000000e+00 : f32
    %685 = vector.broadcast %cst_278 : f32 to vector<4x128xf32>
    %686 = arith.addf %685, %684 : vector<4x128xf32>
    %687 = arith.divf %685, %686 : vector<4x128xf32>
    %688 = vector.extract_strided_slice %687 {offsets = [0, 0], sizes = [4, 32], strides = [1, 1]} : vector<4x128xf32> to vector<4x32xf32>
    %689 = vector.extract_strided_slice %687 {offsets = [0, 32], sizes = [4, 32], strides = [1, 1]} : vector<4x128xf32> to vector<4x32xf32>
    %690 = vector.extract_strided_slice %687 {offsets = [0, 64], sizes = [4, 32], strides = [1, 1]} : vector<4x128xf32> to vector<4x32xf32>
    %cst_279 = arith.constant 2.000000e+00 : f32
    %691 = vector.broadcast %cst_279 : f32 to vector<4x32xf32>
    %692 = arith.mulf %691, %690 : vector<4x32xf32>
    %cst_280 = arith.constant 1.000000e+00 : f32
    %693 = vector.broadcast %cst_280 : f32 to vector<4x32xf32>
    %694 = arith.subf %692, %693 : vector<4x32xf32>
    %695 = vector.extract_strided_slice %687 {offsets = [0, 96], sizes = [4, 32], strides = [1, 1]} : vector<4x128xf32> to vector<4x32xf32>
    %696 = arith.mulf %689, %633 : vector<4x32xf32>
    %697 = arith.mulf %688, %694 : vector<4x32xf32>
    %698 = arith.addf %696, %697 : vector<4x32xf32>
    %699 = math.tanh %698 : vector<4x32xf32>
    %700 = arith.mulf %695, %699 : vector<4x32xf32>
    %701 = arith.truncf %700 : vector<4x32xf32> to vector<4x32xbf16>
    %cst_281 = arith.constant dense<0.000000e+00> : vector<4x32xf32>
    %702 = tpu.matmul %701, %14, %cst_281 {dimension_numbers = #tpu.dot_dimension_numbers<[1], [0], [0], [1], [0, 0, 1, 1], [], []>} : vector<4x32xbf16>, vector<32x32xbf16>, vector<4x32xf32> -> vector<4x32xf32>
    %703 = arith.addf %702, %17 : vector<4x32xf32>
    %cst_282 = arith.constant 0.000000e+00 : f32
    %704 = vector.broadcast %cst_282 : f32 to vector<4x32xf32>
    %705 = arith.maximumf %703, %704 : vector<4x32xf32>
    %706 = arith.truncf %705 : vector<4x32xf32> to vector<4x32xbf16>
    %cst_283 = arith.constant dense<0.000000e+00> : vector<4x16xf32>
    %707 = tpu.matmul %706, %19, %cst_283 {dimension_numbers = #tpu.dot_dimension_numbers<[1], [0], [0], [1], [0, 0, 1, 1], [], []>} : vector<4x32xbf16>, vector<32x16xbf16>, vector<4x16xf32> -> vector<4x16xf32>
    %708 = arith.addf %707, %22 : vector<4x16xf32>
    %cst_284 = arith.constant 0.000000e+00 : f32
    %709 = vector.broadcast %cst_284 : f32 to vector<4x16xf32>
    %710 = arith.maximumf %708, %709 : vector<4x16xf32>
    %c16 = arith.constant 16 : index
    %c0_285 = arith.constant 0 : index
    %711 = vector.load %arg4[%c16, %c0_285] : memref<32x16xf32, #tpu.memory_space<vmem>>, vector<4x16xf32>
    tpu.vector_store %arg4[%c16, %c0_285], %710 {strides = array<i32>} : memref<32x16xf32, #tpu.memory_space<vmem>>, vector<4x16xf32>,
    %712 = arith.truncf %710 : vector<4x16xf32> to vector<4x16xbf16>
    %cst_286 = arith.constant dense<0.000000e+00> : vector<4x32xf32>
    %713 = tpu.matmul %712, %24, %cst_286 {dimension_numbers = #tpu.dot_dimension_numbers<[1], [0], [0], [1], [0, 0, 1, 1], [], []>} : vector<4x16xbf16>, vector<16x32xbf16>, vector<4x32xf32> -> vector<4x32xf32>
    %714 = arith.addf %650, %713 : vector<4x32xf32>
    %715 = arith.addf %714, %27 : vector<4x32xf32>
    %cst_287 = arith.constant 0.000000e+00 : f32
    %716 = vector.broadcast %cst_287 : f32 to vector<4x32xf32>
    %717 = arith.maximumf %715, %716 : vector<4x32xf32>
    %c0_288 = arith.constant 0 : index
    %c0_289 = arith.constant 0 : index
    %718 = vector.load %arg3[%c0_288, %c0_289] : memref<8x128xf32, #tpu.memory_space<vmem>>, vector<4x32xf32>
    tpu.vector_store %arg3[%c0_288, %c0_289], %717 {strides = array<i32>} : memref<8x128xf32, #tpu.memory_space<vmem>>, vector<4x32xf32>,
    %c0_290 = arith.constant 0 : index
    %c32_291 = arith.constant 32 : index
    %719 = vector.load %arg3[%c0_290, %c32_291] : memref<8x128xf32, #tpu.memory_space<vmem>>, vector<4x32xf32>
    tpu.vector_store %arg3[%c0_290, %c32_291], %676 {strides = array<i32>} : memref<8x128xf32, #tpu.memory_space<vmem>>, vector<4x32xf32>,
    %c0_292 = arith.constant 0 : index
    %c0_293 = arith.constant 0 : index
    %720 = vector.load %arg3[%c0_292, %c0_293] : memref<8x128xf32, #tpu.memory_space<vmem>>, vector<4x64xf32>
    %721 = arith.truncf %720 : vector<4x64xf32> to vector<4x64xbf16>
    %cst_294 = arith.constant dense<0.000000e+00> : vector<4x128xf32>
    %722 = tpu.matmul %721, %3, %cst_294 {dimension_numbers = #tpu.dot_dimension_numbers<[1], [0], [0], [1], [0, 0, 1, 1], [], []>} : vector<4x64xbf16>, vector<64x128xbf16>, vector<4x128xf32> -> vector<4x128xf32>
    %723 = arith.addf %722, %8 : vector<4x128xf32>
    %724 = arith.negf %723 : vector<4x128xf32>
    %725 = math.exp %724 : vector<4x128xf32>
    %cst_295 = arith.constant 1.000000e+00 : f32
    %726 = vector.broadcast %cst_295 : f32 to vector<4x128xf32>
    %727 = arith.addf %726, %725 : vector<4x128xf32>
    %728 = arith.divf %726, %727 : vector<4x128xf32>
    %729 = vector.extract_strided_slice %728 {offsets = [0, 0], sizes = [4, 32], strides = [1, 1]} : vector<4x128xf32> to vector<4x32xf32>
    %730 = vector.extract_strided_slice %728 {offsets = [0, 32], sizes = [4, 32], strides = [1, 1]} : vector<4x128xf32> to vector<4x32xf32>
    %731 = vector.extract_strided_slice %728 {offsets = [0, 64], sizes = [4, 32], strides = [1, 1]} : vector<4x128xf32> to vector<4x32xf32>
    %cst_296 = arith.constant 2.000000e+00 : f32
    %732 = vector.broadcast %cst_296 : f32 to vector<4x32xf32>
    %733 = arith.mulf %732, %731 : vector<4x32xf32>
    %cst_297 = arith.constant 1.000000e+00 : f32
    %734 = vector.broadcast %cst_297 : f32 to vector<4x32xf32>
    %735 = arith.subf %733, %734 : vector<4x32xf32>
    %736 = vector.extract_strided_slice %728 {offsets = [0, 96], sizes = [4, 32], strides = [1, 1]} : vector<4x128xf32> to vector<4x32xf32>
    %737 = arith.mulf %730, %674 : vector<4x32xf32>
    %738 = arith.mulf %729, %735 : vector<4x32xf32>
    %739 = arith.addf %737, %738 : vector<4x32xf32>
    %740 = math.tanh %739 : vector<4x32xf32>
    %741 = arith.mulf %736, %740 : vector<4x32xf32>
    %c4_298 = arith.constant 4 : index
    %c64_299 = arith.constant 64 : index
    %742 = vector.load %arg3[%c4_298, %c64_299] : memref<8x128xf32, #tpu.memory_space<vmem>>, vector<4x32xf32>
    tpu.vector_store %arg3[%c4_298, %c64_299], %741 {strides = array<i32>} : memref<8x128xf32, #tpu.memory_space<vmem>>, vector<4x32xf32>,
    %c4_300 = arith.constant 4 : index
    %c96_301 = arith.constant 96 : index
    %743 = vector.load %arg3[%c4_300, %c96_301] : memref<8x128xf32, #tpu.memory_space<vmem>>, vector<4x32xf32>
    tpu.vector_store %arg3[%c4_300, %c96_301], %700 {strides = array<i32>} : memref<8x128xf32, #tpu.memory_space<vmem>>, vector<4x32xf32>,
    %c4_302 = arith.constant 4 : index
    %c64_303 = arith.constant 64 : index
    %744 = vector.load %arg3[%c4_302, %c64_303] : memref<8x128xf32, #tpu.memory_space<vmem>>, vector<4x64xf32>
    %745 = arith.truncf %744 : vector<4x64xf32> to vector<4x64xbf16>
    %cst_304 = arith.constant dense<0.000000e+00> : vector<4x128xf32>
    %746 = tpu.matmul %745, %5, %cst_304 {dimension_numbers = #tpu.dot_dimension_numbers<[1], [0], [0], [1], [0, 0, 1, 1], [], []>} : vector<4x64xbf16>, vector<64x128xbf16>, vector<4x128xf32> -> vector<4x128xf32>
    %747 = arith.addf %746, %11 : vector<4x128xf32>
    %748 = arith.negf %747 : vector<4x128xf32>
    %749 = math.exp %748 : vector<4x128xf32>
    %cst_305 = arith.constant 1.000000e+00 : f32
    %750 = vector.broadcast %cst_305 : f32 to vector<4x128xf32>
    %751 = arith.addf %750, %749 : vector<4x128xf32>
    %752 = arith.divf %750, %751 : vector<4x128xf32>
    %753 = vector.extract_strided_slice %752 {offsets = [0, 0], sizes = [4, 32], strides = [1, 1]} : vector<4x128xf32> to vector<4x32xf32>
    %754 = vector.extract_strided_slice %752 {offsets = [0, 32], sizes = [4, 32], strides = [1, 1]} : vector<4x128xf32> to vector<4x32xf32>
    %755 = vector.extract_strided_slice %752 {offsets = [0, 64], sizes = [4, 32], strides = [1, 1]} : vector<4x128xf32> to vector<4x32xf32>
    %cst_306 = arith.constant 2.000000e+00 : f32
    %756 = vector.broadcast %cst_306 : f32 to vector<4x32xf32>
    %757 = arith.mulf %756, %755 : vector<4x32xf32>
    %cst_307 = arith.constant 1.000000e+00 : f32
    %758 = vector.broadcast %cst_307 : f32 to vector<4x32xf32>
    %759 = arith.subf %757, %758 : vector<4x32xf32>
    %760 = vector.extract_strided_slice %752 {offsets = [0, 96], sizes = [4, 32], strides = [1, 1]} : vector<4x128xf32> to vector<4x32xf32>
    %761 = arith.mulf %754, %698 : vector<4x32xf32>
    %762 = arith.mulf %753, %759 : vector<4x32xf32>
    %763 = arith.addf %761, %762 : vector<4x32xf32>
    %764 = math.tanh %763 : vector<4x32xf32>
    %765 = arith.mulf %760, %764 : vector<4x32xf32>
    %766 = arith.truncf %765 : vector<4x32xf32> to vector<4x32xbf16>
    %cst_308 = arith.constant dense<0.000000e+00> : vector<4x32xf32>
    %767 = tpu.matmul %766, %14, %cst_308 {dimension_numbers = #tpu.dot_dimension_numbers<[1], [0], [0], [1], [0, 0, 1, 1], [], []>} : vector<4x32xbf16>, vector<32x32xbf16>, vector<4x32xf32> -> vector<4x32xf32>
    %768 = arith.addf %767, %17 : vector<4x32xf32>
    %cst_309 = arith.constant 0.000000e+00 : f32
    %769 = vector.broadcast %cst_309 : f32 to vector<4x32xf32>
    %770 = arith.maximumf %768, %769 : vector<4x32xf32>
    %771 = arith.truncf %770 : vector<4x32xf32> to vector<4x32xbf16>
    %cst_310 = arith.constant dense<0.000000e+00> : vector<4x16xf32>
    %772 = tpu.matmul %771, %19, %cst_310 {dimension_numbers = #tpu.dot_dimension_numbers<[1], [0], [0], [1], [0, 0, 1, 1], [], []>} : vector<4x32xbf16>, vector<32x16xbf16>, vector<4x16xf32> -> vector<4x16xf32>
    %773 = arith.addf %772, %22 : vector<4x16xf32>
    %cst_311 = arith.constant 0.000000e+00 : f32
    %774 = vector.broadcast %cst_311 : f32 to vector<4x16xf32>
    %775 = arith.maximumf %773, %774 : vector<4x16xf32>
    %c20 = arith.constant 20 : index
    %c0_312 = arith.constant 0 : index
    %776 = vector.load %arg4[%c20, %c0_312] : memref<32x16xf32, #tpu.memory_space<vmem>>, vector<4x16xf32>
    tpu.vector_store %arg4[%c20, %c0_312], %775 {strides = array<i32>} : memref<32x16xf32, #tpu.memory_space<vmem>>, vector<4x16xf32>,
    %777 = arith.truncf %775 : vector<4x16xf32> to vector<4x16xbf16>
    %cst_313 = arith.constant dense<0.000000e+00> : vector<4x32xf32>
    %778 = tpu.matmul %777, %24, %cst_313 {dimension_numbers = #tpu.dot_dimension_numbers<[1], [0], [0], [1], [0, 0, 1, 1], [], []>} : vector<4x16xbf16>, vector<16x32xbf16>, vector<4x32xf32> -> vector<4x32xf32>
    %779 = arith.addf %715, %778 : vector<4x32xf32>
    %780 = arith.addf %779, %27 : vector<4x32xf32>
    %cst_314 = arith.constant 0.000000e+00 : f32
    %781 = vector.broadcast %cst_314 : f32 to vector<4x32xf32>
    %782 = arith.maximumf %780, %781 : vector<4x32xf32>
    %c0_315 = arith.constant 0 : index
    %c0_316 = arith.constant 0 : index
    %783 = vector.load %arg3[%c0_315, %c0_316] : memref<8x128xf32, #tpu.memory_space<vmem>>, vector<4x32xf32>
    tpu.vector_store %arg3[%c0_315, %c0_316], %782 {strides = array<i32>} : memref<8x128xf32, #tpu.memory_space<vmem>>, vector<4x32xf32>,
    %c0_317 = arith.constant 0 : index
    %c32_318 = arith.constant 32 : index
    %784 = vector.load %arg3[%c0_317, %c32_318] : memref<8x128xf32, #tpu.memory_space<vmem>>, vector<4x32xf32>
    tpu.vector_store %arg3[%c0_317, %c32_318], %741 {strides = array<i32>} : memref<8x128xf32, #tpu.memory_space<vmem>>, vector<4x32xf32>,
    %c0_319 = arith.constant 0 : index
    %c0_320 = arith.constant 0 : index
    %785 = vector.load %arg3[%c0_319, %c0_320] : memref<8x128xf32, #tpu.memory_space<vmem>>, vector<4x64xf32>
    %786 = arith.truncf %785 : vector<4x64xf32> to vector<4x64xbf16>
    %cst_321 = arith.constant dense<0.000000e+00> : vector<4x128xf32>
    %787 = tpu.matmul %786, %3, %cst_321 {dimension_numbers = #tpu.dot_dimension_numbers<[1], [0], [0], [1], [0, 0, 1, 1], [], []>} : vector<4x64xbf16>, vector<64x128xbf16>, vector<4x128xf32> -> vector<4x128xf32>
    %788 = arith.addf %787, %8 : vector<4x128xf32>
    %789 = arith.negf %788 : vector<4x128xf32>
    %790 = math.exp %789 : vector<4x128xf32>
    %cst_322 = arith.constant 1.000000e+00 : f32
    %791 = vector.broadcast %cst_322 : f32 to vector<4x128xf32>
    %792 = arith.addf %791, %790 : vector<4x128xf32>
    %793 = arith.divf %791, %792 : vector<4x128xf32>
    %794 = vector.extract_strided_slice %793 {offsets = [0, 0], sizes = [4, 32], strides = [1, 1]} : vector<4x128xf32> to vector<4x32xf32>
    %795 = vector.extract_strided_slice %793 {offsets = [0, 32], sizes = [4, 32], strides = [1, 1]} : vector<4x128xf32> to vector<4x32xf32>
    %796 = vector.extract_strided_slice %793 {offsets = [0, 64], sizes = [4, 32], strides = [1, 1]} : vector<4x128xf32> to vector<4x32xf32>
    %cst_323 = arith.constant 2.000000e+00 : f32
    %797 = vector.broadcast %cst_323 : f32 to vector<4x32xf32>
    %798 = arith.mulf %797, %796 : vector<4x32xf32>
    %cst_324 = arith.constant 1.000000e+00 : f32
    %799 = vector.broadcast %cst_324 : f32 to vector<4x32xf32>
    %800 = arith.subf %798, %799 : vector<4x32xf32>
    %801 = vector.extract_strided_slice %793 {offsets = [0, 96], sizes = [4, 32], strides = [1, 1]} : vector<4x128xf32> to vector<4x32xf32>
    %802 = arith.mulf %795, %739 : vector<4x32xf32>
    %803 = arith.mulf %794, %800 : vector<4x32xf32>
    %804 = arith.addf %802, %803 : vector<4x32xf32>
    %805 = math.tanh %804 : vector<4x32xf32>
    %806 = arith.mulf %801, %805 : vector<4x32xf32>
    %c4_325 = arith.constant 4 : index
    %c64_326 = arith.constant 64 : index
    %807 = vector.load %arg3[%c4_325, %c64_326] : memref<8x128xf32, #tpu.memory_space<vmem>>, vector<4x32xf32>
    tpu.vector_store %arg3[%c4_325, %c64_326], %806 {strides = array<i32>} : memref<8x128xf32, #tpu.memory_space<vmem>>, vector<4x32xf32>,
    %c4_327 = arith.constant 4 : index
    %c96_328 = arith.constant 96 : index
    %808 = vector.load %arg3[%c4_327, %c96_328] : memref<8x128xf32, #tpu.memory_space<vmem>>, vector<4x32xf32>
    tpu.vector_store %arg3[%c4_327, %c96_328], %765 {strides = array<i32>} : memref<8x128xf32, #tpu.memory_space<vmem>>, vector<4x32xf32>,
    %c4_329 = arith.constant 4 : index
    %c64_330 = arith.constant 64 : index
    %809 = vector.load %arg3[%c4_329, %c64_330] : memref<8x128xf32, #tpu.memory_space<vmem>>, vector<4x64xf32>
    %810 = arith.truncf %809 : vector<4x64xf32> to vector<4x64xbf16>
    %cst_331 = arith.constant dense<0.000000e+00> : vector<4x128xf32>
    %811 = tpu.matmul %810, %5, %cst_331 {dimension_numbers = #tpu.dot_dimension_numbers<[1], [0], [0], [1], [0, 0, 1, 1], [], []>} : vector<4x64xbf16>, vector<64x128xbf16>, vector<4x128xf32> -> vector<4x128xf32>
    %812 = arith.addf %811, %11 : vector<4x128xf32>
    %813 = arith.negf %812 : vector<4x128xf32>
    %814 = math.exp %813 : vector<4x128xf32>
    %cst_332 = arith.constant 1.000000e+00 : f32
    %815 = vector.broadcast %cst_332 : f32 to vector<4x128xf32>
    %816 = arith.addf %815, %814 : vector<4x128xf32>
    %817 = arith.divf %815, %816 : vector<4x128xf32>
    %818 = vector.extract_strided_slice %817 {offsets = [0, 0], sizes = [4, 32], strides = [1, 1]} : vector<4x128xf32> to vector<4x32xf32>
    %819 = vector.extract_strided_slice %817 {offsets = [0, 32], sizes = [4, 32], strides = [1, 1]} : vector<4x128xf32> to vector<4x32xf32>
    %820 = vector.extract_strided_slice %817 {offsets = [0, 64], sizes = [4, 32], strides = [1, 1]} : vector<4x128xf32> to vector<4x32xf32>
    %cst_333 = arith.constant 2.000000e+00 : f32
    %821 = vector.broadcast %cst_333 : f32 to vector<4x32xf32>
    %822 = arith.mulf %821, %820 : vector<4x32xf32>
    %cst_334 = arith.constant 1.000000e+00 : f32
    %823 = vector.broadcast %cst_334 : f32 to vector<4x32xf32>
    %824 = arith.subf %822, %823 : vector<4x32xf32>
    %825 = vector.extract_strided_slice %817 {offsets = [0, 96], sizes = [4, 32], strides = [1, 1]} : vector<4x128xf32> to vector<4x32xf32>
    %826 = arith.mulf %819, %763 : vector<4x32xf32>
    %827 = arith.mulf %818, %824 : vector<4x32xf32>
    %828 = arith.addf %826, %827 : vector<4x32xf32>
    %829 = math.tanh %828 : vector<4x32xf32>
    %830 = arith.mulf %825, %829 : vector<4x32xf32>
    %831 = arith.truncf %830 : vector<4x32xf32> to vector<4x32xbf16>
    %cst_335 = arith.constant dense<0.000000e+00> : vector<4x32xf32>
    %832 = tpu.matmul %831, %14, %cst_335 {dimension_numbers = #tpu.dot_dimension_numbers<[1], [0], [0], [1], [0, 0, 1, 1], [], []>} : vector<4x32xbf16>, vector<32x32xbf16>, vector<4x32xf32> -> vector<4x32xf32>
    %833 = arith.addf %832, %17 : vector<4x32xf32>
    %cst_336 = arith.constant 0.000000e+00 : f32
    %834 = vector.broadcast %cst_336 : f32 to vector<4x32xf32>
    %835 = arith.maximumf %833, %834 : vector<4x32xf32>
    %836 = arith.truncf %835 : vector<4x32xf32> to vector<4x32xbf16>
    %cst_337 = arith.constant dense<0.000000e+00> : vector<4x16xf32>
    %837 = tpu.matmul %836, %19, %cst_337 {dimension_numbers = #tpu.dot_dimension_numbers<[1], [0], [0], [1], [0, 0, 1, 1], [], []>} : vector<4x32xbf16>, vector<32x16xbf16>, vector<4x16xf32> -> vector<4x16xf32>
    %838 = arith.addf %837, %22 : vector<4x16xf32>
    %cst_338 = arith.constant 0.000000e+00 : f32
    %839 = vector.broadcast %cst_338 : f32 to vector<4x16xf32>
    %840 = arith.maximumf %838, %839 : vector<4x16xf32>
    %c24 = arith.constant 24 : index
    %c0_339 = arith.constant 0 : index
    %841 = vector.load %arg4[%c24, %c0_339] : memref<32x16xf32, #tpu.memory_space<vmem>>, vector<4x16xf32>
    tpu.vector_store %arg4[%c24, %c0_339], %840 {strides = array<i32>} : memref<32x16xf32, #tpu.memory_space<vmem>>, vector<4x16xf32>,
    %842 = arith.truncf %840 : vector<4x16xf32> to vector<4x16xbf16>
    %cst_340 = arith.constant dense<0.000000e+00> : vector<4x32xf32>
    %843 = tpu.matmul %842, %24, %cst_340 {dimension_numbers = #tpu.dot_dimension_numbers<[1], [0], [0], [1], [0, 0, 1, 1], [], []>} : vector<4x16xbf16>, vector<16x32xbf16>, vector<4x32xf32> -> vector<4x32xf32>
    %844 = arith.addf %780, %843 : vector<4x32xf32>
    %845 = arith.addf %844, %27 : vector<4x32xf32>
    %cst_341 = arith.constant 0.000000e+00 : f32
    %846 = vector.broadcast %cst_341 : f32 to vector<4x32xf32>
    %847 = arith.maximumf %845, %846 : vector<4x32xf32>
    %c0_342 = arith.constant 0 : index
    %c0_343 = arith.constant 0 : index
    %848 = vector.load %arg3[%c0_342, %c0_343] : memref<8x128xf32, #tpu.memory_space<vmem>>, vector<4x32xf32>
    tpu.vector_store %arg3[%c0_342, %c0_343], %847 {strides = array<i32>} : memref<8x128xf32, #tpu.memory_space<vmem>>, vector<4x32xf32>,
    %c0_344 = arith.constant 0 : index
    %c32_345 = arith.constant 32 : index
    %849 = vector.load %arg3[%c0_344, %c32_345] : memref<8x128xf32, #tpu.memory_space<vmem>>, vector<4x32xf32>
    tpu.vector_store %arg3[%c0_344, %c32_345], %806 {strides = array<i32>} : memref<8x128xf32, #tpu.memory_space<vmem>>, vector<4x32xf32>,
    %c0_346 = arith.constant 0 : index
    %c0_347 = arith.constant 0 : index
    %850 = vector.load %arg3[%c0_346, %c0_347] : memref<8x128xf32, #tpu.memory_space<vmem>>, vector<4x64xf32>
    %851 = arith.truncf %850 : vector<4x64xf32> to vector<4x64xbf16>
    %cst_348 = arith.constant dense<0.000000e+00> : vector<4x128xf32>
    %852 = tpu.matmul %851, %3, %cst_348 {dimension_numbers = #tpu.dot_dimension_numbers<[1], [0], [0], [1], [0, 0, 1, 1], [], []>} : vector<4x64xbf16>, vector<64x128xbf16>, vector<4x128xf32> -> vector<4x128xf32>
    %853 = arith.addf %852, %8 : vector<4x128xf32>
    %854 = arith.negf %853 : vector<4x128xf32>
    %855 = math.exp %854 : vector<4x128xf32>
    %cst_349 = arith.constant 1.000000e+00 : f32
    %856 = vector.broadcast %cst_349 : f32 to vector<4x128xf32>
    %857 = arith.addf %856, %855 : vector<4x128xf32>
    %858 = arith.divf %856, %857 : vector<4x128xf32>
    %859 = vector.extract_strided_slice %858 {offsets = [0, 0], sizes = [4, 32], strides = [1, 1]} : vector<4x128xf32> to vector<4x32xf32>
    %860 = vector.extract_strided_slice %858 {offsets = [0, 32], sizes = [4, 32], strides = [1, 1]} : vector<4x128xf32> to vector<4x32xf32>
    %861 = vector.extract_strided_slice %858 {offsets = [0, 64], sizes = [4, 32], strides = [1, 1]} : vector<4x128xf32> to vector<4x32xf32>
    %cst_350 = arith.constant 2.000000e+00 : f32
    %862 = vector.broadcast %cst_350 : f32 to vector<4x32xf32>
    %863 = arith.mulf %862, %861 : vector<4x32xf32>
    %cst_351 = arith.constant 1.000000e+00 : f32
    %864 = vector.broadcast %cst_351 : f32 to vector<4x32xf32>
    %865 = arith.subf %863, %864 : vector<4x32xf32>
    %866 = vector.extract_strided_slice %858 {offsets = [0, 96], sizes = [4, 32], strides = [1, 1]} : vector<4x128xf32> to vector<4x32xf32>
    %867 = arith.mulf %860, %804 : vector<4x32xf32>
    %868 = arith.mulf %859, %865 : vector<4x32xf32>
    %869 = arith.addf %867, %868 : vector<4x32xf32>
    %870 = math.tanh %869 : vector<4x32xf32>
    %871 = arith.mulf %866, %870 : vector<4x32xf32>
    %c4_352 = arith.constant 4 : index
    %c64_353 = arith.constant 64 : index
    %872 = vector.load %arg3[%c4_352, %c64_353] : memref<8x128xf32, #tpu.memory_space<vmem>>, vector<4x32xf32>
    tpu.vector_store %arg3[%c4_352, %c64_353], %871 {strides = array<i32>} : memref<8x128xf32, #tpu.memory_space<vmem>>, vector<4x32xf32>,
    %c4_354 = arith.constant 4 : index
    %c96_355 = arith.constant 96 : index
    %873 = vector.load %arg3[%c4_354, %c96_355] : memref<8x128xf32, #tpu.memory_space<vmem>>, vector<4x32xf32>
    tpu.vector_store %arg3[%c4_354, %c96_355], %830 {strides = array<i32>} : memref<8x128xf32, #tpu.memory_space<vmem>>, vector<4x32xf32>,
    %c4_356 = arith.constant 4 : index
    %c64_357 = arith.constant 64 : index
    %874 = vector.load %arg3[%c4_356, %c64_357] : memref<8x128xf32, #tpu.memory_space<vmem>>, vector<4x64xf32>
    %875 = arith.truncf %874 : vector<4x64xf32> to vector<4x64xbf16>
    %cst_358 = arith.constant dense<0.000000e+00> : vector<4x128xf32>
    %876 = tpu.matmul %875, %5, %cst_358 {dimension_numbers = #tpu.dot_dimension_numbers<[1], [0], [0], [1], [0, 0, 1, 1], [], []>} : vector<4x64xbf16>, vector<64x128xbf16>, vector<4x128xf32> -> vector<4x128xf32>
    %877 = arith.addf %876, %11 : vector<4x128xf32>
    %878 = arith.negf %877 : vector<4x128xf32>
    %879 = math.exp %878 : vector<4x128xf32>
    %cst_359 = arith.constant 1.000000e+00 : f32
    %880 = vector.broadcast %cst_359 : f32 to vector<4x128xf32>
    %881 = arith.addf %880, %879 : vector<4x128xf32>
    %882 = arith.divf %880, %881 : vector<4x128xf32>
    %883 = vector.extract_strided_slice %882 {offsets = [0, 0], sizes = [4, 32], strides = [1, 1]} : vector<4x128xf32> to vector<4x32xf32>
    %884 = vector.extract_strided_slice %882 {offsets = [0, 32], sizes = [4, 32], strides = [1, 1]} : vector<4x128xf32> to vector<4x32xf32>
    %885 = vector.extract_strided_slice %882 {offsets = [0, 64], sizes = [4, 32], strides = [1, 1]} : vector<4x128xf32> to vector<4x32xf32>
    %cst_360 = arith.constant 2.000000e+00 : f32
    %886 = vector.broadcast %cst_360 : f32 to vector<4x32xf32>
    %887 = arith.mulf %886, %885 : vector<4x32xf32>
    %cst_361 = arith.constant 1.000000e+00 : f32
    %888 = vector.broadcast %cst_361 : f32 to vector<4x32xf32>
    %889 = arith.subf %887, %888 : vector<4x32xf32>
    %890 = vector.extract_strided_slice %882 {offsets = [0, 96], sizes = [4, 32], strides = [1, 1]} : vector<4x128xf32> to vector<4x32xf32>
    %891 = arith.mulf %884, %828 : vector<4x32xf32>
    %892 = arith.mulf %883, %889 : vector<4x32xf32>
    %893 = arith.addf %891, %892 : vector<4x32xf32>
    %894 = math.tanh %893 : vector<4x32xf32>
    %895 = arith.mulf %890, %894 : vector<4x32xf32>
    %896 = arith.truncf %895 : vector<4x32xf32> to vector<4x32xbf16>
    %cst_362 = arith.constant dense<0.000000e+00> : vector<4x32xf32>
    %897 = tpu.matmul %896, %14, %cst_362 {dimension_numbers = #tpu.dot_dimension_numbers<[1], [0], [0], [1], [0, 0, 1, 1], [], []>} : vector<4x32xbf16>, vector<32x32xbf16>, vector<4x32xf32> -> vector<4x32xf32>
    %898 = arith.addf %897, %17 : vector<4x32xf32>
    %cst_363 = arith.constant 0.000000e+00 : f32
    %899 = vector.broadcast %cst_363 : f32 to vector<4x32xf32>
    %900 = arith.maximumf %898, %899 : vector<4x32xf32>
    %901 = arith.truncf %900 : vector<4x32xf32> to vector<4x32xbf16>
    %cst_364 = arith.constant dense<0.000000e+00> : vector<4x16xf32>
    %902 = tpu.matmul %901, %19, %cst_364 {dimension_numbers = #tpu.dot_dimension_numbers<[1], [0], [0], [1], [0, 0, 1, 1], [], []>} : vector<4x32xbf16>, vector<32x16xbf16>, vector<4x16xf32> -> vector<4x16xf32>
    %903 = arith.addf %902, %22 : vector<4x16xf32>
    %cst_365 = arith.constant 0.000000e+00 : f32
    %904 = vector.broadcast %cst_365 : f32 to vector<4x16xf32>
    %905 = arith.maximumf %903, %904 : vector<4x16xf32>
    %c28 = arith.constant 28 : index
    %c0_366 = arith.constant 0 : index
    %906 = vector.load %arg4[%c28, %c0_366] : memref<32x16xf32, #tpu.memory_space<vmem>>, vector<4x16xf32>
    tpu.vector_store %arg4[%c28, %c0_366], %905 {strides = array<i32>} : memref<32x16xf32, #tpu.memory_space<vmem>>, vector<4x16xf32>,
    %c240 = arith.constant 240 : index
    %c0_367 = arith.constant 0 : index
    %907 = vector.load %arg1[%c240, %c0_367] : memref<264x128xf32, #tpu.memory_space<vmem>>, vector<16x2xf32>
    %908 = arith.truncf %907 : vector<16x2xf32> to vector<16x2xbf16>
    %c256 = arith.constant 256 : index
    %c0_368 = arith.constant 0 : index
    %909 = vector.load %arg1[%c256, %c0_368] : memref<264x128xf32, #tpu.memory_space<vmem>>, vector<1x2xf32>
    %910 = vector.shape_cast %909 : vector<1x2xf32> to vector<1x2xf32>
    %911 = vector.broadcast %910 : vector<1x2xf32> to vector<32x2xf32>
    %c0_369 = arith.constant 0 : index
    %c0_370 = arith.constant 0 : index
    %912 = vector.load %arg4[%c0_369, %c0_370] : memref<32x16xf32, #tpu.memory_space<vmem>>, vector<32x16xf32>
    %913 = arith.truncf %912 : vector<32x16xf32> to vector<32x16xbf16>
    %cst_371 = arith.constant dense<0.000000e+00> : vector<32x2xf32>
    %914 = tpu.matmul %913, %908, %cst_371 {dimension_numbers = #tpu.dot_dimension_numbers<[1], [0], [0], [1], [0, 0, 1, 1], [], []>} : vector<32x16xbf16>, vector<16x2xbf16>, vector<32x2xf32> -> vector<32x2xf32>
    %915 = arith.addf %914, %911 : vector<32x2xf32>
    %c28_372 = arith.constant 28 : index
    %c0_373 = arith.constant 0 : index
    %916 = vector.load %arg0[%c28_372, %c0_373] : memref<32x2xf32, #tpu.memory_space<vmem>>, vector<4x2xf32>
    %917 = vector.extract_strided_slice %915 {offsets = [0, 0], sizes = [4, 2], strides = [1, 1]} : vector<32x2xf32> to vector<4x2xf32>
    %918 = arith.addf %916, %917 : vector<4x2xf32>
    %919 = vector.extract_strided_slice %915 {offsets = [4, 0], sizes = [4, 2], strides = [1, 1]} : vector<32x2xf32> to vector<4x2xf32>
    %920 = arith.addf %918, %919 : vector<4x2xf32>
    %921 = vector.extract_strided_slice %915 {offsets = [8, 0], sizes = [4, 2], strides = [1, 1]} : vector<32x2xf32> to vector<4x2xf32>
    %922 = arith.addf %920, %921 : vector<4x2xf32>
    %923 = vector.extract_strided_slice %915 {offsets = [12, 0], sizes = [4, 2], strides = [1, 1]} : vector<32x2xf32> to vector<4x2xf32>
    %924 = arith.addf %922, %923 : vector<4x2xf32>
    %925 = vector.extract_strided_slice %915 {offsets = [16, 0], sizes = [4, 2], strides = [1, 1]} : vector<32x2xf32> to vector<4x2xf32>
    %926 = arith.addf %924, %925 : vector<4x2xf32>
    %927 = vector.extract_strided_slice %915 {offsets = [20, 0], sizes = [4, 2], strides = [1, 1]} : vector<32x2xf32> to vector<4x2xf32>
    %928 = arith.addf %926, %927 : vector<4x2xf32>
    %929 = vector.extract_strided_slice %915 {offsets = [24, 0], sizes = [4, 2], strides = [1, 1]} : vector<32x2xf32> to vector<4x2xf32>
    %930 = arith.addf %928, %929 : vector<4x2xf32>
    %931 = vector.extract_strided_slice %915 {offsets = [28, 0], sizes = [4, 2], strides = [1, 1]} : vector<32x2xf32> to vector<4x2xf32>
    %932 = arith.addf %930, %931 : vector<4x2xf32>
    %933 = vector.shape_cast %918 : vector<4x2xf32> to vector<1x4x2xf32>
    %934 = vector.shape_cast %920 : vector<4x2xf32> to vector<1x4x2xf32>
    %935 = vector.shape_cast %922 : vector<4x2xf32> to vector<1x4x2xf32>
    %936 = vector.shape_cast %924 : vector<4x2xf32> to vector<1x4x2xf32>
    %937 = vector.shape_cast %926 : vector<4x2xf32> to vector<1x4x2xf32>
    %938 = vector.shape_cast %928 : vector<4x2xf32> to vector<1x4x2xf32>
    %939 = vector.shape_cast %930 : vector<4x2xf32> to vector<1x4x2xf32>
    %940 = vector.shape_cast %932 : vector<4x2xf32> to vector<1x4x2xf32>
    %941 = tpu.concatenate %933, %934, %935, %936, %937, %938, %939, %940 in 0 : vector<1x4x2xf32>, vector<1x4x2xf32>, vector<1x4x2xf32>, vector<1x4x2xf32>, vector<1x4x2xf32>, vector<1x4x2xf32>, vector<1x4x2xf32>, vector<1x4x2xf32> -> vector<8x4x2xf32>
    %c0_374 = arith.constant 0 : index
    %c0_375 = arith.constant 0 : index
    %c0_376 = arith.constant 0 : index
    %942 = vector.load %arg2[%c0_374, %c0_375, %c0_376] : memref<8x4x2xf32, #tpu.memory_space<vmem>>, vector<8x4x2xf32>
    tpu.vector_store %arg2[%c0_374, %c0_375, %c0_376], %941 {strides = array<i32>} : memref<8x4x2xf32, #tpu.memory_space<vmem>>, vector<8x4x2xf32>,
    return
  }
}

</mosaic_0001>

<bundles_post_ra>
// kernel: tpu_custom_call.1
= control target key start
LH: loop header
LB: loop body
LE: loop exit
PB: predicated region body
PF: predicated region fallthrough
CT: control target
= control target key end

     0   :  { %7 = vsyncpa [#allocation5], 0  ;;  %s4359_s9 = smov [#allocation4]   ;;  %s5377_s0 = inlined_call_operand.vmem [shape: f32[32,2], index: 0, kind: input, shape index: {}]   ;;  %s5378_s1 = inlined_call_operand.hbm [shape: f32[264,128], index: 1, kind: input, shape index: {}]   ;;  %s5379_s2 = inlined_call_operand.vmem [shape: f32[8,4,2], index: 2, kind: output, shape index: {}]  }
   0x1   :  { %s15_s10 = sshll.u32 %s4359_s9, 4  ;;  %s16_s10 = int_to_ptr.vmem [resolvable:$true] %s15_s10 }
   0x2   :  { %s4345_s11 = scalar_lea.vmem %s16_s10, 4224  ;;  %p4350_p1 = scmp.lt.s32.totalorder %s16_s10, %s16_s10 }
   0x3   :  { %p4346_p0 = scmp.ne.s32.totalorder %s16_s10, %s4345_s11  ;;  %p4351_p2 = scmp.lt.s32.totalorder %s4345_s11, %s4345_s11 }
   0x5   :  { %p4352_p3 = por %p4351_p2, %p4350_p1 }
   0x7   :  { %p4353_p4 = pnand %p4352_p3, %p4346_p0 }
   0x9   :  { %4356 = shalt.err (!%p4353_p4)
}
   0xa   :  { %s4360_s12 = smov 128   ;;  %s4361_s13 = smov 8  }
   0xb   :  { %21 = dma.hbm_to_vmem [thread:$0]  %s5378_s1, 4224, %s16_s10, [#allocation5], %s4360_s12, %s4360_s12, %s4361_s13  }
   0xc   :  { %4357 = dma.done.wait [#allocation5], 4224  }
   0xd   :  { %4358 = vsyncadd [#allocation5], 4294963072  ;;  %v4362_v0 = vmov 0   ;;  %v4363_v1 = vmov 0.0   ;;  %vm172_vm0 = vcmask 781824   ;;  %vm174_vm1 = vcmask 1044224  }
   0xe   :  { %4167 = vset.pattern.permute.xlu0 %v4362_v0  ;;  %3621 = vmatprep.subr.bf16.mxu0 %v4363_v1  ;;  %167 = vst [vmem:[#allocation2] sm:$0xff] %v4363_v1  ;;  %v92_v2 = vld [vmem:[%s5377_s0] sm:$0xff]  ;;  %v41_v4 = vld [vmem:[#allocation4 + $0x80] sm:$0xff]  ;;  %v38_v6 = vld [vmem:[#allocation4 + $0x68] sm:$0xff]  ;;  %v4364_v11 = vmov 1   ;;  %vm4365_vm2 = vmmov 0  }
   0xf   :  { %3641 = vmatprep.subr.bf16.mxu1 %v4363_v1  ;;  %4169 = vset.pattern.permute.xlu1 %v4362_v0  ;;  %173 = vst.msk [vmem:[#allocation2 + $0x4] sm:$0xf] %vm172_vm0, %v4363_v1  ;;  %v40_v3 = vld [vmem:[#allocation4 + $0x78] sm:$0xff]  ;;  %v39_v7 = vld [vmem:[#allocation4 + $0x70] sm:$0xff]  ;;  %v37_v10 = vld [vmem:[#allocation4 + $0x60] sm:$0xff]  ;;  %vm168_vm3 = vcmask 257024  }
  0x10   :  { %175 = vst.msk [vmem:[#allocation2 + $0x4] sm:$0xf] %vm174_vm1, %v4363_v1  ;;  %113 = vperm.xlu0 %4167, %v92_v2   ;;  %v4397_v5 = vpack.c.bf16 %v41_v4, %v40_v3  ;;  %v4400_v8 = vpack.c.bf16 %v39_v7, %v38_v6  ;;  %v36_v9 = vld [vmem:[#allocation4 + $0x58] sm:$0xff]  ;;  %v34_v13 = vld [vmem:[#allocation4 + $0x48] sm:$0xff]  ;;  %v35_v14 = vld [vmem:[#allocation4 + $0x50] sm:$0xff]  ;;  %3637 = vmatprep.mubr.msk.bf16.mxu0 %vm4365_vm2, %v4363_v1  ;;  %vm170_vm4 = vcmask 519424  }
  0x11   :  { %v4406_v12 = vpack.c.bf16 %v37_v10, %v36_v9  ;;  %v4412_v15 = vpack.c.bf16 %v35_v14, %v34_v13  ;;  %v32_v16 = vld [vmem:[#allocation4 + $0x38] sm:$0xff]  ;;  %v33_v17 = vld [vmem:[#allocation4 + $0x40] sm:$0xff]  ;;  %v30_v19 = vld [vmem:[#allocation4 + $0x28] sm:$0xff]  ;;  %3657 = vmatprep.mubr.msk.bf16.mxu1 %vm4365_vm2, %v4363_v1  ;;  %vm243_vm5 = vcmask 261124   ;;  %vm60_vm6 = vcmask 1043456   ;;  %s4366_s17 = smov 64  }
  0x12   :  { %3622 = vmatpush3.bf16.msra.mxu0 %v4397_v5  ;;  %3642 = vmatpush3.bf16.msra.mxu1 %v4397_v5  ;;  %v4418_v18 = vpack.c.bf16 %v33_v17, %v32_v16  ;;  %v31_v20 = vld [vmem:[#allocation4 + $0x30] sm:$0xff]  ;;  %v28_v22 = vld [vmem:[#allocation4 + $0x18] sm:$0xff]  ;;  %v29_v23 = vld [vmem:[#allocation4 + $0x20] sm:$0xff]  ;;  %s4367_s18 = smov 32   ;;  %s4368_s19 = smov 96   ;;  %vm340_vm7 = vcmask 1048324  }
  0x13   :  { %3623 = vmatprep.subr.bf16.mxu0 %v4363_v1  ;;  %3643 = vmatprep.subr.bf16.mxu1 %v4363_v1  ;;  %v4424_v21 = vpack.c.bf16 %v31_v20, %v30_v19  ;;  %v4434_v24 = vpack.c.bf16 %v29_v23, %v28_v22  ;;  %v26_v25 = vld [vmem:[#allocation4 + $0x8] sm:$0xff]  ;;  %v27_v26 = vld [vmem:[#allocation4 + $0x10] sm:$0xff]  ;;  %v4449_v29 = vld [vmem:[#allocation4] ss:$0 sm:$0xff]  ;;  %vm944_vm8 = vcmask 523264   ;;  %vm1020_vm9 = vcmask 261120  }
  0x14   :  { %4168 = vset.pattern.permute.xlu0 %v4364_v11  ;;  %v4440_v27 = vpack.c.bf16 %v27_v26, %v26_v25  ;;  %v4451_v30 = vld [vmem:[#allocation4 + $0x1] ss:$0 sm:$0xff]  ;;  %v4455_v34 = vld [vmem:[#allocation4 + $0x2] ss:$0 sm:$0xff]  ;;  %v3303_v40 = vld [vmem:[#allocation4 + $0x88] ss:$0 sm:$0xff] }
  0x15   :  { %136 = vperm.xlu0 %4168, %v92_v2   ;;  %v3304_v41 = vld [vmem:[#allocation4 + $0x89] ss:$0 sm:$0xff]  ;;  %v93_v22 = vld [vmem:[%s5377_s0 + $0x8] sm:$0xff]  ;;  %vm1110_vm10 = vcmask 125952   ;;  %vm1113_vm11 = vcmask 130048   ;;  %vm3289_vm12 = vcmask 11264  }
  0x16   :  { %3624 = vmatpush3.bf16.msra.mxu0 %v4400_v8  ;;  %3644 = vmatpush3.bf16.msra.mxu1 %v4400_v8  ;;  %v4480_v42 = vsel %vm60_vm6, %v3303_v40, %v3304_v41 }
  0x17   :  { %3625 = vmatprep.subr.bf16.mxu0 %v4363_v1  ;;  %3645 = vmatprep.subr.bf16.mxu1 %v4363_v1 }
  0x1a   :  { %3626 = vmatpush3.bf16.msra.mxu0 %v4406_v12  ;;  %3646 = vmatpush3.bf16.msra.mxu1 %v4406_v12 }
  0x1b   :  { %3627 = vmatprep.subr.bf16.mxu0 %v4363_v1  ;;  %3647 = vmatprep.subr.bf16.mxu1 %v4363_v1 }
  0x1e   :  { %3628 = vmatpush3.bf16.msra.mxu0 %v4412_v15  ;;  %3648 = vmatpush3.bf16.msra.mxu1 %v4412_v15 }
  0x1f   :  { %3629 = vmatprep.subr.bf16.mxu0 %v4363_v1  ;;  %3649 = vmatprep.subr.bf16.mxu1 %v4363_v1 }
  0x22   :  { %3630 = vmatpush3.bf16.msra.mxu0 %v4418_v18  ;;  %3650 = vmatpush3.bf16.msra.mxu1 %v4418_v18 }
  0x23   :  { %3631 = vmatprep.subr.bf16.mxu0 %v4363_v1  ;;  %3651 = vmatprep.subr.bf16.mxu1 %v4363_v1 }
  0x26   :  { %3632 = vmatpush3.bf16.msra.mxu0 %v4424_v21  ;;  %3652 = vmatpush3.bf16.msra.mxu1 %v4424_v21 }
  0x27   :  { %3633 = vmatprep.subr.bf16.mxu0 %v4363_v1  ;;  %3653 = vmatprep.subr.bf16.mxu1 %v4363_v1 }
  0x2a   :  { %3634 = vmatpush3.bf16.msra.mxu0 %v4434_v24  ;;  %3654 = vmatpush3.bf16.msra.mxu1 %v4434_v24 }
  0x2b   :  { %3635 = vmatprep.subr.bf16.mxu0 %v4363_v1  ;;  %3655 = vmatprep.subr.bf16.mxu1 %v4363_v1 }
  0x2e   :  { %3636 = vmatpush3.bf16.msra.mxu0 %v4440_v27  ;;  %3656 = vmatpush3.bf16.msra.mxu1 %v4440_v27 }
  0x2f   :  { %3661 = vmatprep.subr.bf16.mxu0 %v4363_v1  ;;  %3681 = vmatprep.subr.bf16.mxu1 %v4363_v1 }
  0x8b   :  { %v114_v28 = vpop.permute.xlu0 %113 }
  0x8c   :  { %v131_v32 = vmul.f32 %v4449_v29, %v114_v28 }
  0x90   :  { %v137_v31 = vpop.permute.xlu0 %136 }
  0x91   :  { %v151_v33 = vmul.f32 %v4451_v30, %v137_v31 }
  0x93   :  { %v155_v35 = vadd.f32 %v151_v33, %v131_v32 }
  0x95   :  { %v159_v36 = vadd.f32 %v4455_v34, %v155_v35 }
  0x97   :  { %v163_v37 = vmax.f32 %v159_v36, 0.0 }
  0x99   :  { %169 = vst.msk [vmem:[#allocation2] sm:$0xf] %vm168_vm3, %v163_v37 }
  0x9a   :  { %171 = vst.msk [vmem:[#allocation2] sm:$0xf] %vm170_vm4, %v4363_v1 }
  0xa1   :  { %v176_v38 = vld [vmem:[#allocation2] sm:$0xff] }
  0xa2   :  { %v177_v39 = vpack.c.bf16 %v176_v38, %v176_v38  ;;  %244 = vst.msk [vmem:[#allocation2 - $0x4] sm:$0xf0] %vm243_vm5, %v163_v37 }
  0xa4   :  { %3638 = vmatmul.mubr.bf16.vlgmr.msra.gmra.mxu0 %v177_v39 }
  0xa5   :  { %3662 = vmatpush3.bf16.msra.mxu0 %v4397_v5  ;;  %3677 = vmatprep.mubr.msk.bf16.mxu0 %vm4365_vm2, %v4363_v1 }
  0xa6   :  { %3663 = vmatprep.subr.bf16.mxu0 %v4363_v1 }
  0xa9   :  { %3664 = vmatpush3.bf16.msra.mxu0 %v4400_v8 }
  0xaa   :  { %3665 = vmatprep.subr.bf16.mxu0 %v4363_v1 }
  0xad   :  { %3666 = vmatpush3.bf16.msra.mxu0 %v4406_v12 }
  0xae   :  { %3667 = vmatprep.subr.bf16.mxu0 %v4363_v1 }
  0xb1   :  { %3668 = vmatpush3.bf16.msra.mxu0 %v4412_v15 }
  0xb2   :  { %3669 = vmatprep.subr.bf16.mxu0 %v4363_v1 }
  0xb5   :  { %3670 = vmatpush3.bf16.msra.mxu0 %v4418_v18 }
  0xb6   :  { %3671 = vmatprep.subr.bf16.mxu0 %v4363_v1 }
  0xb9   :  { %3672 = vmatpush3.bf16.msra.mxu0 %v4424_v21 }
  0xba   :  { %3673 = vmatprep.subr.bf16.mxu0 %v4363_v1 }
  0xbd   :  { %3674 = vmatpush3.bf16.msra.mxu0 %v4434_v24 }
  0xbe   :  { %3675 = vmatprep.subr.bf16.mxu0 %v4363_v1 }
  0xc1   :  { %3676 = vmatpush3.bf16.msra.mxu0 %v4440_v27 }
  0xc2   :  { %3701 = vmatprep.subr.bf16.mxu0 %v4363_v1 }
 0x164   :  { %v212_v43 = vpop.f32.mrf.mxu0 }
 0x165   :  { %v213_v44 = vadd.f32 %v212_v43, %v4480_v42 }
 0x166   :  { %v3639_v45 = vpop.f32.mrf.mxu0 }
 0x167   :  { %v3311_v46 = vmul.f32 -1.442695, %v213_v44 }
 0x168   :  { %v215_v47 = vpop.f32.mrf.mxu0 }
 0x169   :  { %4170 = vpow2.f32 %v3311_v46 }
 0x16a   :  { %v3640_v48 = vpop.f32.mrf.mxu0 }
 0x176   :  { %v4171_v49 = vpop.eup %4170 }
 0x177   :  { %v221_v50 = vadd.f32 1.0, %v4171_v49 }
 0x179   :  { %4172 = vrcp.f32 %v221_v50 }
 0x186   :  { %v4173_v51 = vpop.eup %4172 }
 0x187   :  { %v224_v52 = vmul.f32 2.0, %v4173_v51  ;;  %v226_v56 = vmul.f32 0.0, %v4173_v51 }
 0x189   :  { %v3312_v53 = vadd.f32 -1.0, %v224_v52 }
 0x18b   :  { %228 = vrot.lane.b32.xlu1 %v3312_v53, %s4366_s17 }
 0x1fd   :  { %v229_v54 = vpop.permute.xlu1 %228 }
 0x1fe   :  { %v231_v55 = vmul.f32 %v4173_v51, %v229_v54 }
 0x200   :  { %233 = vrot.lane.b32.xlu1 %v231_v55, %s4367_s18 }
 0x272   :  { %v234_v57 = vpop.permute.xlu1 %233 }
 0x273   :  { %v236_v58 = vadd.f32 %v234_v57, %v226_v56 }
 0x275   :  { %4174 = vtanh.f32 %v236_v58 }
 0x282   :  { %v4175_v59 = vpop.eup %4174 }
 0x283   :  { %239 = vrot.lane.b32.xlu1 %v4175_v59, %s4366_s17 }
 0x2f5   :  { %v240_v60 = vpop.permute.xlu1 %239 }
 0x2f6   :  { %v242_v61 = vmul.f32 %v4173_v51, %v240_v60 }
 0x2f8   :  { %246 = vrot.lane.b32.xlu1 %v242_v61, %s4366_s17  ;;  %250 = vrot.lane.b32.xlu0 %v242_v61, %s4368_s19 }
 0x36a   :  { %v247_v62 = vpop.permute.xlu1 %246  ;;  %v251_v63 = vpop.permute.xlu0 %250 }
 0x36b   :  { %249 = vst.msk [vmem:[#allocation2] sm:$0xf] %vm170_vm4, %v247_v62 }
 0x36c   :  { %253 = vst.msk [vmem:[#allocation2 + $0x4] sm:$0xf] %vm172_vm0, %v251_v63 }
 0x36d   :  { %254 = vst.msk [vmem:[#allocation2 + $0x4] sm:$0xf] %vm174_vm1, %v4363_v1 }
 0x374   :  { %v255_v0 = vld [vmem:[#allocation2] sm:$0xff] }
 0x375   :  { %v256_v2 = vpack.c.bf16 %v255_v0, %v255_v0 }
 0x377   :  { %3658 = vmatmul.mubr.bf16.vlgmr.msra.gmra.mxu1 %v256_v2 }
 0x378   :  { %3682 = vmatpush3.bf16.msra.mxu1 %v4397_v5  ;;  %3697 = vmatprep.mubr.msk.bf16.mxu1 %vm4365_vm2, %v4363_v1 }
 0x379   :  { %3683 = vmatprep.subr.bf16.mxu1 %v4363_v1 }
 0x37c   :  { %3684 = vmatpush3.bf16.msra.mxu1 %v4400_v8 }
 0x37d   :  { %3685 = vmatprep.subr.bf16.mxu1 %v4363_v1 }
 0x380   :  { %3686 = vmatpush3.bf16.msra.mxu1 %v4406_v12 }
 0x381   :  { %3687 = vmatprep.subr.bf16.mxu1 %v4363_v1 }
 0x384   :  { %3688 = vmatpush3.bf16.msra.mxu1 %v4412_v15 }
 0x385   :  { %3689 = vmatprep.subr.bf16.mxu1 %v4363_v1 }
 0x388   :  { %3690 = vmatpush3.bf16.msra.mxu1 %v4418_v18 }
 0x389   :  { %3691 = vmatprep.subr.bf16.mxu1 %v4363_v1 }
 0x38c   :  { %3692 = vmatpush3.bf16.msra.mxu1 %v4424_v21 }
 0x38d   :  { %3693 = vmatprep.subr.bf16.mxu1 %v4363_v1 }
 0x390   :  { %3694 = vmatpush3.bf16.msra.mxu1 %v4434_v24 }
 0x391   :  { %3695 = vmatprep.subr.bf16.mxu1 %v4363_v1 }
 0x394   :  { %3696 = vmatpush3.bf16.msra.mxu1 %v4440_v27 }
 0x395   :  { %3721 = vmatprep.subr.bf16.mxu1 %v4363_v1 }
 0x437   :  { %v291_v3 = vpop.f32.mrf.mxu1 }
 0x438   :  { %v292_v4 = vadd.f32 %v291_v3, %v4480_v42 }
 0x439   :  { %v3659_v6 = vpop.f32.mrf.mxu1 }
 0x43a   :  { %v3313_v7 = vmul.f32 -1.442695, %v292_v4 }
 0x43b   :  { %v294_v9 = vpop.f32.mrf.mxu1 }
 0x43c   :  { %4176 = vpow2.f32 %v3313_v7 }
 0x43d   :  { %v3660_v10 = vpop.f32.mrf.mxu1 }
 0x449   :  { %v4177_v11 = vpop.eup %4176 }
 0x44a   :  { %v300_v13 = vadd.f32 1.0, %v4177_v11 }
 0x44c   :  { %4178 = vrcp.f32 %v300_v13 }
 0x459   :  { %v4179_v14 = vpop.eup %4178 }
 0x45a   :  { %v303_v16 = vmul.f32 2.0, %v4179_v14  ;;  %v305_v23 = vmul.f32 %v4179_v14, %v236_v58  ;;  %v322_v25 = vmul.f32 0.0, %v4179_v14 }
 0x45c   :  { %v3314_v17 = vadd.f32 -1.0, %v303_v16 }
 0x45e   :  { %307 = vrot.lane.b32.xlu0 %v3314_v17, %s4366_s17 }
 0x4d0   :  { %v308_v19 = vpop.permute.xlu0 %307 }
 0x4d1   :  { %v310_v20 = vmul.f32 %v4179_v14, %v308_v19 }
 0x4d3   :  { %312 = vrot.lane.b32.xlu1 %v310_v20, %s4367_s18 }
 0x4d7   :  { %118 = vperm.xlu1 %4169, %v93_v22  }
 0x545   :  { %v313_v26 = vpop.permute.xlu1 %312 }
 0x546   :  { %v4516_v28 = vadd.f32 %v313_v26, %v305_v23  ;;  %v4518_v31 = vadd.f32 %v322_v25, %v313_v26 }
 0x548   :  { %4180 = vtanh.f32 %v4516_v28 }
 0x549   :  { %4182 = vtanh.f32 %v4518_v31 }
 0x552   :  { %v119_v37 = vpop.permute.xlu1 %118 }
 0x553   :  { %v132_v38 = vmul.f32 %v4449_v29, %v119_v37 }
 0x555   :  { %v4181_v32 = vpop.eup %4180 }
 0x556   :  { %v4183_v33 = vpop.eup %4182  ;;  %318 = vrot.lane.b32.xlu0 %v4181_v32, %s4366_s17 }
 0x557   :  { %326 = vrot.lane.b32.xlu1 %v4183_v33, %s4366_s17 }
 0x55a   :  { %140 = vperm.xlu0 %4168, %v93_v22  }
 0x5c8   :  { %v319_v35 = vpop.permute.xlu0 %318 }
 0x5c9   :  { %v321_v36 = vmul.f32 %v4179_v14, %v319_v35  ;;  %v327_v45 = vpop.permute.xlu1 %326 }
 0x5ca   :  { %v329_v46 = vmul.f32 %v4179_v14, %v327_v45 }
 0x5cb   :  { %336 = vrot.lane.b32.xlu0 %v321_v36, %s4368_s19  ;;  %332 = vrot.lane.b32.xlu1 %v321_v36, %s4366_s17 }
 0x5d5   :  { %v141_v39 = vpop.permute.xlu0 %140 }
 0x5d6   :  { %v152_v40 = vmul.f32 %v4451_v30, %v141_v39 }
 0x5d8   :  { %v156_v41 = vadd.f32 %v152_v40, %v132_v38  ;;  %v94_v40 = vld [vmem:[%s5377_s0 + $0x10] sm:$0xff] }
 0x5da   :  { %v160_v43 = vadd.f32 %v4455_v34, %v156_v41 }
 0x5dc   :  { %v164_v44 = vmax.f32 %v160_v43, 0.0 }
 0x5de   :  { %330 = vst.msk [vmem:[#allocation2] sm:$0xf] %vm168_vm3, %v164_v44 }
 0x63d   :  { %v337_v47 = vpop.permute.xlu0 %336  ;;  %v333_v48 = vpop.permute.xlu1 %332 }
 0x63e   :  { %339 = vst.msk [vmem:[#allocation2 + $0x4] sm:$0xf] %vm172_vm0, %v337_v47 }
 0x63f   :  { %335 = vst.msk [vmem:[#allocation2] sm:$0xf] %vm170_vm4, %v333_v48 }
 0x640   :  { %341 = vst.msk [vmem:[#allocation2] sm:$0xf0] %vm340_vm7, %v329_v46 }
 0x647   :  { %v342_v49 = vld [vmem:[#allocation2] sm:$0xff] }
 0x648   :  { %417 = vst.msk [vmem:[#allocation2 - $0x4] sm:$0xf0] %vm243_vm5, %v164_v44  ;;  %v343_v50 = vpack.c.bf16 %v342_v49, %v342_v49 }
 0x64a   :  { %3678 = vmatmul.mubr.bf16.vlgmr.msra.gmra.mxu0 %v343_v50 }
 0x64b   :  { %3702 = vmatpush3.bf16.msra.mxu0 %v4397_v5  ;;  %3717 = vmatprep.mubr.msk.bf16.mxu0 %vm4365_vm2, %v4363_v1 }
 0x64c   :  { %3703 = vmatprep.subr.bf16.mxu0 %v4363_v1 }
 0x64f   :  { %3704 = vmatpush3.bf16.msra.mxu0 %v4400_v8 }
 0x650   :  { %3705 = vmatprep.subr.bf16.mxu0 %v4363_v1 }
 0x653   :  { %3706 = vmatpush3.bf16.msra.mxu0 %v4406_v12 }
 0x654   :  { %3707 = vmatprep.subr.bf16.mxu0 %v4363_v1 }
 0x657   :  { %3708 = vmatpush3.bf16.msra.mxu0 %v4412_v15 }
 0x658   :  { %3709 = vmatprep.subr.bf16.mxu0 %v4363_v1 }
 0x65b   :  { %3710 = vmatpush3.bf16.msra.mxu0 %v4418_v18 }
 0x65c   :  { %3711 = vmatprep.subr.bf16.mxu0 %v4363_v1 }
 0x65f   :  { %3712 = vmatpush3.bf16.msra.mxu0 %v4424_v21 }
 0x660   :  { %3713 = vmatprep.subr.bf16.mxu0 %v4363_v1 }
 0x663   :  { %3714 = vmatpush3.bf16.msra.mxu0 %v4434_v24 }
 0x664   :  { %3715 = vmatprep.subr.bf16.mxu0 %v4363_v1 }
 0x667   :  { %3716 = vmatpush3.bf16.msra.mxu0 %v4440_v27 }
 0x668   :  { %3741 = vmatprep.subr.bf16.mxu0 %v4363_v1 }
 0x70a   :  { %v378_v51 = vpop.f32.mrf.mxu0 }
 0x70b   :  { %v379_v52 = vadd.f32 %v378_v51, %v4480_v42 }
 0x70c   :  { %v3679_v53 = vpop.f32.mrf.mxu0 }
 0x70d   :  { %v3315_v54 = vmul.f32 -1.442695, %v379_v52 }
 0x70e   :  { %v381_v55 = vpop.f32.mrf.mxu0 }
 0x70f   :  { %4184 = vpow2.f32 %v3315_v54 }
 0x710   :  { %v3680_v56 = vpop.f32.mrf.mxu0 }
 0x71c   :  { %v4185_v57 = vpop.eup %4184 }
 0x71d   :  { %v387_v58 = vadd.f32 1.0, %v4185_v57 }
 0x71f   :  { %4186 = vrcp.f32 %v387_v58 }
 0x72c   :  { %v4187_v59 = vpop.eup %4186 }
 0x72d   :  { %v390_v60 = vmul.f32 2.0, %v4187_v59  ;;  %v392_v0 = vmul.f32 %v4187_v59, %v4516_v28  ;;  %v409_v2 = vmul.f32 %v4187_v59, %v4518_v31 }
 0x72f   :  { %v3316_v61 = vadd.f32 -1.0, %v390_v60 }
 0x731   :  { %394 = vrot.lane.b32.xlu0 %v3316_v61, %s4366_s17 }
 0x7a3   :  { %v395_v62 = vpop.permute.xlu0 %394 }
 0x7a4   :  { %v397_v63 = vmul.f32 %v4187_v59, %v395_v62 }
 0x7a6   :  { %399 = vrot.lane.b32.xlu1 %v397_v63, %s4367_s18 }
 0x818   :  { %v400_v3 = vpop.permute.xlu1 %399 }
 0x819   :  { %v402_v4 = vadd.f32 %v400_v3, %v392_v0  ;;  %v410_v6 = vadd.f32 %v409_v2, %v400_v3 }
 0x81b   :  { %4188 = vtanh.f32 %v402_v4 }
 0x81c   :  { %4190 = vtanh.f32 %v410_v6 }
 0x828   :  { %v4189_v7 = vpop.eup %4188 }
 0x829   :  { %v4191_v9 = vpop.eup %4190  ;;  %405 = vrot.lane.b32.xlu0 %v4189_v7, %s4366_s17 }
 0x82a   :  { %413 = vrot.lane.b32.xlu1 %v4191_v9, %s4366_s17 }
 0x89b   :  { %v406_v10 = vpop.permute.xlu0 %405 }
 0x89c   :  { %v408_v11 = vmul.f32 %v4187_v59, %v406_v10  ;;  %v414_v13 = vpop.permute.xlu1 %413 }
 0x89d   :  { %v416_v14 = vmul.f32 %v4187_v59, %v414_v13 }
 0x89e   :  { %423 = vrot.lane.b32.xlu0 %v408_v11, %s4368_s19  ;;  %419 = vrot.lane.b32.xlu1 %v408_v11, %s4366_s17 }
 0x910   :  { %v424_v16 = vpop.permute.xlu0 %423  ;;  %v420_v17 = vpop.permute.xlu1 %419 }
 0x911   :  { %426 = vst.msk [vmem:[#allocation2 + $0x4] sm:$0xf] %vm172_vm0, %v424_v16 }
 0x912   :  { %422 = vst.msk [vmem:[#allocation2] sm:$0xf] %vm170_vm4, %v420_v17 }
 0x913   :  { %427 = vst.msk [vmem:[#allocation2] sm:$0xf0] %vm340_vm7, %v416_v14 }
 0x91a   :  { %v428_v19 = vld [vmem:[#allocation2] sm:$0xff] }
 0x91b   :  { %v429_v20 = vpack.c.bf16 %v428_v19, %v428_v19 }
 0x91d   :  { %3698 = vmatmul.mubr.bf16.vlgmr.msra.gmra.mxu1 %v429_v20 }
 0x91e   :  { %3722 = vmatpush3.bf16.msra.mxu1 %v4397_v5  ;;  %3737 = vmatprep.mubr.msk.bf16.mxu1 %vm4365_vm2, %v4363_v1 }
 0x91f   :  { %3723 = vmatprep.subr.bf16.mxu1 %v4363_v1 }
 0x922   :  { %3724 = vmatpush3.bf16.msra.mxu1 %v4400_v8 }
 0x923   :  { %3725 = vmatprep.subr.bf16.mxu1 %v4363_v1 }
 0x926   :  { %3726 = vmatpush3.bf16.msra.mxu1 %v4406_v12 }
 0x927   :  { %3727 = vmatprep.subr.bf16.mxu1 %v4363_v1 }
 0x92a   :  { %3728 = vmatpush3.bf16.msra.mxu1 %v4412_v15 }
 0x92b   :  { %3729 = vmatprep.subr.bf16.mxu1 %v4363_v1 }
 0x92e   :  { %3730 = vmatpush3.bf16.msra.mxu1 %v4418_v18 }
 0x92f   :  { %3731 = vmatprep.subr.bf16.mxu1 %v4363_v1 }
 0x932   :  { %3732 = vmatpush3.bf16.msra.mxu1 %v4424_v21 }
 0x933   :  { %3733 = vmatprep.subr.bf16.mxu1 %v4363_v1 }
 0x936   :  { %3734 = vmatpush3.bf16.msra.mxu1 %v4434_v24 }
 0x937   :  { %3735 = vmatprep.subr.bf16.mxu1 %v4363_v1 }
 0x93a   :  { %3736 = vmatpush3.bf16.msra.mxu1 %v4440_v27 }
 0x93b   :  { %3761 = vmatprep.subr.bf16.mxu1 %v4363_v1 }
 0x9dd   :  { %v464_v22 = vpop.f32.mrf.mxu1 }
 0x9de   :  { %v465_v23 = vadd.f32 %v464_v22, %v4480_v42 }
 0x9df   :  { %v3699_v25 = vpop.f32.mrf.mxu1 }
 0x9e0   :  { %v3317_v26 = vmul.f32 -1.442695, %v465_v23 }
 0x9e1   :  { %v467_v28 = vpop.f32.mrf.mxu1 }
 0x9e2   :  { %4192 = vpow2.f32 %v3317_v26 }
 0x9e3   :  { %v3700_v31 = vpop.f32.mrf.mxu1 }
 0x9ef   :  { %v4193_v32 = vpop.eup %4192 }
 0x9f0   :  { %v473_v33 = vadd.f32 1.0, %v4193_v32 }
 0x9f2   :  { %4194 = vrcp.f32 %v473_v33 }
 0x9ff   :  { %v4195_v35 = vpop.eup %4194 }
 0xa00   :  { %v476_v36 = vmul.f32 2.0, %v4195_v35  ;;  %v478_v41 = vmul.f32 %v4195_v35, %v402_v4  ;;  %v495_v43 = vmul.f32 %v4195_v35, %v410_v6 }
 0xa02   :  { %v3318_v37 = vadd.f32 -1.0, %v476_v36 }
 0xa04   :  { %480 = vrot.lane.b32.xlu0 %v3318_v37, %s4366_s17 }
 0xa76   :  { %v481_v38 = vpop.permute.xlu0 %480 }
 0xa77   :  { %v483_v39 = vmul.f32 %v4195_v35, %v481_v38 }
 0xa79   :  { %485 = vrot.lane.b32.xlu1 %v483_v39, %s4367_s18 }
 0xa7d   :  { %123 = vperm.xlu1 %4169, %v94_v40  }
 0xaeb   :  { %v486_v44 = vpop.permute.xlu1 %485 }
 0xaec   :  { %v4588_v45 = vadd.f32 %v486_v44, %v478_v41  ;;  %v4590_v46 = vadd.f32 %v495_v43, %v486_v44 }
 0xaee   :  { %4196 = vtanh.f32 %v4588_v45 }
 0xaef   :  { %4198 = vtanh.f32 %v4590_v46 }
 0xaf8   :  { %v124_v51 = vpop.permute.xlu1 %123 }
 0xaf9   :  { %v133_v53 = vmul.f32 %v4449_v29, %v124_v51 }
 0xafb   :  { %v4197_v47 = vpop.eup %4196 }
 0xafc   :  { %v4199_v48 = vpop.eup %4198  ;;  %491 = vrot.lane.b32.xlu0 %v4197_v47, %s4366_s17 }
 0xafd   :  { %499 = vrot.lane.b32.xlu1 %v4199_v48, %s4366_s17 }
 0xb00   :  { %144 = vperm.xlu0 %4168, %v94_v40  }
 0xb6e   :  { %v492_v49 = vpop.permute.xlu0 %491 }
 0xb6f   :  { %v494_v50 = vmul.f32 %v4195_v35, %v492_v49  ;;  %v500_v58 = vpop.permute.xlu1 %499 }
 0xb70   :  { %v502_v59 = vmul.f32 %v4195_v35, %v500_v58 }
 0xb71   :  { %509 = vrot.lane.b32.xlu0 %v494_v50, %s4368_s19  ;;  %505 = vrot.lane.b32.xlu1 %v494_v50, %s4366_s17 }
 0xb7b   :  { %v145_v52 = vpop.permute.xlu0 %144 }
 0xb7c   :  { %v153_v54 = vmul.f32 %v4451_v30, %v145_v52 }
 0xb7e   :  { %v157_v55 = vadd.f32 %v153_v54, %v133_v53  ;;  %v95_v54 = vld [vmem:[%s5377_s0 + $0x18] sm:$0xff] }
 0xb80   :  { %v161_v56 = vadd.f32 %v4455_v34, %v157_v55 }
 0xb82   :  { %v165_v57 = vmax.f32 %v161_v56, 0.0 }
 0xb84   :  { %503 = vst.msk [vmem:[#allocation2] sm:$0xf] %vm168_vm3, %v165_v57 }
 0xbe3   :  { %v510_v60 = vpop.permute.xlu0 %509  ;;  %v506_v61 = vpop.permute.xlu1 %505 }
 0xbe4   :  { %512 = vst.msk [vmem:[#allocation2 + $0x4] sm:$0xf] %vm172_vm0, %v510_v60 }
 0xbe5   :  { %508 = vst.msk [vmem:[#allocation2] sm:$0xf] %vm170_vm4, %v506_v61 }
 0xbe6   :  { %513 = vst.msk [vmem:[#allocation2] sm:$0xf0] %vm340_vm7, %v502_v59 }
 0xbed   :  { %v514_v62 = vld [vmem:[#allocation2] sm:$0xff] }
 0xbee   :  { %589 = vst.msk [vmem:[#allocation2 - $0x4] sm:$0xf0] %vm243_vm5, %v165_v57  ;;  %v515_v63 = vpack.c.bf16 %v514_v62, %v514_v62 }
 0xbf0   :  { %3718 = vmatmul.mubr.bf16.vlgmr.msra.gmra.mxu0 %v515_v63 }
 0xbf1   :  { %3742 = vmatpush3.bf16.msra.mxu0 %v4397_v5  ;;  %3757 = vmatprep.mubr.msk.bf16.mxu0 %vm4365_vm2, %v4363_v1 }
 0xbf2   :  { %3743 = vmatprep.subr.bf16.mxu0 %v4363_v1 }
 0xbf5   :  { %3744 = vmatpush3.bf16.msra.mxu0 %v4400_v8 }
 0xbf6   :  { %3745 = vmatprep.subr.bf16.mxu0 %v4363_v1 }
 0xbf9   :  { %3746 = vmatpush3.bf16.msra.mxu0 %v4406_v12 }
 0xbfa   :  { %3747 = vmatprep.subr.bf16.mxu0 %v4363_v1 }
 0xbfd   :  { %3748 = vmatpush3.bf16.msra.mxu0 %v4412_v15 }
 0xbfe   :  { %3749 = vmatprep.subr.bf16.mxu0 %v4363_v1 }
 0xc01   :  { %3750 = vmatpush3.bf16.msra.mxu0 %v4418_v18 }
 0xc02   :  { %3751 = vmatprep.subr.bf16.mxu0 %v4363_v1 }
 0xc05   :  { %3752 = vmatpush3.bf16.msra.mxu0 %v4424_v21 }
 0xc06   :  { %3753 = vmatprep.subr.bf16.mxu0 %v4363_v1 }
 0xc09   :  { %3754 = vmatpush3.bf16.msra.mxu0 %v4434_v24 }
 0xc0a   :  { %3755 = vmatprep.subr.bf16.mxu0 %v4363_v1 }
 0xc0d   :  { %3756 = vmatpush3.bf16.msra.mxu0 %v4440_v27 }
 0xc0e   :  { %3781 = vmatprep.subr.bf16.mxu0 %v4363_v1 }
 0xcb0   :  { %v550_v0 = vpop.f32.mrf.mxu0 }
 0xcb1   :  { %v551_v2 = vadd.f32 %v550_v0, %v4480_v42 }
 0xcb2   :  { %v3719_v3 = vpop.f32.mrf.mxu0 }
 0xcb3   :  { %v3319_v4 = vmul.f32 -1.442695, %v551_v2 }
 0xcb4   :  { %v553_v6 = vpop.f32.mrf.mxu0 }
 0xcb5   :  { %4200 = vpow2.f32 %v3319_v4 }
 0xcb6   :  { %v3720_v7 = vpop.f32.mrf.mxu0 }
 0xcc2   :  { %v4201_v9 = vpop.eup %4200 }
 0xcc3   :  { %v559_v10 = vadd.f32 1.0, %v4201_v9 }
 0xcc5   :  { %4202 = vrcp.f32 %v559_v10 }
 0xcd2   :  { %v4203_v11 = vpop.eup %4202 }
 0xcd3   :  { %v562_v13 = vmul.f32 2.0, %v4203_v11  ;;  %v564_v19 = vmul.f32 %v4203_v11, %v4588_v45  ;;  %v581_v20 = vmul.f32 %v4203_v11, %v4590_v46 }
 0xcd5   :  { %v3320_v14 = vadd.f32 -1.0, %v562_v13 }
 0xcd7   :  { %566 = vrot.lane.b32.xlu0 %v3320_v14, %s4366_s17 }
 0xd49   :  { %v567_v16 = vpop.permute.xlu0 %566 }
 0xd4a   :  { %v569_v17 = vmul.f32 %v4203_v11, %v567_v16 }
 0xd4c   :  { %571 = vrot.lane.b32.xlu1 %v569_v17, %s4367_s18 }
 0xdbe   :  { %v572_v22 = vpop.permute.xlu1 %571 }
 0xdbf   :  { %v574_v23 = vadd.f32 %v572_v22, %v564_v19  ;;  %v582_v25 = vadd.f32 %v581_v20, %v572_v22 }
 0xdc1   :  { %4204 = vtanh.f32 %v574_v23 }
 0xdc2   :  { %4206 = vtanh.f32 %v582_v25 }
 0xdce   :  { %v4205_v26 = vpop.eup %4204 }
 0xdcf   :  { %v4207_v28 = vpop.eup %4206  ;;  %577 = vrot.lane.b32.xlu0 %v4205_v26, %s4366_s17 }
 0xdd0   :  { %585 = vrot.lane.b32.xlu1 %v4207_v28, %s4366_s17 }
 0xe41   :  { %v578_v31 = vpop.permute.xlu0 %577 }
 0xe42   :  { %v580_v32 = vmul.f32 %v4203_v11, %v578_v31  ;;  %v586_v33 = vpop.permute.xlu1 %585 }
 0xe43   :  { %v588_v35 = vmul.f32 %v4203_v11, %v586_v33 }
 0xe44   :  { %595 = vrot.lane.b32.xlu0 %v580_v32, %s4368_s19  ;;  %591 = vrot.lane.b32.xlu1 %v580_v32, %s4366_s17 }
 0xeb6   :  { %v596_v36 = vpop.permute.xlu0 %595  ;;  %v592_v37 = vpop.permute.xlu1 %591 }
 0xeb7   :  { %598 = vst.msk [vmem:[#allocation2 + $0x4] sm:$0xf] %vm172_vm0, %v596_v36 }
 0xeb8   :  { %594 = vst.msk [vmem:[#allocation2] sm:$0xf] %vm170_vm4, %v592_v37 }
 0xeb9   :  { %599 = vst.msk [vmem:[#allocation2] sm:$0xf0] %vm340_vm7, %v588_v35 }
 0xec0   :  { %v600_v38 = vld [vmem:[#allocation2] sm:$0xff] }
 0xec1   :  { %v601_v39 = vpack.c.bf16 %v600_v38, %v600_v38 }
 0xec3   :  { %3738 = vmatmul.mubr.bf16.vlgmr.msra.gmra.mxu1 %v601_v39 }
 0xec4   :  { %3762 = vmatpush3.bf16.msra.mxu1 %v4397_v5  ;;  %3777 = vmatprep.mubr.msk.bf16.mxu1 %vm4365_vm2, %v4363_v1 }
 0xec5   :  { %3763 = vmatprep.subr.bf16.mxu1 %v4363_v1 }
 0xec8   :  { %3764 = vmatpush3.bf16.msra.mxu1 %v4400_v8 }
 0xec9   :  { %3765 = vmatprep.subr.bf16.mxu1 %v4363_v1 }
 0xecc   :  { %3766 = vmatpush3.bf16.msra.mxu1 %v4406_v12 }
 0xecd   :  { %3767 = vmatprep.subr.bf16.mxu1 %v4363_v1 }
 0xed0   :  { %3768 = vmatpush3.bf16.msra.mxu1 %v4412_v15 }
 0xed1   :  { %3769 = vmatprep.subr.bf16.mxu1 %v4363_v1 }
 0xed4   :  { %3770 = vmatpush3.bf16.msra.mxu1 %v4418_v18 }
 0xed5   :  { %3771 = vmatprep.subr.bf16.mxu1 %v4363_v1 }
 0xed8   :  { %3772 = vmatpush3.bf16.msra.mxu1 %v4424_v21 }
 0xed9   :  { %3773 = vmatprep.subr.bf16.mxu1 %v4363_v1 }
 0xedc   :  { %3774 = vmatpush3.bf16.msra.mxu1 %v4434_v24 }
 0xedd   :  { %3775 = vmatprep.subr.bf16.mxu1 %v4363_v1 }
 0xee0   :  { %3776 = vmatpush3.bf16.msra.mxu1 %v4440_v27 }
 0xee1   :  { %3801 = vmatprep.subr.bf16.mxu1 %v4363_v1 }
 0xf83   :  { %v636_v40 = vpop.f32.mrf.mxu1 }
 0xf84   :  { %v637_v41 = vadd.f32 %v636_v40, %v4480_v42 }
 0xf85   :  { %v3739_v43 = vpop.f32.mrf.mxu1 }
 0xf86   :  { %v3321_v44 = vmul.f32 -1.442695, %v637_v41 }
 0xf87   :  { %v639_v45 = vpop.f32.mrf.mxu1 }
 0xf88   :  { %4208 = vpow2.f32 %v3321_v44 }
 0xf89   :  { %v3740_v46 = vpop.f32.mrf.mxu1 }
 0xf95   :  { %v4209_v47 = vpop.eup %4208 }
 0xf96   :  { %v645_v48 = vadd.f32 1.0, %v4209_v47 }
 0xf98   :  { %4210 = vrcp.f32 %v645_v48 }
 0xfa5   :  { %v4211_v49 = vpop.eup %4210 }
 0xfa6   :  { %v648_v50 = vmul.f32 2.0, %v4211_v49  ;;  %v650_v55 = vmul.f32 %v4211_v49, %v574_v23  ;;  %v667_v56 = vmul.f32 %v4211_v49, %v582_v25 }
 0xfa8   :  { %v3322_v51 = vadd.f32 -1.0, %v648_v50 }
 0xfaa   :  { %652 = vrot.lane.b32.xlu0 %v3322_v51, %s4366_s17 }
0x101c   :  { %v653_v52 = vpop.permute.xlu0 %652 }
0x101d   :  { %v655_v53 = vmul.f32 %v4211_v49, %v653_v52 }
0x101f   :  { %657 = vrot.lane.b32.xlu1 %v655_v53, %s4367_s18 }
0x1023   :  { %128 = vperm.xlu1 %4169, %v95_v54  }
0x1091   :  { %v658_v57 = vpop.permute.xlu1 %657 }
0x1092   :  { %v4660_v58 = vadd.f32 %v658_v57, %v650_v55  ;;  %v4662_v59 = vadd.f32 %v667_v56, %v658_v57 }
0x1094   :  { %4212 = vtanh.f32 %v4660_v58 }
0x1095   :  { %4214 = vtanh.f32 %v4662_v59 }
0x109e   :  { %v129_v0 = vpop.permute.xlu1 %128 }
0x109f   :  { %v134_v3 = vmul.f32 %v4449_v29, %v129_v0 }
0x10a1   :  { %v4213_v60 = vpop.eup %4212 }
0x10a2   :  { %v4215_v61 = vpop.eup %4214  ;;  %663 = vrot.lane.b32.xlu0 %v4213_v60, %s4366_s17 }
0x10a3   :  { %671 = vrot.lane.b32.xlu1 %v4215_v61, %s4366_s17 }
0x10a6   :  { %148 = vperm.xlu0 %4168, %v95_v54  }
0x1114   :  { %v664_v62 = vpop.permute.xlu0 %663 }
0x1115   :  { %v666_v63 = vmul.f32 %v4211_v49, %v664_v62  ;;  %v672_v10 = vpop.permute.xlu1 %671 }
0x1116   :  { %v674_v11 = vmul.f32 %v4211_v49, %v672_v10 }
0x1117   :  { %681 = vrot.lane.b32.xlu0 %v666_v63, %s4368_s19  ;;  %677 = vrot.lane.b32.xlu1 %v666_v63, %s4366_s17 }
0x1121   :  { %v149_v2 = vpop.permute.xlu0 %148 }
0x1122   :  { %v154_v4 = vmul.f32 %v4451_v30, %v149_v2 }
0x1124   :  { %v158_v6 = vadd.f32 %v154_v4, %v134_v3 }
0x1126   :  { %v4673_v7 = vadd.f32 %v4455_v34, %v158_v6 }
0x1128   :  { %v4676_v9 = vmax.f32 %v4673_v7, 0.0 }
0x112a   :  { %675 = vst.msk [vmem:[#allocation2] sm:$0xf] %vm168_vm3, %v4676_v9 }
0x1189   :  { %v682_v13 = vpop.permute.xlu0 %681  ;;  %v678_v14 = vpop.permute.xlu1 %677 }
0x118a   :  { %684 = vst.msk [vmem:[#allocation2 + $0x4] sm:$0xf] %vm172_vm0, %v682_v13 }
0x118b   :  { %680 = vst.msk [vmem:[#allocation2] sm:$0xf] %vm170_vm4, %v678_v14 }
0x118c   :  { %685 = vst.msk [vmem:[#allocation2] sm:$0xf0] %vm340_vm7, %v674_v11 }
0x1193   :  { %v686_v29 = vld [vmem:[#allocation2] sm:$0xff] }
0x1194   :  { %761 = vst.msk [vmem:[#allocation2 - $0x4] sm:$0xf0] %vm243_vm5, %v4676_v9  ;;  %v687_v30 = vpack.c.bf16 %v686_v29, %v686_v29 }
0x1196   :  { %3758 = vmatmul.mubr.bf16.vlgmr.msra.gmra.mxu0 %v687_v30 }
0x1197   :  { %3782 = vmatpush3.bf16.msra.mxu0 %v4397_v5  ;;  %3797 = vmatprep.mubr.msk.bf16.mxu0 %vm4365_vm2, %v4363_v1 }
0x1198   :  { %3783 = vmatprep.subr.bf16.mxu0 %v4363_v1 }
0x119b   :  { %3784 = vmatpush3.bf16.msra.mxu0 %v4400_v8 }
0x119c   :  { %3785 = vmatprep.subr.bf16.mxu0 %v4363_v1 }
0x119f   :  { %3786 = vmatpush3.bf16.msra.mxu0 %v4406_v12 }
0x11a0   :  { %3787 = vmatprep.subr.bf16.mxu0 %v4363_v1 }
0x11a3   :  { %3788 = vmatpush3.bf16.msra.mxu0 %v4412_v15 }
0x11a4   :  { %3789 = vmatprep.subr.bf16.mxu0 %v4363_v1 }
0x11a7   :  { %3790 = vmatpush3.bf16.msra.mxu0 %v4418_v18 }
0x11a8   :  { %3791 = vmatprep.subr.bf16.mxu0 %v4363_v1 }
0x11ab   :  { %3792 = vmatpush3.bf16.msra.mxu0 %v4424_v21 }
0x11ac   :  { %3793 = vmatprep.subr.bf16.mxu0 %v4363_v1 }
0x11af   :  { %3794 = vmatpush3.bf16.msra.mxu0 %v4434_v24 }
0x11b0   :  { %3795 = vmatprep.subr.bf16.mxu0 %v4363_v1 }
0x11b3   :  { %3796 = vmatpush3.bf16.msra.mxu0 %v4440_v27 }
0x11b4   :  { %3829 = vmatprep.subr.bf16.mxu0 %v4363_v1 }
0x1256   :  { %v722_v34 = vpop.f32.mrf.mxu0 }
0x1257   :  { %v723_v16 = vadd.f32 %v722_v34, %v4480_v42 }
0x1258   :  { %v3759_v17 = vpop.f32.mrf.mxu0 }
0x1259   :  { %v3323_v19 = vmul.f32 -1.442695, %v723_v16 }
0x125a   :  { %v725_v20 = vpop.f32.mrf.mxu0 }
0x125b   :  { %4216 = vpow2.f32 %v3323_v19 }
0x125c   :  { %v3760_v22 = vpop.f32.mrf.mxu0 }
0x1268   :  { %v4217_v23 = vpop.eup %4216 }
0x1269   :  { %v731_v25 = vadd.f32 1.0, %v4217_v23 }
0x126b   :  { %4218 = vrcp.f32 %v731_v25 }
0x1278   :  { %v4219_v26 = vpop.eup %4218 }
0x1279   :  { %v734_v28 = vmul.f32 2.0, %v4219_v26  ;;  %v736_v35 = vmul.f32 %v4219_v26, %v4660_v58  ;;  %v753_v36 = vmul.f32 %v4219_v26, %v4662_v59 }
0x127b   :  { %v3324_v31 = vadd.f32 -1.0, %v734_v28 }
0x127d   :  { %738 = vrot.lane.b32.xlu0 %v3324_v31, %s4366_s17 }
0x12ef   :  { %v739_v32 = vpop.permute.xlu0 %738 }
0x12f0   :  { %v741_v33 = vmul.f32 %v4219_v26, %v739_v32 }
0x12f2   :  { %743 = vrot.lane.b32.xlu1 %v741_v33, %s4367_s18 }
0x1364   :  { %v744_v37 = vpop.permute.xlu1 %743 }
0x1365   :  { %v746_v38 = vadd.f32 %v744_v37, %v736_v35  ;;  %v754_v39 = vadd.f32 %v753_v36, %v744_v37 }
0x1367   :  { %4220 = vtanh.f32 %v746_v38 }
0x1368   :  { %4222 = vtanh.f32 %v754_v39 }
0x1374   :  { %v4221_v40 = vpop.eup %4220 }
0x1375   :  { %v4223_v41 = vpop.eup %4222  ;;  %749 = vrot.lane.b32.xlu0 %v4221_v40, %s4366_s17 }
0x1376   :  { %757 = vrot.lane.b32.xlu1 %v4223_v41, %s4366_s17 }
0x13e7   :  { %v750_v43 = vpop.permute.xlu0 %749 }
0x13e8   :  { %v752_v44 = vmul.f32 %v4219_v26, %v750_v43  ;;  %v758_v45 = vpop.permute.xlu1 %757 }
0x13e9   :  { %v760_v46 = vmul.f32 %v4219_v26, %v758_v45 }
0x13ea   :  { %767 = vrot.lane.b32.xlu0 %v752_v44, %s4368_s19  ;;  %763 = vrot.lane.b32.xlu1 %v752_v44, %s4366_s17 }
0x145c   :  { %v768_v47 = vpop.permute.xlu0 %767  ;;  %v764_v48 = vpop.permute.xlu1 %763 }
0x145d   :  { %770 = vst.msk [vmem:[#allocation2 + $0x4] sm:$0xf] %vm172_vm0, %v768_v47 }
0x145e   :  { %766 = vst.msk [vmem:[#allocation2] sm:$0xf] %vm170_vm4, %v764_v48 }
0x145f   :  { %771 = vst.msk [vmem:[#allocation2] sm:$0xf0] %vm340_vm7, %v760_v46 }
0x1466   :  { %v772_v49 = vld [vmem:[#allocation2] sm:$0xff] }
0x1467   :  { %847 = vst.msk [vmem:[#allocation2 - $0x4] sm:$0xf0] %vm243_vm5, %v4676_v9  ;;  %v773_v50 = vpack.c.bf16 %v772_v49, %v772_v49 }
0x1469   :  { %3778 = vmatmul.mubr.bf16.vlgmr.msra.gmra.mxu1 %v773_v50 }
0x146a   :  { %3802 = vmatpush3.bf16.msra.mxu1 %v4397_v5  ;;  %3809 = vmatprep.mubr.msk.bf16.mxu1 %vm4365_vm2, %v4363_v1 }
0x146b   :  { %3803 = vmatprep.subr.bf16.mxu1 %v4363_v1 }
0x146e   :  { %3804 = vmatpush3.bf16.msra.mxu1 %v4400_v8 }
0x146f   :  { %3805 = vmatprep.subr.bf16.mxu1 %v4363_v1 }
0x1472   :  { %3806 = vmatpush3.bf16.msra.mxu1 %v4406_v12 }
0x1473   :  { %3807 = vmatprep.subr.bf16.mxu1 %v4363_v1 }
0x1476   :  { %3808 = vmatpush3.bf16.msra.mxu1 %v4412_v15 }
0x1477   :  { %3813 = vmatprep.subr.bf16.mxu1 %v4363_v1 }
0x1529   :  { %v808_v51 = vpop.f32.mrf.mxu1 }
0x152a   :  { %v809_v52 = vadd.f32 %v808_v51, %v4480_v42 }
0x152b   :  { %v3779_v53 = vpop.f32.mrf.mxu1 }
0x152c   :  { %v3325_v54 = vmul.f32 -1.442695, %v809_v52 }
0x152d   :  { %v811_v55 = vpop.f32.mrf.mxu1 }
0x152e   :  { %4224 = vpow2.f32 %v3325_v54  ;;  %v4754_v54 = vld [vmem:[#allocation4 + $0x89] ss:$0 sm:$0xff] }
0x152f   :  { %v3780_v56 = vpop.f32.mrf.mxu1 }
0x153b   :  { %v4225_v57 = vpop.eup %4224 }
0x153c   :  { %v817_v58 = vadd.f32 1.0, %v4225_v57 }
0x153e   :  { %4226 = vrcp.f32 %v817_v58 }
0x154b   :  { %v4227_v59 = vpop.eup %4226 }
0x154c   :  { %v820_v60 = vmul.f32 2.0, %v4227_v59  ;;  %v822_v0 = vmul.f32 %v4227_v59, %v746_v38  ;;  %v839_v2 = vmul.f32 %v4227_v59, %v754_v39 }
0x154e   :  { %v3326_v61 = vadd.f32 -1.0, %v820_v60 }
0x1550   :  { %824 = vrot.lane.b32.xlu0 %v3326_v61, %s4366_s17 }
0x15c2   :  { %v825_v62 = vpop.permute.xlu0 %824 }
0x15c3   :  { %v827_v63 = vmul.f32 %v4227_v59, %v825_v62 }
0x15c5   :  { %829 = vrot.lane.b32.xlu1 %v827_v63, %s4367_s18 }
0x1637   :  { %v830_v3 = vpop.permute.xlu1 %829 }
0x1638   :  { %v832_v4 = vadd.f32 %v830_v3, %v822_v0  ;;  %v840_v6 = vadd.f32 %v839_v2, %v830_v3 }
0x163a   :  { %4228 = vtanh.f32 %v832_v4 }
0x163b   :  { %4230 = vtanh.f32 %v840_v6 }
0x1647   :  { %v4229_v9 = vpop.eup %4228 }
0x1648   :  { %v4231_v10 = vpop.eup %4230  ;;  %835 = vrot.lane.b32.xlu0 %v4229_v9, %s4366_s17 }
0x1649   :  { %843 = vrot.lane.b32.xlu1 %v4231_v10, %s4366_s17 }
0x16ba   :  { %v836_v11 = vpop.permute.xlu0 %835 }
0x16bb   :  { %v838_v13 = vmul.f32 %v4227_v59, %v836_v11  ;;  %v844_v14 = vpop.permute.xlu1 %843  ;;  %v64_v11 = vld [vmem:[#allocation4 + $0xa0] sm:$0xff] }
0x16bc   :  { %v846_v29 = vmul.f32 %v4227_v59, %v844_v14  ;;  %v62_v14 = vld [vmem:[#allocation4 + $0x90] sm:$0xff] }
0x16bd   :  { %853 = vrot.lane.b32.xlu0 %v838_v13, %s4368_s19  ;;  %849 = vrot.lane.b32.xlu1 %v838_v13, %s4366_s17  ;;  %v65_v13 = vld [vmem:[#allocation4 + $0xa8] sm:$0xff] }
0x172f   :  { %v854_v30 = vpop.permute.xlu0 %853  ;;  %v850_v34 = vpop.permute.xlu1 %849 }
0x1730   :  { %856 = vst.msk [vmem:[#allocation2 + $0x4] sm:$0xf] %vm172_vm0, %v854_v30  ;;  %v63_v30 = vld [vmem:[#allocation4 + $0x98] sm:$0xff] }
0x1731   :  { %852 = vst.msk [vmem:[#allocation2] sm:$0xf] %vm170_vm4, %v850_v34  ;;  %v4765_v34 = vpack.c.bf16 %v63_v30, %v62_v14 }
0x1732   :  { %857 = vst.msk [vmem:[#allocation2] sm:$0xf0] %vm340_vm7, %v846_v29  ;;  %v4762_v29 = vpack.c.bf16 %v65_v13, %v64_v11 }
0x1739   :  { %v858_v16 = vld [vmem:[#allocation2] sm:$0xff] }
0x173a   :  { %v859_v17 = vpack.c.bf16 %v858_v16, %v858_v16 }
0x173c   :  { %3798 = vmatmul.mubr.bf16.vlgmr.msra.gmra.mxu0 %v859_v17 }
0x173d   :  { %3831 = vmatprep.mubr.msk.bf16.mxu0 %vm4365_vm2, %v4363_v1 }
0x17fc   :  { %v894_v19 = vpop.f32.mrf.mxu0 }
0x17fd   :  { %v895_v20 = vadd.f32 %v894_v19, %v4480_v42 }
0x17fe   :  { %v3799_v22 = vpop.f32.mrf.mxu0 }
0x17ff   :  { %v3327_v23 = vmul.f32 -1.442695, %v895_v20  ;;  %v75_v22 = vld [vmem:[#allocation4 + $0xc8] sm:$0xff] }
0x1800   :  { %v897_v25 = vpop.f32.mrf.mxu0 }
0x1801   :  { %4232 = vpow2.f32 %v3327_v23  ;;  %v76_v23 = vld [vmem:[#allocation4 + $0xd0] sm:$0xff] }
0x1802   :  { %v3800_v26 = vpop.f32.mrf.mxu0  ;;  %v4777_v25 = vpack.c.bf16 %v76_v23, %v75_v22 }
0x180e   :  { %v4233_v28 = vpop.eup %4232 }
0x180f   :  { %v903_v31 = vadd.f32 1.0, %v4233_v28  ;;  %v73_v28 = vld [vmem:[#allocation4 + $0xb8] sm:$0xff] }
0x1811   :  { %4234 = vrcp.f32 %v903_v31  ;;  %v74_v31 = vld [vmem:[#allocation4 + $0xc0] sm:$0xff] }
0x181e   :  { %v4235_v32 = vpop.eup %4234 }
0x181f   :  { %v906_v33 = vmul.f32 2.0, %v4235_v32  ;;  %v908_v38 = vmul.f32 %v4235_v32, %v832_v4  ;;  %v925_v39 = vmul.f32 %v4235_v32, %v840_v6 }
0x1821   :  { %v3328_v35 = vadd.f32 -1.0, %v906_v33  ;;  %v84_v33 = vld [vmem:[#allocation4 + $0xe0] sm:$0xff] }
0x1823   :  { %910 = vrot.lane.b32.xlu0 %v3328_v35, %s4366_s17  ;;  %v85_v35 = vld [vmem:[#allocation4 + $0xe8] sm:$0xff] }
0x1895   :  { %v911_v36 = vpop.permute.xlu0 %910 }
0x1896   :  { %v913_v37 = vmul.f32 %v4235_v32, %v911_v36  ;;  %v4788_v36 = vpack.c.bf16 %v85_v35, %v84_v33 }
0x1898   :  { %915 = vrot.lane.b32.xlu1 %v913_v37, %s4367_s18  ;;  %3830 = vmatpush3.bf16.msra.mxu0 %v4788_v36  ;;  %v4792_v37 = vld [vmem:[#allocation4 + $0xb0] ss:$0 sm:$0xff] }
0x1899   :  { %3847 = vmatprep.subr.bf16.mxu0 %v4363_v1 }
0x190a   :  { %v916_v42 = vpop.permute.xlu1 %915 }
0x190b   :  { %v4742_v40 = vadd.f32 %v916_v42, %v908_v38  ;;  %v926_v41 = vadd.f32 %v925_v39, %v916_v42 }
0x190d   :  { %4236 = vtanh.f32 %v4742_v40  ;;  %v997_v4 = vrot.slane %v926_v41, 4 }
0x190e   :  { %4238 = vtanh.f32 %v926_v41 }
0x191a   :  { %v4237_v43 = vpop.eup %4236 }
0x191b   :  { %v4239_v44 = vpop.eup %4238  ;;  %921 = vrot.lane.b32.xlu0 %v4237_v43, %s4366_s17 }
0x191c   :  { %929 = vrot.lane.b32.xlu1 %v4239_v44, %s4366_s17 }
0x198d   :  { %v922_v45 = vpop.permute.xlu0 %921 }
0x198e   :  { %v924_v46 = vmul.f32 %v4235_v32, %v922_v45  ;;  %v930_v47 = vpop.permute.xlu1 %929 }
0x198f   :  { %v932_v48 = vmul.f32 %v4235_v32, %v930_v47  ;;  %v4784_v32 = vpack.c.bf16 %v74_v31, %v73_v28 }
0x1990   :  { %934 = vrot.lane.b32.xlu0 %v924_v46, %s4368_s19 }
0x1a02   :  { %v935_v49 = vpop.permute.xlu0 %934 }
0x1a03   :  { %937 = vst.msk [vmem:[#allocation2 + $0x4] sm:$0xf] %vm172_vm0, %v935_v49 }
0x1a04   :  { %938 = vst.msk [vmem:[#allocation2] sm:$0xf0] %vm340_vm7, %v932_v48 }
0x1a0b   :  { %v939_v50 = vld [vmem:[#allocation2 + $0x4] sm:$0xf] }
0x1a0c   :  { %v940_v51 = vpack.c.bf16 %v939_v50, %v939_v50 }
0x1a0e   :  { %942 = vrot.lane.b32.xlu1 %v940_v51, %s4366_s17 }
0x1a80   :  { %v943_v52 = vpop.permute.xlu1 %942 }
0x1a81   :  { %3810 = vmatmul.mubr.msk.bf16.vlgmr.msra.gmra.mxu1 %vm944_vm8, %v943_v52 }
0x1a82   :  { %3817 = vmatprep.mubr.msk.bf16.mxu1 %vm4365_vm2, %v4363_v1  ;;  %3814 = vmatpush3.bf16.msra.mxu1 %v4762_v29 }
0x1a83   :  { %3815 = vmatprep.subr.bf16.mxu1 %v4363_v1 }
0x1a86   :  { %3816 = vmatpush3.bf16.msra.mxu1 %v4765_v34 }
0x1a87   :  { %3821 = vmatprep.subr.bf16.mxu1 %v4363_v1 }
0x1b41   :  { %v982_v53 = vpop.f32.mrf.mxu1 }
0x1b42   :  { %v983_v55 = vadd.f32 %v4754_v54, %v982_v53 }
0x1b43   :  { %v3811_v56 = vpop.f32.mrf.mxu1 }
0x1b44   :  { %v3330_v57 = vmul.f32 -1.442695, %v983_v55 }
0x1b45   :  { %v985_v58 = vpop.f32.mrf.mxu1 }
0x1b46   :  { %4240 = vpow2.f32 %v3330_v57  ;;  %v4821_v57 = vld [vmem:[#allocation4 + $0x3] ss:$0 sm:$0xff] }
0x1b47   :  { %v3812_v59 = vpop.f32.mrf.mxu1 }
0x1b53   :  { %v4241_v60 = vpop.eup %4240 }
0x1b54   :  { %v991_v61 = vadd.f32 1.0, %v4241_v60 }
0x1b56   :  { %4242 = vrcp.f32 %v991_v61 }
0x1b63   :  { %v4243_v62 = vpop.eup %4242 }
0x1b64   :  { %v994_v63 = vmul.f32 2.0, %v4243_v62  ;;  %v999_v6 = vmul.f32 %v4243_v62, %v997_v4  ;;  %v4837_v4 = vld [vmem:[#allocation4 + $0x88] ss:$0 sm:$0xff] }
0x1b66   :  { %v3331_v0 = vadd.f32 -1.0, %v994_v63 }
0x1b68   :  { %1001 = vrot.lane.b32.xlu0 %v3331_v0, %s4366_s17 }
0x1bda   :  { %v1002_v2 = vpop.permute.xlu0 %1001 }
0x1bdb   :  { %v1004_v3 = vmul.f32 %v4243_v62, %v1002_v2 }
0x1bdd   :  { %1006 = vrot.lane.b32.xlu1 %v1004_v3, %s4367_s18 }
0x1c4f   :  { %v1007_v9 = vpop.permute.xlu1 %1006 }
0x1c50   :  { %v4759_v10 = vadd.f32 %v1007_v9, %v999_v6 }
0x1c52   :  { %4244 = vtanh.f32 %v4759_v10 }
0x1c5f   :  { %v4245_v16 = vpop.eup %4244 }
0x1c60   :  { %1012 = vrot.lane.b32.xlu0 %v4245_v16, %s4366_s17 }
0x1c64   :  { %1164 = vrot.lane.b32.xlu0 %v924_v46, %s4366_s17  ;;  %v4806_v46 = vld [vmem:[#allocation4 + $0xd8] ss:$0 sm:$0xff] }
0x1cd2   :  { %v1013_v17 = vpop.permute.xlu0 %1012 }
0x1cd3   :  { %v4772_v19 = vmul.f32 %v4243_v62, %v1013_v17 }
0x1cd5   :  { %v1016_v20 = vpack.c.bf16 %v4772_v19, %v4772_v19 }
0x1cd6   :  { %v1165_v0 = vpop.permute.xlu0 %1164 }
0x1cd7   :  { %1018 = vrot.lane.b32.xlu1 %v1016_v20, %s4367_s18 }
0x1d49   :  { %v1019_v26 = vpop.permute.xlu1 %1018 }
0x1d4a   :  { %3818 = vmatmul.mubr.msk.bf16.vlgmr.msra.gmra.mxu1 %vm1020_vm9, %v1019_v26 }
0x1d4b   :  { %3822 = vmatpush3.bf16.msra.mxu1 %v4777_v25  ;;  %3825 = vmatprep.mubr.msk.bf16.mxu1 %vm4365_vm2, %v4363_v1 }
0x1d4c   :  { %3823 = vmatprep.subr.bf16.mxu1 %v4363_v1 }
0x1d4f   :  { %3824 = vmatpush3.bf16.msra.mxu1 %v4784_v32 }
0x1d50   :  { %3835 = vmatprep.subr.bf16.mxu1 %v4363_v1 }
0x1e0a   :  { %v1058_v38 = vpop.f32.mrf.mxu1 }
0x1e0b   :  { %v1059_v39 = vadd.f32 %v4792_v37, %v1058_v38 }
0x1e0c   :  { %v3819_v42 = vpop.f32.mrf.mxu1 }
0x1e0d   :  { %v1064_v41 = vmax.f32 %v1059_v39, 0.0 }
0x1e0e   :  { %v1061_v43 = vpop.f32.mrf.mxu1 }
0x1e0f   :  { %v1065_v44 = vpack.c.bf16 %v1064_v41, %v1064_v41 }
0x1e10   :  { %v3820_v45 = vpop.f32.mrf.mxu1 }
0x1e11   :  { %3826 = vmatmul.mubr.msk.bf16.vlgmr.msra.gmra.mxu1 %vm1020_vm9, %v1065_v44 }
0x1e12   :  { %3836 = vmatpush3.bf16.msra.mxu1 %v4418_v18  ;;  %3843 = vmatprep.mubr.msk.bf16.mxu1 %vm4365_vm2, %v4363_v1 }
0x1e13   :  { %3837 = vmatprep.subr.bf16.mxu1 %v4363_v1 }
0x1e16   :  { %3838 = vmatpush3.bf16.msra.mxu1 %v4424_v21 }
0x1e17   :  { %3839 = vmatprep.subr.bf16.mxu1 %v4363_v1 }
0x1e1a   :  { %3840 = vmatpush3.bf16.msra.mxu1 %v4434_v24 }
0x1e1b   :  { %3841 = vmatprep.subr.bf16.mxu1 %v4363_v1 }
0x1e1e   :  { %3842 = vmatpush3.bf16.msra.mxu1 %v4440_v27 }
0x1e1f   :  { %3859 = vmatprep.subr.bf16.mxu1 %v4363_v1 }
0x1ed1   :  { %v1103_v47 = vpop.f32.mrf.mxu1 }
0x1ed2   :  { %v1104_v48 = vadd.f32 %v4806_v46, %v1103_v47 }
0x1ed3   :  { %v3827_v49 = vpop.f32.mrf.mxu1 }
0x1ed4   :  { %v1109_v50 = vmax.f32 %v1104_v48, 0.0 }
0x1ed5   :  { %v1106_v51 = vpop.f32.mrf.mxu1 }
0x1ed6   :  { %1111 = vst.msk [vmem:[#allocation3] sm:$0xf] %vm1110_vm10, %v1109_v50  ;;  %v1112_v52 = vpack.c.bf16 %v1109_v50, %v1109_v50 }
0x1ed7   :  { %v3828_v53 = vpop.f32.mrf.mxu1 }
0x1ed8   :  { %3832 = vmatmul.mubr.msk.bf16.vlgmr.msra.gmra.mxu0 %vm1113_vm11, %v1112_v52 }
0x1ed9   :  { %3848 = vmatpush3.bf16.msra.mxu0 %v4397_v5  ;;  %3855 = vmatprep.mubr.msk.bf16.mxu0 %vm4365_vm2, %v4363_v1 }
0x1eda   :  { %3849 = vmatprep.subr.bf16.mxu0 %v4363_v1 }
0x1edd   :  { %3850 = vmatpush3.bf16.msra.mxu0 %v4400_v8 }
0x1ede   :  { %3851 = vmatprep.subr.bf16.mxu0 %v4363_v1 }
0x1ee1   :  { %3852 = vmatpush3.bf16.msra.mxu0 %v4406_v12 }
0x1ee2   :  { %3853 = vmatprep.subr.bf16.mxu0 %v4363_v1 }
0x1ee5   :  { %3854 = vmatpush3.bf16.msra.mxu0 %v4412_v15 }
0x1ee6   :  { %3867 = vmatprep.subr.bf16.mxu0 %v4363_v1 }
0x1f98   :  { %v1151_v55 = vpop.f32.mrf.mxu0 }
0x1f99   :  { %v1158_v56 = vrot.slane %v1151_v55, 4 }
0x1f9a   :  { %v3833_v58 = vpop.f32.mrf.mxu0 }
0x1f9b   :  { %v1160_v59 = vadd.f32 %v1158_v56, %v4673_v7 }
0x1f9c   :  { %v1154_v60 = vpop.f32.mrf.mxu0 }
0x1f9d   :  { %v4825_v61 = vadd.f32 %v4821_v57, %v1160_v59 }
0x1f9e   :  { %v3834_v62 = vpop.f32.mrf.mxu0 }
0x1f9f   :  { %v1162_v63 = vmax.f32 %v4825_v61, 0.0 }
0x1fa1   :  { %1163 = vst.msk [vmem:[#allocation2 - $0x4] sm:$0xf0] %vm243_vm5, %v1162_v63 }
0x1fa2   :  { %1167 = vst.msk [vmem:[#allocation2] sm:$0xf] %vm170_vm4, %v1165_v0 }
0x1fa9   :  { %v1168_v2 = vld [vmem:[#allocation2] sm:$0xf] }
0x1faa   :  { %v1169_v3 = vpack.c.bf16 %v1168_v2, %v1168_v2 }
0x1fac   :  { %3844 = vmatmul.mubr.msk.bf16.vlgmr.msra.gmra.mxu1 %vm944_vm8, %v1169_v3 }
0x1fad   :  { %3860 = vmatpush3.bf16.msra.mxu1 %v4762_v29  ;;  %3863 = vmatprep.mubr.msk.bf16.mxu1 %vm4365_vm2, %v4363_v1 }
0x1fae   :  { %3861 = vmatprep.subr.bf16.mxu1 %v4363_v1 }
0x1fb1   :  { %3862 = vmatpush3.bf16.msra.mxu1 %v4765_v34 }
0x1fb2   :  { %3875 = vmatprep.subr.bf16.mxu1 %v4363_v1 }
0x206c   :  { %v1207_v7 = vpop.f32.mrf.mxu1 }
0x206d   :  { %v1208_v6 = vadd.f32 %v4837_v4, %v1207_v7 }
0x206e   :  { %v3845_v9 = vpop.f32.mrf.mxu1 }
0x206f   :  { %v3336_v11 = vmul.f32 -1.442695, %v1208_v6 }
0x2070   :  { %v1210_v13 = vpop.f32.mrf.mxu1 }
0x2071   :  { %4246 = vpow2.f32 %v3336_v11 }
0x2072   :  { %v3846_v14 = vpop.f32.mrf.mxu1 }
0x207e   :  { %v4247_v30 = vpop.eup %4246 }
0x207f   :  { %v1216_v16 = vadd.f32 1.0, %v4247_v30 }
0x2081   :  { %4248 = vrcp.f32 %v1216_v16 }
0x208e   :  { %v4249_v17 = vpop.eup %4248 }
0x208f   :  { %v1219_v20 = vmul.f32 2.0, %v4249_v17  ;;  %v1221_v28 = vmul.f32 %v4249_v17, %v4742_v40 }
0x2091   :  { %v3337_v22 = vadd.f32 -1.0, %v1219_v20 }
0x2093   :  { %1223 = vrot.lane.b32.xlu1 %v3337_v22, %s4366_s17 }
0x2105   :  { %v1224_v23 = vpop.permute.xlu1 %1223 }
0x2106   :  { %v1226_v26 = vmul.f32 %v4249_v17, %v1224_v23 }
0x2108   :  { %1228 = vrot.lane.b32.xlu0 %v1226_v26, %s4367_s18 }
0x217a   :  { %v1229_v31 = vpop.permute.xlu0 %1228 }
0x217b   :  { %v4843_v33 = vadd.f32 %v1229_v31, %v1221_v28 }
0x217d   :  { %4250 = vtanh.f32 %v4843_v33 }
0x218a   :  { %v4251_v35 = vpop.eup %4250 }
0x218b   :  { %1234 = vrot.lane.b32.xlu1 %v4251_v35, %s4366_s17 }
0x21fd   :  { %v1235_v38 = vpop.permute.xlu1 %1234 }
0x21fe   :  { %v1237_v39 = vmul.f32 %v4249_v17, %v1235_v38 }
0x2200   :  { %1239 = vrot.lane.b32.xlu0 %v1237_v39, %s4368_s19 }
0x2272   :  { %v1240_v42 = vpop.permute.xlu0 %1239 }
0x2273   :  { %1242 = vst.msk [vmem:[#allocation2 + $0x4] sm:$0xf] %vm172_vm0, %v1240_v42 }
0x2274   :  { %1243 = vst.msk [vmem:[#allocation2 + $0x4] sm:$0xf] %vm174_vm1, %v4772_v19 }
0x227b   :  { %v1244_v41 = vld [vmem:[#allocation2 + $0x4] sm:$0xf] }
0x227c   :  { %v1245_v40 = vpack.c.bf16 %v1244_v41, %v1244_v41 }
0x227e   :  { %1247 = vrot.lane.b32.xlu1 %v1245_v40, %s4366_s17 }
0x22f0   :  { %v1248_v43 = vpop.permute.xlu1 %1247 }
0x22f1   :  { %3856 = vmatmul.mubr.msk.bf16.vlgmr.msra.gmra.mxu0 %vm944_vm8, %v1248_v43 }
0x22f2   :  { %3868 = vmatpush3.bf16.msra.mxu0 %v4777_v25  ;;  %3871 = vmatprep.mubr.msk.bf16.mxu0 %vm4365_vm2, %v4363_v1 }
0x22f3   :  { %3869 = vmatprep.subr.bf16.mxu0 %v4363_v1 }
0x22f6   :  { %3870 = vmatpush3.bf16.msra.mxu0 %v4784_v32 }
0x22f7   :  { %3881 = vmatprep.subr.bf16.mxu0 %v4363_v1 }
0x23b1   :  { %v1286_v44 = vpop.f32.mrf.mxu0 }
0x23b2   :  { %v1287_v19 = vadd.f32 %v4754_v54, %v1286_v44 }
0x23b3   :  { %v3857_v45 = vpop.f32.mrf.mxu0 }
0x23b4   :  { %v3339_v47 = vmul.f32 -1.442695, %v1287_v19 }
0x23b5   :  { %v1289_v48 = vpop.f32.mrf.mxu0 }
0x23b6   :  { %4252 = vpow2.f32 %v3339_v47 }
0x23b7   :  { %v3858_v49 = vpop.f32.mrf.mxu0 }
0x23c3   :  { %v4253_v50 = vpop.eup %4252 }
0x23c4   :  { %v1295_v51 = vadd.f32 1.0, %v4253_v50 }
0x23c6   :  { %4254 = vrcp.f32 %v1295_v51 }
0x23d3   :  { %v4255_v52 = vpop.eup %4254 }
0x23d4   :  { %v1298_v53 = vmul.f32 2.0, %v4255_v52  ;;  %v1300_v59 = vmul.f32 %v4255_v52, %v4759_v10 }
0x23d6   :  { %v3340_v55 = vadd.f32 -1.0, %v1298_v53 }
0x23d8   :  { %1302 = vrot.lane.b32.xlu0 %v3340_v55, %s4366_s17 }
0x244a   :  { %v1303_v56 = vpop.permute.xlu0 %1302 }
0x244b   :  { %v1305_v58 = vmul.f32 %v4255_v52, %v1303_v56 }
0x244d   :  { %1307 = vrot.lane.b32.xlu1 %v1305_v58, %s4367_s18 }
0x24bf   :  { %v1308_v60 = vpop.permute.xlu1 %1307 }
0x24c0   :  { %v4863_v62 = vadd.f32 %v1308_v60, %v1300_v59 }
0x24c2   :  { %4256 = vtanh.f32 %v4863_v62 }
0x24cf   :  { %v4257_v63 = vpop.eup %4256 }
0x24d0   :  { %1313 = vrot.lane.b32.xlu0 %v4257_v63, %s4366_s17 }
0x24d4   :  { %1462 = vrot.lane.b32.xlu0 %v1237_v39, %s4366_s17 }
0x2542   :  { %v1314_v0 = vpop.permute.xlu0 %1313 }
0x2543   :  { %v4868_v2 = vmul.f32 %v4255_v52, %v1314_v0 }
0x2545   :  { %v1317_v3 = vpack.c.bf16 %v4868_v2, %v4868_v2 }
0x2546   :  { %v1463_v44 = vpop.permute.xlu0 %1462 }
0x2547   :  { %1319 = vrot.lane.b32.xlu1 %v1317_v3, %s4367_s18 }
0x25b9   :  { %v1320_v7 = vpop.permute.xlu1 %1319 }
0x25ba   :  { %3864 = vmatmul.mubr.msk.bf16.vlgmr.msra.gmra.mxu1 %vm1020_vm9, %v1320_v7 }
0x25bb   :  { %3876 = vmatpush3.bf16.msra.mxu1 %v4788_v36  ;;  %3877 = vmatprep.mubr.msk.bf16.mxu1 %vm4365_vm2, %v4363_v1 }
0x25bc   :  { %3893 = vmatprep.subr.bf16.mxu1 %v4363_v1 }
0x267a   :  { %v1358_v10 = vpop.f32.mrf.mxu1 }
0x267b   :  { %v1359_v6 = vadd.f32 %v4792_v37, %v1358_v10 }
0x267c   :  { %v3865_v9 = vpop.f32.mrf.mxu1 }
0x267d   :  { %v1364_v11 = vmax.f32 %v1359_v6, 0.0 }
0x267e   :  { %v1361_v13 = vpop.f32.mrf.mxu1 }
0x267f   :  { %v1365_v14 = vpack.c.bf16 %v1364_v11, %v1364_v11 }
0x2680   :  { %v3866_v30 = vpop.f32.mrf.mxu1 }
0x2681   :  { %3872 = vmatmul.mubr.msk.bf16.vlgmr.msra.gmra.mxu0 %vm1020_vm9, %v1365_v14 }
0x2682   :  { %3882 = vmatpush3.bf16.msra.mxu0 %v4418_v18  ;;  %3889 = vmatprep.mubr.msk.bf16.mxu0 %vm4365_vm2, %v4363_v1 }
0x2683   :  { %3883 = vmatprep.subr.bf16.mxu0 %v4363_v1 }
0x2686   :  { %3884 = vmatpush3.bf16.msra.mxu0 %v4424_v21 }
0x2687   :  { %3885 = vmatprep.subr.bf16.mxu0 %v4363_v1 }
0x268a   :  { %3886 = vmatpush3.bf16.msra.mxu0 %v4434_v24 }
0x268b   :  { %3887 = vmatprep.subr.bf16.mxu0 %v4363_v1 }
0x268e   :  { %3888 = vmatpush3.bf16.msra.mxu0 %v4440_v27 }
0x268f   :  { %3905 = vmatprep.subr.bf16.mxu0 %v4363_v1 }
0x2741   :  { %v1403_v16 = vpop.f32.mrf.mxu0 }
0x2742   :  { %v1404_v17 = vadd.f32 %v4806_v46, %v1403_v16 }
0x2743   :  { %v3873_v20 = vpop.f32.mrf.mxu0 }
0x2744   :  { %v1409_v22 = vmax.f32 %v1404_v17, 0.0 }
0x2745   :  { %v1406_v23 = vpop.f32.mrf.mxu0 }
0x2746   :  { %1410 = vst.msk [vmem:[#allocation3 + $0x4] sm:$0xf] %vm1110_vm10, %v1409_v22  ;;  %v1411_v26 = vpack.c.bf16 %v1409_v22, %v1409_v22 }
0x2747   :  { %v3874_v28 = vpop.f32.mrf.mxu0 }
0x2748   :  { %3878 = vmatmul.mubr.msk.bf16.vlgmr.msra.gmra.mxu1 %vm1113_vm11, %v1411_v26 }
0x2749   :  { %3894 = vmatpush3.bf16.msra.mxu1 %v4397_v5  ;;  %3901 = vmatprep.mubr.msk.bf16.mxu1 %vm4365_vm2, %v4363_v1 }
0x274a   :  { %3895 = vmatprep.subr.bf16.mxu1 %v4363_v1 }
0x274d   :  { %3896 = vmatpush3.bf16.msra.mxu1 %v4400_v8 }
0x274e   :  { %3897 = vmatprep.subr.bf16.mxu1 %v4363_v1 }
0x2751   :  { %3898 = vmatpush3.bf16.msra.mxu1 %v4406_v12 }
0x2752   :  { %3899 = vmatprep.subr.bf16.mxu1 %v4363_v1 }
0x2755   :  { %3900 = vmatpush3.bf16.msra.mxu1 %v4412_v15 }
0x2756   :  { %3913 = vmatprep.subr.bf16.mxu1 %v4363_v1 }
0x2808   :  { %v1449_v31 = vpop.f32.mrf.mxu1 }
0x2809   :  { %v1456_v35 = vrot.slane %v1449_v31, 4 }
0x280a   :  { %v3879_v38 = vpop.f32.mrf.mxu1 }
0x280b   :  { %v1458_v39 = vadd.f32 %v1456_v35, %v4825_v61 }
0x280c   :  { %v1452_v42 = vpop.f32.mrf.mxu1 }
0x280d   :  { %v4905_v41 = vadd.f32 %v4821_v57, %v1458_v39 }
0x280e   :  { %v3880_v40 = vpop.f32.mrf.mxu1 }
0x280f   :  { %v1460_v43 = vmax.f32 %v4905_v41, 0.0 }
0x2811   :  { %1461 = vst.msk [vmem:[#allocation2 - $0x4] sm:$0xf0] %vm243_vm5, %v1460_v43 }
0x2812   :  { %1465 = vst.msk [vmem:[#allocation2] sm:$0xf] %vm170_vm4, %v1463_v44 }
0x2819   :  { %v1466_v19 = vld [vmem:[#allocation2] sm:$0xf] }
0x281a   :  { %v1467_v45 = vpack.c.bf16 %v1466_v19, %v1466_v19 }
0x281c   :  { %3890 = vmatmul.mubr.msk.bf16.vlgmr.msra.gmra.mxu0 %vm944_vm8, %v1467_v45 }
0x281d   :  { %3906 = vmatpush3.bf16.msra.mxu0 %v4762_v29  ;;  %3909 = vmatprep.mubr.msk.bf16.mxu0 %vm4365_vm2, %v4363_v1 }
0x281e   :  { %3907 = vmatprep.subr.bf16.mxu0 %v4363_v1 }
0x2821   :  { %3908 = vmatpush3.bf16.msra.mxu0 %v4765_v34 }
0x2822   :  { %3921 = vmatprep.subr.bf16.mxu0 %v4363_v1 }
0x28dc   :  { %v1505_v61 = vpop.f32.mrf.mxu0 }
0x28dd   :  { %v1506_v47 = vadd.f32 %v4837_v4, %v1505_v61 }
0x28de   :  { %v3891_v48 = vpop.f32.mrf.mxu0 }
0x28df   :  { %v3345_v49 = vmul.f32 -1.442695, %v1506_v47 }
0x28e0   :  { %v1508_v50 = vpop.f32.mrf.mxu0 }
0x28e1   :  { %4258 = vpow2.f32 %v3345_v49 }
0x28e2   :  { %v3892_v51 = vpop.f32.mrf.mxu0 }
0x28ee   :  { %v4259_v52 = vpop.eup %4258 }
0x28ef   :  { %v1514_v53 = vadd.f32 1.0, %v4259_v52 }
0x28f1   :  { %4260 = vrcp.f32 %v1514_v53 }
0x28fe   :  { %v4261_v55 = vpop.eup %4260 }
0x28ff   :  { %v1517_v56 = vmul.f32 2.0, %v4261_v55  ;;  %v1519_v63 = vmul.f32 %v4261_v55, %v4843_v33 }
0x2901   :  { %v3346_v58 = vadd.f32 -1.0, %v1517_v56 }
0x2903   :  { %1521 = vrot.lane.b32.xlu1 %v3346_v58, %s4366_s17 }
0x2975   :  { %v1522_v59 = vpop.permute.xlu1 %1521 }
0x2976   :  { %v1524_v60 = vmul.f32 %v4261_v55, %v1522_v59 }
0x2978   :  { %1526 = vrot.lane.b32.xlu0 %v1524_v60, %s4367_s18 }
0x29ea   :  { %v1527_v0 = vpop.permute.xlu0 %1526 }
0x29eb   :  { %v4921_v3 = vadd.f32 %v1527_v0, %v1519_v63 }
0x29ed   :  { %4262 = vtanh.f32 %v4921_v3 }
0x29fa   :  { %v4263_v7 = vpop.eup %4262 }
0x29fb   :  { %1532 = vrot.lane.b32.xlu1 %v4263_v7, %s4366_s17 }
0x2a6d   :  { %v1533_v10 = vpop.permute.xlu1 %1532 }
0x2a6e   :  { %v1535_v6 = vmul.f32 %v4261_v55, %v1533_v10 }
0x2a70   :  { %1537 = vrot.lane.b32.xlu0 %v1535_v6, %s4368_s19 }
0x2ae2   :  { %v1538_v9 = vpop.permute.xlu0 %1537 }
0x2ae3   :  { %1540 = vst.msk [vmem:[#allocation2 + $0x4] sm:$0xf] %vm172_vm0, %v1538_v9 }
0x2ae4   :  { %1541 = vst.msk [vmem:[#allocation2 + $0x4] sm:$0xf] %vm174_vm1, %v4868_v2 }
0x2aeb   :  { %v1542_v11 = vld [vmem:[#allocation2 + $0x4] sm:$0xf] }
0x2aec   :  { %v1543_v33 = vpack.c.bf16 %v1542_v11, %v1542_v11 }
0x2aee   :  { %1545 = vrot.lane.b32.xlu1 %v1543_v33, %s4366_s17 }
0x2b60   :  { %v1546_v13 = vpop.permute.xlu1 %1545 }
0x2b61   :  { %3902 = vmatmul.mubr.msk.bf16.vlgmr.msra.gmra.mxu1 %vm944_vm8, %v1546_v13 }
0x2b62   :  { %3914 = vmatpush3.bf16.msra.mxu1 %v4777_v25  ;;  %3917 = vmatprep.mubr.msk.bf16.mxu1 %vm4365_vm2, %v4363_v1 }
0x2b63   :  { %3915 = vmatprep.subr.bf16.mxu1 %v4363_v1 }
0x2b66   :  { %3916 = vmatpush3.bf16.msra.mxu1 %v4784_v32 }
0x2b67   :  { %3927 = vmatprep.subr.bf16.mxu1 %v4363_v1 }
0x2c21   :  { %v1584_v14 = vpop.f32.mrf.mxu1 }
0x2c22   :  { %v1585_v2 = vadd.f32 %v4754_v54, %v1584_v14 }
0x2c23   :  { %v3903_v30 = vpop.f32.mrf.mxu1 }
0x2c24   :  { %v3348_v16 = vmul.f32 -1.442695, %v1585_v2 }
0x2c25   :  { %v1587_v17 = vpop.f32.mrf.mxu1 }
0x2c26   :  { %4264 = vpow2.f32 %v3348_v16 }
0x2c27   :  { %v3904_v20 = vpop.f32.mrf.mxu1 }
0x2c33   :  { %v4265_v22 = vpop.eup %4264 }
0x2c34   :  { %v1593_v23 = vadd.f32 1.0, %v4265_v22 }
0x2c36   :  { %4266 = vrcp.f32 %v1593_v23 }
0x2c43   :  { %v4267_v26 = vpop.eup %4266 }
0x2c44   :  { %v1596_v28 = vmul.f32 2.0, %v4267_v26  ;;  %v1598_v39 = vmul.f32 %v4267_v26, %v4863_v62 }
0x2c46   :  { %v3349_v31 = vadd.f32 -1.0, %v1596_v28 }
0x2c48   :  { %1600 = vrot.lane.b32.xlu0 %v3349_v31, %s4366_s17 }
0x2cba   :  { %v1601_v35 = vpop.permute.xlu0 %1600 }
0x2cbb   :  { %v1603_v38 = vmul.f32 %v4267_v26, %v1601_v35 }
0x2cbd   :  { %1605 = vrot.lane.b32.xlu1 %v1603_v38, %s4367_s18 }
0x2d2f   :  { %v1606_v42 = vpop.permute.xlu1 %1605 }
0x2d30   :  { %v4941_v40 = vadd.f32 %v1606_v42, %v1598_v39 }
0x2d32   :  { %4268 = vtanh.f32 %v4941_v40 }
0x2d3f   :  { %v4269_v43 = vpop.eup %4268 }
0x2d40   :  { %1611 = vrot.lane.b32.xlu0 %v4269_v43, %s4366_s17 }
0x2d44   :  { %1760 = vrot.lane.b32.xlu0 %v1535_v6, %s4366_s17 }
0x2db2   :  { %v1612_v44 = vpop.permute.xlu0 %1611 }
0x2db3   :  { %v4946_v19 = vmul.f32 %v4267_v26, %v1612_v44 }
0x2db5   :  { %v1615_v45 = vpack.c.bf16 %v4946_v19, %v4946_v19 }
0x2db6   :  { %v1761_v14 = vpop.permute.xlu0 %1760 }
0x2db7   :  { %1617 = vrot.lane.b32.xlu1 %v1615_v45, %s4367_s18 }
0x2e29   :  { %v1618_v61 = vpop.permute.xlu1 %1617 }
0x2e2a   :  { %3910 = vmatmul.mubr.msk.bf16.vlgmr.msra.gmra.mxu0 %vm1020_vm9, %v1618_v61 }
0x2e2b   :  { %3922 = vmatpush3.bf16.msra.mxu0 %v4788_v36  ;;  %3923 = vmatprep.mubr.msk.bf16.mxu0 %vm4365_vm2, %v4363_v1 }
0x2e2c   :  { %3939 = vmatprep.subr.bf16.mxu0 %v4363_v1 }
0x2eea   :  { %v1656_v62 = vpop.f32.mrf.mxu0 }
0x2eeb   :  { %v1657_v47 = vadd.f32 %v4792_v37, %v1656_v62 }
0x2eec   :  { %v3911_v48 = vpop.f32.mrf.mxu0 }
0x2eed   :  { %v1662_v49 = vmax.f32 %v1657_v47, 0.0 }
0x2eee   :  { %v1659_v50 = vpop.f32.mrf.mxu0 }
0x2eef   :  { %v1663_v51 = vpack.c.bf16 %v1662_v49, %v1662_v49 }
0x2ef0   :  { %v3912_v52 = vpop.f32.mrf.mxu0 }
0x2ef1   :  { %3918 = vmatmul.mubr.msk.bf16.vlgmr.msra.gmra.mxu1 %vm1020_vm9, %v1663_v51 }
0x2ef2   :  { %3928 = vmatpush3.bf16.msra.mxu1 %v4418_v18  ;;  %3935 = vmatprep.mubr.msk.bf16.mxu1 %vm4365_vm2, %v4363_v1 }
0x2ef3   :  { %3929 = vmatprep.subr.bf16.mxu1 %v4363_v1 }
0x2ef6   :  { %3930 = vmatpush3.bf16.msra.mxu1 %v4424_v21 }
0x2ef7   :  { %3931 = vmatprep.subr.bf16.mxu1 %v4363_v1 }
0x2efa   :  { %3932 = vmatpush3.bf16.msra.mxu1 %v4434_v24 }
0x2efb   :  { %3933 = vmatprep.subr.bf16.mxu1 %v4363_v1 }
0x2efe   :  { %3934 = vmatpush3.bf16.msra.mxu1 %v4440_v27 }
0x2eff   :  { %3951 = vmatprep.subr.bf16.mxu1 %v4363_v1 }
0x2fb1   :  { %v1701_v53 = vpop.f32.mrf.mxu1 }
0x2fb2   :  { %v1702_v55 = vadd.f32 %v4806_v46, %v1701_v53 }
0x2fb3   :  { %v3919_v56 = vpop.f32.mrf.mxu1 }
0x2fb4   :  { %v1707_v58 = vmax.f32 %v1702_v55, 0.0 }
0x2fb5   :  { %v1704_v59 = vpop.f32.mrf.mxu1 }
0x2fb6   :  { %1708 = vst.msk [vmem:[#allocation3 + $0x8] sm:$0xf] %vm1110_vm10, %v1707_v58  ;;  %v1709_v60 = vpack.c.bf16 %v1707_v58, %v1707_v58 }
0x2fb7   :  { %v3920_v63 = vpop.f32.mrf.mxu1 }
0x2fb8   :  { %3924 = vmatmul.mubr.msk.bf16.vlgmr.msra.gmra.mxu0 %vm1113_vm11, %v1709_v60 }
0x2fb9   :  { %3940 = vmatpush3.bf16.msra.mxu0 %v4397_v5  ;;  %3947 = vmatprep.mubr.msk.bf16.mxu0 %vm4365_vm2, %v4363_v1 }
0x2fba   :  { %3941 = vmatprep.subr.bf16.mxu0 %v4363_v1 }
0x2fbd   :  { %3942 = vmatpush3.bf16.msra.mxu0 %v4400_v8 }
0x2fbe   :  { %3943 = vmatprep.subr.bf16.mxu0 %v4363_v1 }
0x2fc1   :  { %3944 = vmatpush3.bf16.msra.mxu0 %v4406_v12 }
0x2fc2   :  { %3945 = vmatprep.subr.bf16.mxu0 %v4363_v1 }
0x2fc5   :  { %3946 = vmatpush3.bf16.msra.mxu0 %v4412_v15 }
0x2fc6   :  { %3959 = vmatprep.subr.bf16.mxu0 %v4363_v1 }
0x3078   :  { %v1747_v0 = vpop.f32.mrf.mxu0 }
0x3079   :  { %v1754_v7 = vrot.slane %v1747_v0, 4 }
0x307a   :  { %v3925_v10 = vpop.f32.mrf.mxu0 }
0x307b   :  { %v1756_v6 = vadd.f32 %v1754_v7, %v4905_v41 }
0x307c   :  { %v1750_v9 = vpop.f32.mrf.mxu0 }
0x307d   :  { %v4983_v11 = vadd.f32 %v4821_v57, %v1756_v6 }
0x307e   :  { %v3926_v33 = vpop.f32.mrf.mxu0 }
0x307f   :  { %v1758_v13 = vmax.f32 %v4983_v11, 0.0 }
0x3081   :  { %1759 = vst.msk [vmem:[#allocation2 - $0x4] sm:$0xf0] %vm243_vm5, %v1758_v13 }
0x3082   :  { %1763 = vst.msk [vmem:[#allocation2] sm:$0xf] %vm170_vm4, %v1761_v14 }
0x3089   :  { %v1764_v2 = vld [vmem:[#allocation2] sm:$0xf] }
0x308a   :  { %v1765_v30 = vpack.c.bf16 %v1764_v2, %v1764_v2 }
0x308c   :  { %3936 = vmatmul.mubr.msk.bf16.vlgmr.msra.gmra.mxu1 %vm944_vm8, %v1765_v30 }
0x308d   :  { %3952 = vmatpush3.bf16.msra.mxu1 %v4762_v29  ;;  %3955 = vmatprep.mubr.msk.bf16.mxu1 %vm4365_vm2, %v4363_v1 }
0x308e   :  { %3953 = vmatprep.subr.bf16.mxu1 %v4363_v1 }
0x3091   :  { %3954 = vmatpush3.bf16.msra.mxu1 %v4765_v34 }
0x3092   :  { %3967 = vmatprep.subr.bf16.mxu1 %v4363_v1 }
0x314c   :  { %v1803_v41 = vpop.f32.mrf.mxu1 }
0x314d   :  { %v1804_v16 = vadd.f32 %v4837_v4, %v1803_v41 }
0x314e   :  { %v3937_v17 = vpop.f32.mrf.mxu1 }
0x314f   :  { %v3354_v20 = vmul.f32 -1.442695, %v1804_v16 }
0x3150   :  { %v1806_v22 = vpop.f32.mrf.mxu1 }
0x3151   :  { %4270 = vpow2.f32 %v3354_v20 }
0x3152   :  { %v3938_v23 = vpop.f32.mrf.mxu1 }
0x315e   :  { %v4271_v26 = vpop.eup %4270 }
0x315f   :  { %v1812_v28 = vadd.f32 1.0, %v4271_v26 }
0x3161   :  { %4272 = vrcp.f32 %v1812_v28 }
0x316e   :  { %v4273_v31 = vpop.eup %4272 }
0x316f   :  { %v1815_v35 = vmul.f32 2.0, %v4273_v31  ;;  %v1817_v43 = vmul.f32 %v4273_v31, %v4921_v3 }
0x3171   :  { %v3355_v38 = vadd.f32 -1.0, %v1815_v35 }
0x3173   :  { %1819 = vrot.lane.b32.xlu1 %v3355_v38, %s4366_s17 }
0x31e5   :  { %v1820_v39 = vpop.permute.xlu1 %1819 }
0x31e6   :  { %v1822_v42 = vmul.f32 %v4273_v31, %v1820_v39 }
0x31e8   :  { %1824 = vrot.lane.b32.xlu0 %v1822_v42, %s4367_s18 }
0x325a   :  { %v1825_v44 = vpop.permute.xlu0 %1824 }
0x325b   :  { %v4999_v45 = vadd.f32 %v1825_v44, %v1817_v43 }
0x325d   :  { %4274 = vtanh.f32 %v4999_v45 }
0x326a   :  { %v4275_v61 = vpop.eup %4274 }
0x326b   :  { %1830 = vrot.lane.b32.xlu1 %v4275_v61, %s4366_s17 }
0x32dd   :  { %v1831_v62 = vpop.permute.xlu1 %1830 }
0x32de   :  { %v1833_v47 = vmul.f32 %v4273_v31, %v1831_v62 }
0x32e0   :  { %1835 = vrot.lane.b32.xlu0 %v1833_v47, %s4368_s19 }
0x3352   :  { %v1836_v48 = vpop.permute.xlu0 %1835 }
0x3353   :  { %1838 = vst.msk [vmem:[#allocation2 + $0x4] sm:$0xf] %vm172_vm0, %v1836_v48 }
0x3354   :  { %1839 = vst.msk [vmem:[#allocation2 + $0x4] sm:$0xf] %vm174_vm1, %v4946_v19 }
0x335b   :  { %v1840_v49 = vld [vmem:[#allocation2 + $0x4] sm:$0xf] }
0x335c   :  { %v1841_v3 = vpack.c.bf16 %v1840_v49, %v1840_v49 }
0x335e   :  { %1843 = vrot.lane.b32.xlu1 %v1841_v3, %s4366_s17 }
0x33d0   :  { %v1844_v50 = vpop.permute.xlu1 %1843 }
0x33d1   :  { %3948 = vmatmul.mubr.msk.bf16.vlgmr.msra.gmra.mxu0 %vm944_vm8, %v1844_v50 }
0x33d2   :  { %3960 = vmatpush3.bf16.msra.mxu0 %v4777_v25  ;;  %3963 = vmatprep.mubr.msk.bf16.mxu0 %vm4365_vm2, %v4363_v1 }
0x33d3   :  { %3961 = vmatprep.subr.bf16.mxu0 %v4363_v1 }
0x33d6   :  { %3962 = vmatpush3.bf16.msra.mxu0 %v4784_v32 }
0x33d7   :  { %3973 = vmatprep.subr.bf16.mxu0 %v4363_v1 }
0x3491   :  { %v1882_v51 = vpop.f32.mrf.mxu0 }
0x3492   :  { %v1883_v19 = vadd.f32 %v4754_v54, %v1882_v51 }
0x3493   :  { %v3949_v52 = vpop.f32.mrf.mxu0 }
0x3494   :  { %v3357_v53 = vmul.f32 -1.442695, %v1883_v19 }
0x3495   :  { %v1885_v55 = vpop.f32.mrf.mxu0 }
0x3496   :  { %4276 = vpow2.f32 %v3357_v53 }
0x3497   :  { %v3950_v56 = vpop.f32.mrf.mxu0 }
0x34a3   :  { %v4277_v58 = vpop.eup %4276 }
0x34a4   :  { %v1891_v59 = vadd.f32 1.0, %v4277_v58 }
0x34a6   :  { %4278 = vrcp.f32 %v1891_v59 }
0x34b3   :  { %v4279_v60 = vpop.eup %4278 }
0x34b4   :  { %v1894_v63 = vmul.f32 2.0, %v4279_v60  ;;  %v1896_v6 = vmul.f32 %v4279_v60, %v4941_v40 }
0x34b6   :  { %v3358_v0 = vadd.f32 -1.0, %v1894_v63 }
0x34b8   :  { %1898 = vrot.lane.b32.xlu0 %v3358_v0, %s4366_s17 }
0x352a   :  { %v1899_v7 = vpop.permute.xlu0 %1898 }
0x352b   :  { %v1901_v10 = vmul.f32 %v4279_v60, %v1899_v7 }
0x352d   :  { %1903 = vrot.lane.b32.xlu1 %v1901_v10, %s4367_s18 }
0x359f   :  { %v1904_v54 = vpop.permute.xlu1 %1903 }
0x35a0   :  { %v5019_v9 = vadd.f32 %v1904_v54, %v1896_v6 }
0x35a2   :  { %4280 = vtanh.f32 %v5019_v9 }
0x35af   :  { %v4281_v33 = vpop.eup %4280 }
0x35b0   :  { %1909 = vrot.lane.b32.xlu0 %v4281_v33, %s4366_s17 }
0x35b4   :  { %2058 = vrot.lane.b32.xlu0 %v1833_v47, %s4366_s17 }
0x3622   :  { %v1910_v13 = vpop.permute.xlu0 %1909 }
0x3623   :  { %v5024_v14 = vmul.f32 %v4279_v60, %v1910_v13 }
0x3625   :  { %v1913_v2 = vpack.c.bf16 %v5024_v14, %v5024_v14 }
0x3626   :  { %v2059_v50 = vpop.permute.xlu0 %2058 }
0x3627   :  { %1915 = vrot.lane.b32.xlu1 %v1913_v2, %s4367_s18 }
0x3699   :  { %v1916_v30 = vpop.permute.xlu1 %1915 }
0x369a   :  { %3956 = vmatmul.mubr.msk.bf16.vlgmr.msra.gmra.mxu1 %vm1020_vm9, %v1916_v30 }
0x369b   :  { %3968 = vmatpush3.bf16.msra.mxu1 %v4788_v36  ;;  %3969 = vmatprep.mubr.msk.bf16.mxu1 %vm4365_vm2, %v4363_v1 }
0x369c   :  { %3985 = vmatprep.subr.bf16.mxu1 %v4363_v1 }
0x375a   :  { %v1954_v40 = vpop.f32.mrf.mxu1 }
0x375b   :  { %v1955_v41 = vadd.f32 %v4792_v37, %v1954_v40 }
0x375c   :  { %v3957_v16 = vpop.f32.mrf.mxu1 }
0x375d   :  { %v1960_v17 = vmax.f32 %v1955_v41, 0.0 }
0x375e   :  { %v1957_v20 = vpop.f32.mrf.mxu1 }
0x375f   :  { %v1961_v22 = vpack.c.bf16 %v1960_v17, %v1960_v17 }
0x3760   :  { %v3958_v23 = vpop.f32.mrf.mxu1 }
0x3761   :  { %3964 = vmatmul.mubr.msk.bf16.vlgmr.msra.gmra.mxu0 %vm1020_vm9, %v1961_v22 }
0x3762   :  { %3974 = vmatpush3.bf16.msra.mxu0 %v4418_v18  ;;  %3981 = vmatprep.mubr.msk.bf16.mxu0 %vm4365_vm2, %v4363_v1 }
0x3763   :  { %3975 = vmatprep.subr.bf16.mxu0 %v4363_v1 }
0x3766   :  { %3976 = vmatpush3.bf16.msra.mxu0 %v4424_v21 }
0x3767   :  { %3977 = vmatprep.subr.bf16.mxu0 %v4363_v1 }
0x376a   :  { %3978 = vmatpush3.bf16.msra.mxu0 %v4434_v24 }
0x376b   :  { %3979 = vmatprep.subr.bf16.mxu0 %v4363_v1 }
0x376e   :  { %3980 = vmatpush3.bf16.msra.mxu0 %v4440_v27 }
0x376f   :  { %3997 = vmatprep.subr.bf16.mxu0 %v4363_v1 }
0x3821   :  { %v1999_v26 = vpop.f32.mrf.mxu0 }
0x3822   :  { %v2000_v28 = vadd.f32 %v4806_v46, %v1999_v26 }
0x3823   :  { %v3965_v31 = vpop.f32.mrf.mxu0 }
0x3824   :  { %v2005_v35 = vmax.f32 %v2000_v28, 0.0 }
0x3825   :  { %v2002_v38 = vpop.f32.mrf.mxu0 }
0x3826   :  { %2006 = vst.msk [vmem:[#allocation3 + $0xc] sm:$0xf] %vm1110_vm10, %v2005_v35  ;;  %v2007_v39 = vpack.c.bf16 %v2005_v35, %v2005_v35 }
0x3827   :  { %v3966_v42 = vpop.f32.mrf.mxu0 }
0x3828   :  { %3970 = vmatmul.mubr.msk.bf16.vlgmr.msra.gmra.mxu1 %vm1113_vm11, %v2007_v39 }
0x3829   :  { %3986 = vmatpush3.bf16.msra.mxu1 %v4397_v5  ;;  %3993 = vmatprep.mubr.msk.bf16.mxu1 %vm4365_vm2, %v4363_v1 }
0x382a   :  { %3987 = vmatprep.subr.bf16.mxu1 %v4363_v1 }
0x382d   :  { %3988 = vmatpush3.bf16.msra.mxu1 %v4400_v8 }
0x382e   :  { %3989 = vmatprep.subr.bf16.mxu1 %v4363_v1 }
0x3831   :  { %3990 = vmatpush3.bf16.msra.mxu1 %v4406_v12 }
0x3832   :  { %3991 = vmatprep.subr.bf16.mxu1 %v4363_v1 }
0x3835   :  { %3992 = vmatpush3.bf16.msra.mxu1 %v4412_v15 }
0x3836   :  { %4005 = vmatprep.subr.bf16.mxu1 %v4363_v1 }
0x38e8   :  { %v2045_v43 = vpop.f32.mrf.mxu1 }
0x38e9   :  { %v2052_v44 = vrot.slane %v2045_v43, 4 }
0x38ea   :  { %v3971_v61 = vpop.f32.mrf.mxu1 }
0x38eb   :  { %v2054_v62 = vadd.f32 %v2052_v44, %v4983_v11 }
0x38ec   :  { %v2048_v47 = vpop.f32.mrf.mxu1 }
0x38ed   :  { %v5061_v48 = vadd.f32 %v4821_v57, %v2054_v62 }
0x38ee   :  { %v3972_v49 = vpop.f32.mrf.mxu1 }
0x38ef   :  { %v2056_v3 = vmax.f32 %v5061_v48, 0.0 }
0x38f1   :  { %2057 = vst.msk [vmem:[#allocation2 - $0x4] sm:$0xf0] %vm243_vm5, %v2056_v3 }
0x38f2   :  { %2061 = vst.msk [vmem:[#allocation2] sm:$0xf] %vm170_vm4, %v2059_v50 }
0x38f9   :  { %v2062_v51 = vld [vmem:[#allocation2] sm:$0xf] }
0x38fa   :  { %v2063_v19 = vpack.c.bf16 %v2062_v51, %v2062_v51 }
0x38fc   :  { %3982 = vmatmul.mubr.msk.bf16.vlgmr.msra.gmra.mxu0 %vm944_vm8, %v2063_v19 }
0x38fd   :  { %3998 = vmatpush3.bf16.msra.mxu0 %v4762_v29  ;;  %4001 = vmatprep.mubr.msk.bf16.mxu0 %vm4365_vm2, %v4363_v1 }
0x38fe   :  { %3999 = vmatprep.subr.bf16.mxu0 %v4363_v1 }
0x3901   :  { %4000 = vmatpush3.bf16.msra.mxu0 %v4765_v34 }
0x3902   :  { %4013 = vmatprep.subr.bf16.mxu0 %v4363_v1 }
0x39bc   :  { %v2101_v11 = vpop.f32.mrf.mxu0 }
0x39bd   :  { %v2102_v52 = vadd.f32 %v4837_v4, %v2101_v11 }
0x39be   :  { %v3983_v53 = vpop.f32.mrf.mxu0 }
0x39bf   :  { %v3363_v55 = vmul.f32 -1.442695, %v2102_v52 }
0x39c0   :  { %v2104_v56 = vpop.f32.mrf.mxu0 }
0x39c1   :  { %4282 = vpow2.f32 %v3363_v55 }
0x39c2   :  { %v3984_v58 = vpop.f32.mrf.mxu0 }
0x39ce   :  { %v4283_v59 = vpop.eup %4282 }
0x39cf   :  { %v2110_v60 = vadd.f32 1.0, %v4283_v59 }
0x39d1   :  { %4284 = vrcp.f32 %v2110_v60 }
0x39de   :  { %v4285_v63 = vpop.eup %4284 }
0x39df   :  { %v2113_v0 = vmul.f32 2.0, %v4285_v63  ;;  %v2115_v54 = vmul.f32 %v4285_v63, %v4999_v45 }
0x39e1   :  { %v3364_v7 = vadd.f32 -1.0, %v2113_v0 }
0x39e3   :  { %2117 = vrot.lane.b32.xlu1 %v3364_v7, %s4366_s17 }
0x3a55   :  { %v2118_v10 = vpop.permute.xlu1 %2117 }
0x3a56   :  { %v2120_v6 = vmul.f32 %v4285_v63, %v2118_v10 }
0x3a58   :  { %2122 = vrot.lane.b32.xlu0 %v2120_v6, %s4367_s18 }
0x3aca   :  { %v2123_v33 = vpop.permute.xlu0 %2122 }
0x3acb   :  { %v5077_v13 = vadd.f32 %v2123_v33, %v2115_v54 }
0x3acd   :  { %4286 = vtanh.f32 %v5077_v13 }
0x3ada   :  { %v4287_v2 = vpop.eup %4286 }
0x3adb   :  { %2128 = vrot.lane.b32.xlu1 %v4287_v2, %s4366_s17 }
0x3b4d   :  { %v2129_v30 = vpop.permute.xlu1 %2128 }
0x3b4e   :  { %v2131_v40 = vmul.f32 %v4285_v63, %v2129_v30 }
0x3b50   :  { %2133 = vrot.lane.b32.xlu0 %v2131_v40, %s4368_s19 }
0x3bc2   :  { %v2134_v41 = vpop.permute.xlu0 %2133 }
0x3bc3   :  { %2136 = vst.msk [vmem:[#allocation2 + $0x4] sm:$0xf] %vm172_vm0, %v2134_v41 }
0x3bc4   :  { %2137 = vst.msk [vmem:[#allocation2 + $0x4] sm:$0xf] %vm174_vm1, %v5024_v14  ;;  %v5093_v14 = vld [vmem:[#allocation4 + $0x89] ss:$0 sm:$0xff] }
0x3bcb   :  { %v2138_v16 = vld [vmem:[#allocation2 + $0x4] sm:$0xf] }
0x3bcc   :  { %v2139_v45 = vpack.c.bf16 %v2138_v16, %v2138_v16 }
0x3bce   :  { %2141 = vrot.lane.b32.xlu1 %v2139_v45, %s4366_s17 }
0x3c40   :  { %v2142_v17 = vpop.permute.xlu1 %2141 }
0x3c41   :  { %3994 = vmatmul.mubr.msk.bf16.vlgmr.msra.gmra.mxu1 %vm944_vm8, %v2142_v17 }
0x3c42   :  { %4006 = vmatpush3.bf16.msra.mxu1 %v4777_v25  ;;  %4009 = vmatprep.mubr.msk.bf16.mxu1 %vm4365_vm2, %v4363_v1 }
0x3c43   :  { %4007 = vmatprep.subr.bf16.mxu1 %v4363_v1 }
0x3c46   :  { %4008 = vmatpush3.bf16.msra.mxu1 %v4784_v32 }
0x3c47   :  { %4019 = vmatprep.subr.bf16.mxu1 %v4363_v1 }
0x3d01   :  { %v2180_v20 = vpop.f32.mrf.mxu1 }
0x3d02   :  { %v2181_v22 = vadd.f32 %v5093_v14, %v2180_v20 }
0x3d03   :  { %v3995_v23 = vpop.f32.mrf.mxu1 }
0x3d04   :  { %v3366_v26 = vmul.f32 -1.442695, %v2181_v22 }
0x3d05   :  { %v2183_v28 = vpop.f32.mrf.mxu1 }
0x3d06   :  { %4288 = vpow2.f32 %v3366_v26 }
0x3d07   :  { %v3996_v31 = vpop.f32.mrf.mxu1 }
0x3d13   :  { %v4289_v35 = vpop.eup %4288 }
0x3d14   :  { %v2189_v38 = vadd.f32 1.0, %v4289_v35 }
0x3d16   :  { %4290 = vrcp.f32 %v2189_v38 }
0x3d23   :  { %v4291_v39 = vpop.eup %4290 }
0x3d24   :  { %v2192_v42 = vmul.f32 2.0, %v4291_v39  ;;  %v2194_v62 = vmul.f32 %v4291_v39, %v5019_v9 }
0x3d26   :  { %v3367_v43 = vadd.f32 -1.0, %v2192_v42 }
0x3d28   :  { %2196 = vrot.lane.b32.xlu0 %v3367_v43, %s4366_s17 }
0x3d9a   :  { %v2197_v44 = vpop.permute.xlu0 %2196 }
0x3d9b   :  { %v2199_v61 = vmul.f32 %v4291_v39, %v2197_v44 }
0x3d9d   :  { %2201 = vrot.lane.b32.xlu1 %v2199_v61, %s4367_s18 }
0x3e0f   :  { %v2202_v47 = vpop.permute.xlu1 %2201 }
0x3e10   :  { %v5099_v49 = vadd.f32 %v2202_v47, %v2194_v62 }
0x3e12   :  { %4292 = vtanh.f32 %v5099_v49 }
0x3e1f   :  { %v4293_v3 = vpop.eup %4292 }
0x3e20   :  { %2207 = vrot.lane.b32.xlu0 %v4293_v3, %s4366_s17 }
0x3e24   :  { %2356 = vrot.lane.b32.xlu0 %v2131_v40, %s4366_s17 }
0x3e92   :  { %v2208_v50 = vpop.permute.xlu0 %2207 }
0x3e93   :  { %v5104_v51 = vmul.f32 %v4291_v39, %v2208_v50 }
0x3e95   :  { %v2211_v19 = vpack.c.bf16 %v5104_v51, %v5104_v51 }
0x3e96   :  { %v2357_v45 = vpop.permute.xlu0 %2356 }
0x3e97   :  { %2213 = vrot.lane.b32.xlu1 %v2211_v19, %s4367_s18 }
0x3f09   :  { %v2214_v11 = vpop.permute.xlu1 %2213 }
0x3f0a   :  { %4002 = vmatmul.mubr.msk.bf16.vlgmr.msra.gmra.mxu0 %vm1020_vm9, %v2214_v11 }
0x3f0b   :  { %4014 = vmatpush3.bf16.msra.mxu0 %v4788_v36  ;;  %4015 = vmatprep.mubr.msk.bf16.mxu0 %vm4365_vm2, %v4363_v1 }
0x3f0c   :  { %4031 = vmatprep.subr.bf16.mxu0 %v4363_v1 }
0x3fca   :  { %v2252_v9 = vpop.f32.mrf.mxu0 }
0x3fcb   :  { %v2253_v52 = vadd.f32 %v4792_v37, %v2252_v9 }
0x3fcc   :  { %v4003_v53 = vpop.f32.mrf.mxu0 }
0x3fcd   :  { %v2258_v55 = vmax.f32 %v2253_v52, 0.0 }
0x3fce   :  { %v2255_v56 = vpop.f32.mrf.mxu0 }
0x3fcf   :  { %v2259_v58 = vpack.c.bf16 %v2258_v55, %v2258_v55 }
0x3fd0   :  { %v4004_v59 = vpop.f32.mrf.mxu0 }
0x3fd1   :  { %4010 = vmatmul.mubr.msk.bf16.vlgmr.msra.gmra.mxu1 %vm1020_vm9, %v2259_v58 }
0x3fd2   :  { %4020 = vmatpush3.bf16.msra.mxu1 %v4418_v18  ;;  %4027 = vmatprep.mubr.msk.bf16.mxu1 %vm4365_vm2, %v4363_v1 }
0x3fd3   :  { %4021 = vmatprep.subr.bf16.mxu1 %v4363_v1 }
0x3fd6   :  { %4022 = vmatpush3.bf16.msra.mxu1 %v4424_v21 }
0x3fd7   :  { %4023 = vmatprep.subr.bf16.mxu1 %v4363_v1 }
0x3fda   :  { %4024 = vmatpush3.bf16.msra.mxu1 %v4434_v24 }
0x3fdb   :  { %4025 = vmatprep.subr.bf16.mxu1 %v4363_v1 }
0x3fde   :  { %4026 = vmatpush3.bf16.msra.mxu1 %v4440_v27 }
0x3fdf   :  { %4043 = vmatprep.subr.bf16.mxu1 %v4363_v1 }
0x4091   :  { %v2297_v37 = vpop.f32.mrf.mxu1 }
0x4092   :  { %v2298_v60 = vadd.f32 %v4806_v46, %v2297_v37 }
0x4093   :  { %v4011_v63 = vpop.f32.mrf.mxu1 }
0x4094   :  { %v2303_v0 = vmax.f32 %v2298_v60, 0.0 }
0x4095   :  { %v2300_v7 = vpop.f32.mrf.mxu1 }
0x4096   :  { %2304 = vst.msk [vmem:[#allocation3 + $0x10] sm:$0xf] %vm1110_vm10, %v2303_v0  ;;  %v2305_v10 = vpack.c.bf16 %v2303_v0, %v2303_v0 }
0x4097   :  { %v4012_v6 = vpop.f32.mrf.mxu1 }
0x4098   :  { %4016 = vmatmul.mubr.msk.bf16.vlgmr.msra.gmra.mxu0 %vm1113_vm11, %v2305_v10 }
0x4099   :  { %4032 = vmatpush3.bf16.msra.mxu0 %v4397_v5  ;;  %4039 = vmatprep.mubr.msk.bf16.mxu0 %vm4365_vm2, %v4363_v1 }
0x409a   :  { %4033 = vmatprep.subr.bf16.mxu0 %v4363_v1 }
0x409d   :  { %4034 = vmatpush3.bf16.msra.mxu0 %v4400_v8 }
0x409e   :  { %4035 = vmatprep.subr.bf16.mxu0 %v4363_v1 }
0x40a1   :  { %4036 = vmatpush3.bf16.msra.mxu0 %v4406_v12 }
0x40a2   :  { %4037 = vmatprep.subr.bf16.mxu0 %v4363_v1 }
0x40a5   :  { %4038 = vmatpush3.bf16.msra.mxu0 %v4412_v15 }
0x40a6   :  { %4051 = vmatprep.subr.bf16.mxu0 %v4363_v1 }
0x4158   :  { %v2343_v46 = vpop.f32.mrf.mxu0 }
0x4159   :  { %v2350_v54 = vrot.slane %v2343_v46, 4 }
0x415a   :  { %v4017_v33 = vpop.f32.mrf.mxu0 }
0x415b   :  { %v2352_v2 = vadd.f32 %v2350_v54, %v5061_v48 }
0x415c   :  { %v2346_v30 = vpop.f32.mrf.mxu0 }
0x415d   :  { %v5141_v40 = vadd.f32 %v4821_v57, %v2352_v2 }
0x415e   :  { %v4018_v41 = vpop.f32.mrf.mxu0 }
0x415f   :  { %v2354_v16 = vmax.f32 %v5141_v40, 0.0 }
0x4161   :  { %2355 = vst.msk [vmem:[#allocation2 - $0x4] sm:$0xf0] %vm243_vm5, %v2354_v16 }
0x4162   :  { %2359 = vst.msk [vmem:[#allocation2] sm:$0xf] %vm170_vm4, %v2357_v45  ;;  %v5192_v45 = vld [vmem:[#allocation4 + $0xb0] ss:$0 sm:$0xff] }
0x4169   :  { %v2360_v17 = vld [vmem:[#allocation2] sm:$0xf] }
0x416a   :  { %v2361_v20 = vpack.c.bf16 %v2360_v17, %v2360_v17 }
0x416c   :  { %4028 = vmatmul.mubr.msk.bf16.vlgmr.msra.gmra.mxu1 %vm944_vm8, %v2361_v20 }
0x416d   :  { %4044 = vmatpush3.bf16.msra.mxu1 %v4762_v29  ;;  %4047 = vmatprep.mubr.msk.bf16.mxu1 %vm4365_vm2, %v4363_v1 }
0x416e   :  { %4045 = vmatprep.subr.bf16.mxu1 %v4363_v1 }
0x4171   :  { %4046 = vmatpush3.bf16.msra.mxu1 %v4765_v34 }
0x4172   :  { %4059 = vmatprep.subr.bf16.mxu1 %v4363_v1 }
0x422c   :  { %v2399_v57 = vpop.f32.mrf.mxu1 }
0x422d   :  { %v2400_v48 = vadd.f32 %v4837_v4, %v2399_v57 }
0x422e   :  { %v4029_v22 = vpop.f32.mrf.mxu1 }
0x422f   :  { %v3372_v23 = vmul.f32 -1.442695, %v2400_v48 }
0x4230   :  { %v2402_v26 = vpop.f32.mrf.mxu1 }
0x4231   :  { %4294 = vpow2.f32 %v3372_v23 }
0x4232   :  { %v4030_v28 = vpop.f32.mrf.mxu1 }
0x4233   :  { %v5206_v28 = vld [vmem:[#allocation4 + $0xd8] ss:$0 sm:$0xff] }
0x423e   :  { %v4295_v31 = vpop.eup %4294 }
0x423f   :  { %v2408_v35 = vadd.f32 1.0, %v4295_v31 }
0x4241   :  { %4296 = vrcp.f32 %v2408_v35 }
0x424e   :  { %v4297_v38 = vpop.eup %4296 }
0x424f   :  { %v2411_v39 = vmul.f32 2.0, %v4297_v38  ;;  %v2413_v61 = vmul.f32 %v4297_v38, %v5077_v13 }
0x4251   :  { %v3373_v42 = vadd.f32 -1.0, %v2411_v39 }
0x4253   :  { %2415 = vrot.lane.b32.xlu1 %v3373_v42, %s4366_s17 }
0x42c5   :  { %v2416_v43 = vpop.permute.xlu1 %2415 }
0x42c6   :  { %v2418_v44 = vmul.f32 %v4297_v38, %v2416_v43 }
0x42c8   :  { %2420 = vrot.lane.b32.xlu0 %v2418_v44, %s4367_s18 }
0x433a   :  { %v2421_v4 = vpop.permute.xlu0 %2420 }
0x433b   :  { %v5157_v62 = vadd.f32 %v2421_v4, %v2413_v61 }
0x433d   :  { %4298 = vtanh.f32 %v5157_v62 }
0x434a   :  { %v4299_v47 = vpop.eup %4298 }
0x434b   :  { %2426 = vrot.lane.b32.xlu1 %v4299_v47, %s4366_s17 }
0x43bd   :  { %v2427_v3 = vpop.permute.xlu1 %2426 }
0x43be   :  { %v2429_v50 = vmul.f32 %v4297_v38, %v2427_v3 }
0x43c0   :  { %2431 = vrot.lane.b32.xlu0 %v2429_v50, %s4368_s19 }
0x4432   :  { %v2432_v19 = vpop.permute.xlu0 %2431 }
0x4433   :  { %2434 = vst.msk [vmem:[#allocation2 + $0x4] sm:$0xf] %vm172_vm0, %v2432_v19 }
0x4434   :  { %2435 = vst.msk [vmem:[#allocation2 + $0x4] sm:$0xf] %vm174_vm1, %v5104_v51 }
0x443b   :  { %v2436_v11 = vld [vmem:[#allocation2 + $0x4] sm:$0xf] }
0x443c   :  { %v2437_v13 = vpack.c.bf16 %v2436_v11, %v2436_v11 }
0x443e   :  { %2439 = vrot.lane.b32.xlu1 %v2437_v13, %s4366_s17 }
0x44b0   :  { %v2440_v9 = vpop.permute.xlu1 %2439 }
0x44b1   :  { %4040 = vmatmul.mubr.msk.bf16.vlgmr.msra.gmra.mxu0 %vm944_vm8, %v2440_v9 }
0x44b2   :  { %4052 = vmatpush3.bf16.msra.mxu0 %v4777_v25  ;;  %4055 = vmatprep.mubr.msk.bf16.mxu0 %vm4365_vm2, %v4363_v1 }
0x44b3   :  { %4053 = vmatprep.subr.bf16.mxu0 %v4363_v1 }
0x44b6   :  { %4054 = vmatpush3.bf16.msra.mxu0 %v4784_v32 }
0x44b7   :  { %4065 = vmatprep.subr.bf16.mxu0 %v4363_v1 }
0x4571   :  { %v2478_v52 = vpop.f32.mrf.mxu0 }
0x4572   :  { %v2479_v51 = vadd.f32 %v5093_v14, %v2478_v52 }
0x4573   :  { %v4041_v53 = vpop.f32.mrf.mxu0 }
0x4574   :  { %v3375_v55 = vmul.f32 -1.442695, %v2479_v51  ;;  %v5237_v53 = vld [vmem:[#allocation4 + $0x88] ss:$0 sm:$0xff] }
0x4575   :  { %v2481_v56 = vpop.f32.mrf.mxu0 }
0x4576   :  { %4300 = vpow2.f32 %v3375_v55 }
0x4577   :  { %v4042_v58 = vpop.f32.mrf.mxu0 }
0x4583   :  { %v4301_v59 = vpop.eup %4300 }
0x4584   :  { %v2487_v37 = vadd.f32 1.0, %v4301_v59 }
0x4586   :  { %4302 = vrcp.f32 %v2487_v37 }
0x4593   :  { %v4303_v60 = vpop.eup %4302 }
0x4594   :  { %v2490_v63 = vmul.f32 2.0, %v4303_v60  ;;  %v2492_v6 = vmul.f32 %v4303_v60, %v5099_v49 }
0x4596   :  { %v3376_v0 = vadd.f32 -1.0, %v2490_v63 }
0x4598   :  { %2494 = vrot.lane.b32.xlu0 %v3376_v0, %s4366_s17 }
0x460a   :  { %v2495_v7 = vpop.permute.xlu0 %2494 }
0x460b   :  { %v2497_v10 = vmul.f32 %v4303_v60, %v2495_v7 }
0x460d   :  { %2499 = vrot.lane.b32.xlu1 %v2497_v10, %s4367_s18 }
0x467f   :  { %v2500_v46 = vpop.permute.xlu1 %2499 }
0x4680   :  { %v5177_v54 = vadd.f32 %v2500_v46, %v2492_v6 }
0x4682   :  { %4304 = vtanh.f32 %v5177_v54 }
0x468f   :  { %v4305_v33 = vpop.eup %4304 }
0x4690   :  { %2505 = vrot.lane.b32.xlu0 %v4305_v33, %s4366_s17 }
0x4694   :  { %2654 = vrot.lane.b32.xlu0 %v2429_v50, %s4366_s17  ;;  %v5222_v50 = vld [vmem:[#allocation4 + $0x3] ss:$0 sm:$0xff] }
0x4702   :  { %v2506_v2 = vpop.permute.xlu0 %2505 }
0x4703   :  { %v5182_v30 = vmul.f32 %v4303_v60, %v2506_v2 }
0x4705   :  { %v2509_v41 = vpack.c.bf16 %v5182_v30, %v5182_v30 }
0x4706   :  { %v2655_v9 = vpop.permute.xlu0 %2654 }
0x4707   :  { %2511 = vrot.lane.b32.xlu1 %v2509_v41, %s4367_s18 }
0x4779   :  { %v2512_v16 = vpop.permute.xlu1 %2511 }
0x477a   :  { %4048 = vmatmul.mubr.msk.bf16.vlgmr.msra.gmra.mxu1 %vm1020_vm9, %v2512_v16 }
0x477b   :  { %4060 = vmatpush3.bf16.msra.mxu1 %v4788_v36  ;;  %4061 = vmatprep.mubr.msk.bf16.mxu1 %vm4365_vm2, %v4363_v1 }
0x477c   :  { %4077 = vmatprep.subr.bf16.mxu1 %v4363_v1 }
0x483a   :  { %v2550_v49 = vpop.f32.mrf.mxu1 }
0x483b   :  { %v2551_v17 = vadd.f32 %v5192_v45, %v2550_v49 }
0x483c   :  { %v4049_v20 = vpop.f32.mrf.mxu1 }
0x483d   :  { %v2556_v57 = vmax.f32 %v2551_v17, 0.0 }
0x483e   :  { %v2553_v48 = vpop.f32.mrf.mxu1 }
0x483f   :  { %v2557_v22 = vpack.c.bf16 %v2556_v57, %v2556_v57 }
0x4840   :  { %v4050_v23 = vpop.f32.mrf.mxu1 }
0x4841   :  { %4056 = vmatmul.mubr.msk.bf16.vlgmr.msra.gmra.mxu0 %vm1020_vm9, %v2557_v22 }
0x4842   :  { %4066 = vmatpush3.bf16.msra.mxu0 %v4418_v18  ;;  %4073 = vmatprep.mubr.msk.bf16.mxu0 %vm4365_vm2, %v4363_v1 }
0x4843   :  { %4067 = vmatprep.subr.bf16.mxu0 %v4363_v1 }
0x4846   :  { %4068 = vmatpush3.bf16.msra.mxu0 %v4424_v21 }
0x4847   :  { %4069 = vmatprep.subr.bf16.mxu0 %v4363_v1 }
0x484a   :  { %4070 = vmatpush3.bf16.msra.mxu0 %v4434_v24 }
0x484b   :  { %4071 = vmatprep.subr.bf16.mxu0 %v4363_v1 }
0x484e   :  { %4072 = vmatpush3.bf16.msra.mxu0 %v4440_v27 }
0x484f   :  { %4089 = vmatprep.subr.bf16.mxu0 %v4363_v1 }
0x4901   :  { %v2595_v26 = vpop.f32.mrf.mxu0 }
0x4902   :  { %v2596_v31 = vadd.f32 %v5206_v28, %v2595_v26 }
0x4903   :  { %v4057_v35 = vpop.f32.mrf.mxu0 }
0x4904   :  { %v2601_v38 = vmax.f32 %v2596_v31, 0.0 }
0x4905   :  { %v2598_v39 = vpop.f32.mrf.mxu0 }
0x4906   :  { %2602 = vst.msk [vmem:[#allocation3 + $0x14] sm:$0xf] %vm1110_vm10, %v2601_v38  ;;  %v2603_v42 = vpack.c.bf16 %v2601_v38, %v2601_v38 }
0x4907   :  { %v4058_v43 = vpop.f32.mrf.mxu0 }
0x4908   :  { %4062 = vmatmul.mubr.msk.bf16.vlgmr.msra.gmra.mxu1 %vm1113_vm11, %v2603_v42 }
0x4909   :  { %4078 = vmatpush3.bf16.msra.mxu1 %v4397_v5  ;;  %4085 = vmatprep.mubr.msk.bf16.mxu1 %vm4365_vm2, %v4363_v1 }
0x490a   :  { %4079 = vmatprep.subr.bf16.mxu1 %v4363_v1 }
0x490d   :  { %4080 = vmatpush3.bf16.msra.mxu1 %v4400_v8 }
0x490e   :  { %4081 = vmatprep.subr.bf16.mxu1 %v4363_v1 }
0x4911   :  { %4082 = vmatpush3.bf16.msra.mxu1 %v4406_v12 }
0x4912   :  { %4083 = vmatprep.subr.bf16.mxu1 %v4363_v1 }
0x4915   :  { %4084 = vmatpush3.bf16.msra.mxu1 %v4412_v15 }
0x4916   :  { %4097 = vmatprep.subr.bf16.mxu1 %v4363_v1 }
0x49c8   :  { %v2641_v44 = vpop.f32.mrf.mxu1 }
0x49c9   :  { %v2648_v61 = vrot.slane %v2641_v44, 4 }
0x49ca   :  { %v4063_v4 = vpop.f32.mrf.mxu1 }
0x49cb   :  { %v2650_v47 = vadd.f32 %v2648_v61, %v5141_v40 }
0x49cc   :  { %v2644_v3 = vpop.f32.mrf.mxu1 }
0x49cd   :  { %v5225_v19 = vadd.f32 %v5222_v50, %v2650_v47 }
0x49ce   :  { %v4064_v11 = vpop.f32.mrf.mxu1 }
0x49cf   :  { %v2652_v13 = vmax.f32 %v5225_v19, 0.0 }
0x49d1   :  { %2653 = vst.msk [vmem:[#allocation2 - $0x4] sm:$0xf0] %vm243_vm5, %v2652_v13 }
0x49d2   :  { %2657 = vst.msk [vmem:[#allocation2] sm:$0xf] %vm170_vm4, %v2655_v9 }
0x49d9   :  { %v2658_v52 = vld [vmem:[#allocation2] sm:$0xf] }
0x49da   :  { %v2659_v51 = vpack.c.bf16 %v2658_v52, %v2658_v52 }
0x49dc   :  { %4074 = vmatmul.mubr.msk.bf16.vlgmr.msra.gmra.mxu0 %vm944_vm8, %v2659_v51 }
0x49dd   :  { %4090 = vmatpush3.bf16.msra.mxu0 %v4762_v29  ;;  %4093 = vmatprep.mubr.msk.bf16.mxu0 %vm4365_vm2, %v4363_v1 }
0x49de   :  { %4091 = vmatprep.subr.bf16.mxu0 %v4363_v1 }
0x49e1   :  { %4092 = vmatpush3.bf16.msra.mxu0 %v4765_v34 }
0x49e2   :  { %4105 = vmatprep.subr.bf16.mxu0 %v4363_v1 }
0x4a9c   :  { %v2697_v40 = vpop.f32.mrf.mxu0 }
0x4a9d   :  { %v2698_v55 = vadd.f32 %v5237_v53, %v2697_v40 }
0x4a9e   :  { %v4075_v56 = vpop.f32.mrf.mxu0 }
0x4a9f   :  { %v3381_v58 = vmul.f32 -1.442695, %v2698_v55 }
0x4aa0   :  { %v2700_v59 = vpop.f32.mrf.mxu0 }
0x4aa1   :  { %4306 = vpow2.f32 %v3381_v58 }
0x4aa2   :  { %v4076_v37 = vpop.f32.mrf.mxu0 }
0x4aae   :  { %v4307_v60 = vpop.eup %4306 }
0x4aaf   :  { %v2706_v63 = vadd.f32 1.0, %v4307_v60 }
0x4ab1   :  { %4308 = vrcp.f32 %v2706_v63 }
0x4abe   :  { %v4309_v0 = vpop.eup %4308 }
0x4abf   :  { %v2709_v7 = vmul.f32 2.0, %v4309_v0  ;;  %v2711_v33 = vmul.f32 %v4309_v0, %v5157_v62 }
0x4ac1   :  { %v3382_v10 = vadd.f32 -1.0, %v2709_v7 }
0x4ac3   :  { %2713 = vrot.lane.b32.xlu1 %v3382_v10, %s4366_s17 }
0x4b35   :  { %v2714_v6 = vpop.permute.xlu1 %2713 }
0x4b36   :  { %v2716_v46 = vmul.f32 %v4309_v0, %v2714_v6 }
0x4b38   :  { %2718 = vrot.lane.b32.xlu0 %v2716_v46, %s4367_s18 }
0x4baa   :  { %v2719_v2 = vpop.permute.xlu0 %2718 }
0x4bab   :  { %v5243_v41 = vadd.f32 %v2719_v2, %v2711_v33 }
0x4bad   :  { %4310 = vtanh.f32 %v5243_v41 }
0x4bba   :  { %v4311_v16 = vpop.eup %4310 }
0x4bbb   :  { %2724 = vrot.lane.b32.xlu1 %v4311_v16, %s4366_s17 }
0x4c2d   :  { %v2725_v49 = vpop.permute.xlu1 %2724 }
0x4c2e   :  { %v2727_v17 = vmul.f32 %v4309_v0, %v2725_v49 }
0x4c30   :  { %2729 = vrot.lane.b32.xlu0 %v2727_v17, %s4368_s19 }
0x4ca2   :  { %v2730_v20 = vpop.permute.xlu0 %2729 }
0x4ca3   :  { %2732 = vst.msk [vmem:[#allocation2 + $0x4] sm:$0xf] %vm172_vm0, %v2730_v20 }
0x4ca4   :  { %2733 = vst.msk [vmem:[#allocation2 + $0x4] sm:$0xf] %vm174_vm1, %v5182_v30 }
0x4cab   :  { %v2734_v57 = vld [vmem:[#allocation2 + $0x4] sm:$0xf] }
0x4cac   :  { %v2735_v62 = vpack.c.bf16 %v2734_v57, %v2734_v57 }
0x4cae   :  { %2737 = vrot.lane.b32.xlu1 %v2735_v62, %s4366_s17 }
0x4d20   :  { %v2738_v48 = vpop.permute.xlu1 %2737 }
0x4d21   :  { %4086 = vmatmul.mubr.msk.bf16.vlgmr.msra.gmra.mxu1 %vm944_vm8, %v2738_v48 }
0x4d22   :  { %4098 = vmatpush3.bf16.msra.mxu1 %v4777_v25  ;;  %4101 = vmatprep.mubr.msk.bf16.mxu1 %vm4365_vm2, %v4363_v1 }
0x4d23   :  { %4099 = vmatprep.subr.bf16.mxu1 %v4363_v1 }
0x4d26   :  { %4100 = vmatpush3.bf16.msra.mxu1 %v4784_v32 }
0x4d27   :  { %4111 = vmatprep.subr.bf16.mxu1 %v4363_v1 }
0x4de1   :  { %v2776_v22 = vpop.f32.mrf.mxu1 }
0x4de2   :  { %v2777_v30 = vadd.f32 %v5093_v14, %v2776_v22 }
0x4de3   :  { %v4087_v23 = vpop.f32.mrf.mxu1 }
0x4de4   :  { %v3384_v26 = vmul.f32 -1.442695, %v2777_v30 }
0x4de5   :  { %v2779_v31 = vpop.f32.mrf.mxu1 }
0x4de6   :  { %4312 = vpow2.f32 %v3384_v26 }
0x4de7   :  { %v4088_v35 = vpop.f32.mrf.mxu1 }
0x4df3   :  { %v4313_v38 = vpop.eup %4312 }
0x4df4   :  { %v2785_v39 = vadd.f32 1.0, %v4313_v38 }
0x4df6   :  { %4314 = vrcp.f32 %v2785_v39 }
0x4e03   :  { %v4315_v42 = vpop.eup %4314 }
0x4e04   :  { %v2788_v43 = vmul.f32 2.0, %v4315_v42  ;;  %v2790_v47 = vmul.f32 %v4315_v42, %v5177_v54 }
0x4e06   :  { %v3385_v44 = vadd.f32 -1.0, %v2788_v43 }
0x4e08   :  { %2792 = vrot.lane.b32.xlu0 %v3385_v44, %s4366_s17 }
0x4e7a   :  { %v2793_v61 = vpop.permute.xlu0 %2792 }
0x4e7b   :  { %v2795_v4 = vmul.f32 %v4315_v42, %v2793_v61 }
0x4e7d   :  { %2797 = vrot.lane.b32.xlu1 %v2795_v4, %s4367_s18 }
0x4eef   :  { %v2798_v3 = vpop.permute.xlu1 %2797 }
0x4ef0   :  { %v5263_v11 = vadd.f32 %v2798_v3, %v2790_v47 }
0x4ef2   :  { %4316 = vtanh.f32 %v5263_v11 }
0x4eff   :  { %v4317_v13 = vpop.eup %4316 }
0x4f00   :  { %2803 = vrot.lane.b32.xlu0 %v4317_v13, %s4366_s17 }
0x4f04   :  { %2952 = vrot.lane.b32.xlu0 %v2727_v17, %s4366_s17 }
0x4f72   :  { %v2804_v9 = vpop.permute.xlu0 %2803 }
0x4f73   :  { %v5268_v52 = vmul.f32 %v4315_v42, %v2804_v9 }
0x4f75   :  { %v2807_v51 = vpack.c.bf16 %v5268_v52, %v5268_v52 }
0x4f76   :  { %v2953_v16 = vpop.permute.xlu0 %2952 }
0x4f77   :  { %2809 = vrot.lane.b32.xlu1 %v2807_v51, %s4367_s18 }
0x4fe9   :  { %v2810_v40 = vpop.permute.xlu1 %2809 }
0x4fea   :  { %4094 = vmatmul.mubr.msk.bf16.vlgmr.msra.gmra.mxu0 %vm1020_vm9, %v2810_v40 }
0x4feb   :  { %4106 = vmatpush3.bf16.msra.mxu0 %v4788_v36  ;;  %4107 = vmatprep.mubr.msk.bf16.mxu0 %vm4365_vm2, %v4363_v1 }
0x4fec   :  { %4123 = vmatprep.subr.bf16.mxu0 %v4363_v1 }
0x50aa   :  { %v2848_v54 = vpop.f32.mrf.mxu0 }
0x50ab   :  { %v2849_v55 = vadd.f32 %v5192_v45, %v2848_v54 }
0x50ac   :  { %v4095_v56 = vpop.f32.mrf.mxu0 }
0x50ad   :  { %v2854_v58 = vmax.f32 %v2849_v55, 0.0 }
0x50ae   :  { %v2851_v59 = vpop.f32.mrf.mxu0 }
0x50af   :  { %v2855_v37 = vpack.c.bf16 %v2854_v58, %v2854_v58 }
0x50b0   :  { %v4096_v60 = vpop.f32.mrf.mxu0 }
0x50b1   :  { %4102 = vmatmul.mubr.msk.bf16.vlgmr.msra.gmra.mxu1 %vm1020_vm9, %v2855_v37 }
0x50b2   :  { %4112 = vmatpush3.bf16.msra.mxu1 %v4418_v18  ;;  %4119 = vmatprep.mubr.msk.bf16.mxu1 %vm4365_vm2, %v4363_v1 }
0x50b3   :  { %4113 = vmatprep.subr.bf16.mxu1 %v4363_v1 }
0x50b6   :  { %4114 = vmatpush3.bf16.msra.mxu1 %v4424_v21 }
0x50b7   :  { %4115 = vmatprep.subr.bf16.mxu1 %v4363_v1 }
0x50ba   :  { %4116 = vmatpush3.bf16.msra.mxu1 %v4434_v24 }
0x50bb   :  { %4117 = vmatprep.subr.bf16.mxu1 %v4363_v1 }
0x50be   :  { %4118 = vmatpush3.bf16.msra.mxu1 %v4440_v27 }
0x50bf   :  { %4135 = vmatprep.subr.bf16.mxu1 %v4363_v1 }
0x5171   :  { %v2893_v36 = vpop.f32.mrf.mxu1 }
0x5172   :  { %v2894_v18 = vadd.f32 %v5206_v28, %v2893_v36  ;;  %v3208_v36 = vld [vmem:[#allocation3 + $0x8] sm:$0xff] }
0x5173   :  { %v4103_v63 = vpop.f32.mrf.mxu1 }
0x5174   :  { %v2899_v0 = vmax.f32 %v2894_v18, 0.0  ;;  %v3207_v18 = vld [vmem:[#allocation3] sm:$0xff] }
0x5175   :  { %v2896_v7 = vpop.f32.mrf.mxu1 }
0x5176   :  { %2900 = vst.msk [vmem:[#allocation3 + $0x18] sm:$0xf] %vm1110_vm10, %v2899_v0  ;;  %v2901_v10 = vpack.c.bf16 %v2899_v0, %v2899_v0  ;;  %v3211_v0 = vpack.c.bf16 %v3208_v36, %v3207_v18 }
0x5177   :  { %v4104_v21 = vpop.f32.mrf.mxu1 }
0x5178   :  { %4108 = vmatmul.mubr.msk.bf16.vlgmr.msra.gmra.mxu0 %vm1113_vm11, %v2901_v10 }
0x5179   :  { %4124 = vmatpush3.bf16.msra.mxu0 %v4397_v5  ;;  %4131 = vmatprep.mubr.msk.bf16.mxu0 %vm4365_vm2, %v4363_v1 }
0x517a   :  { %4125 = vmatprep.subr.bf16.mxu0 %v4363_v1 }
0x517d   :  { %4126 = vmatpush3.bf16.msra.mxu0 %v4400_v8 }
0x517e   :  { %4127 = vmatprep.subr.bf16.mxu0 %v4363_v1 }
0x5181   :  { %4128 = vmatpush3.bf16.msra.mxu0 %v4406_v12 }
0x5182   :  { %4129 = vmatprep.subr.bf16.mxu0 %v4363_v1 }
0x5185   :  { %4130 = vmatpush3.bf16.msra.mxu0 %v4412_v15 }
0x5186   :  { %4143 = vmatprep.subr.bf16.mxu0 %v4363_v1 }
0x5238   :  { %v2939_v24 = vpop.f32.mrf.mxu0 }
0x5239   :  { %v2946_v27 = vrot.slane %v2939_v24, 4 }
0x523a   :  { %v4109_v5 = vpop.f32.mrf.mxu0 }
0x523b   :  { %v2948_v6 = vadd.f32 %v2946_v27, %v5225_v19 }
0x523c   :  { %v2942_v46 = vpop.f32.mrf.mxu0 }
0x523d   :  { %v2949_v33 = vadd.f32 %v5222_v50, %v2948_v6  ;;  %v3199_v6 = vld [vmem:[#allocation4 + $0xf0] sm:$0xff]  ;;  %v3200_v46 = vld [vmem:[#allocation4 + $0xf8] sm:$0xff] }
0x523e   :  { %v4110_v2 = vpop.f32.mrf.mxu0 }
0x523f   :  { %v2950_v8 = vmax.f32 %v2949_v33, 0.0  ;;  %v3201_v33 = vpack.c.bf16 %v3200_v46, %v3199_v6 }
0x5241   :  { %2951 = vst.msk [vmem:[#allocation2 - $0x4] sm:$0xf0] %vm243_vm5, %v2950_v8 }
0x5242   :  { %2955 = vst.msk [vmem:[#allocation2] sm:$0xf] %vm170_vm4, %v2953_v16 }
0x5249   :  { %v2956_v12 = vld [vmem:[#allocation2] sm:$0xf] }
0x524a   :  { %v2957_v49 = vpack.c.bf16 %v2956_v12, %v2956_v12 }
0x524c   :  { %4120 = vmatmul.mubr.msk.bf16.vlgmr.msra.gmra.mxu1 %vm944_vm8, %v2957_v49 }
0x524d   :  { %4136 = vmatpush3.bf16.msra.mxu1 %v4762_v29  ;;  %4139 = vmatprep.mubr.msk.bf16.mxu1 %vm4365_vm2, %v4363_v1 }
0x524e   :  { %4137 = vmatprep.subr.bf16.mxu1 %v4363_v1 }
0x5251   :  { %4138 = vmatpush3.bf16.msra.mxu1 %v4765_v34 }
0x5252   :  { %4151 = vmatprep.subr.bf16.mxu1 %v3201_v33 }
0x530c   :  { %v2995_v15 = vpop.f32.mrf.mxu1 }
0x530d   :  { %v2996_v50 = vadd.f32 %v5237_v53, %v2995_v15  ;;  %v3209_v15 = vld [vmem:[#allocation3 + $0x10] sm:$0xff] }
0x530e   :  { %v4121_v19 = vpop.f32.mrf.mxu1 }
0x530f   :  { %v3390_v17 = vmul.f32 -1.442695, %v2996_v50 }
0x5310   :  { %v2998_v20 = vpop.f32.mrf.mxu1 }
0x5311   :  { %4318 = vpow2.f32 %v3390_v17  ;;  %v3397_v20 = vld [vmem:[#allocation4 + $0x100] ss:$0 sm:$0xff] }
0x5312   :  { %v4122_v57 = vpop.f32.mrf.mxu1 }
0x531e   :  { %v4319_v62 = vpop.eup %4318 }
0x531f   :  { %v3004_v48 = vadd.f32 1.0, %v4319_v62  ;;  %v3268_v62 = vld [vmem:[%s5377_s0 + $0x1c] sm:$0xf] }
0x5321   :  { %4320 = vrcp.f32 %v3004_v48 }
0x532e   :  { %v4321_v22 = vpop.eup %4320 }
0x532f   :  { %v3007_v29 = vmul.f32 2.0, %v4321_v22  ;;  %v3009_v34 = vmul.f32 %v4321_v22, %v5243_v41 }
0x5331   :  { %v3391_v30 = vadd.f32 -1.0, %v3007_v29 }
0x5333   :  { %3011 = vrot.lane.b32.xlu1 %v3391_v30, %s4366_s17 }
0x53a5   :  { %v3012_v23 = vpop.permute.xlu1 %3011 }
0x53a6   :  { %v3014_v26 = vmul.f32 %v4321_v22, %v3012_v23 }
0x53a8   :  { %3016 = vrot.lane.b32.xlu0 %v3014_v26, %s4367_s18 }
0x541a   :  { %v3017_v53 = vpop.permute.xlu0 %3016 }
0x541b   :  { %v3019_v31 = vadd.f32 %v3017_v53, %v3009_v34 }
0x541d   :  { %4322 = vtanh.f32 %v3019_v31 }
0x542a   :  { %v4323_v35 = vpop.eup %4322 }
0x542b   :  { %3022 = vrot.lane.b32.xlu1 %v4323_v35, %s4366_s17 }
0x549d   :  { %v3023_v38 = vpop.permute.xlu1 %3022 }
0x549e   :  { %v3025_v39 = vmul.f32 %v4321_v22, %v3023_v38 }
0x54a0   :  { %3027 = vrot.lane.b32.xlu0 %v3025_v39, %s4368_s19 }
0x5512   :  { %v3028_v42 = vpop.permute.xlu0 %3027 }
0x5513   :  { %3030 = vst.msk [vmem:[#allocation2 + $0x4] sm:$0xf] %vm172_vm0, %v3028_v42 }
0x5514   :  { %3031 = vst.msk [vmem:[#allocation2 + $0x4] sm:$0xf] %vm174_vm1, %v5268_v52 }
0x551b   :  { %v3032_v43 = vld [vmem:[#allocation2 + $0x4] sm:$0xf] }
0x551c   :  { %v3033_v44 = vpack.c.bf16 %v3032_v43, %v3032_v43 }
0x551e   :  { %3035 = vrot.lane.b32.xlu1 %v3033_v44, %s4366_s17 }
0x5590   :  { %v3036_v41 = vpop.permute.xlu1 %3035 }
0x5591   :  { %4132 = vmatmul.mubr.msk.bf16.vlgmr.msra.gmra.mxu0 %vm944_vm8, %v3036_v41 }
0x5592   :  { %4144 = vmatpush3.bf16.msra.mxu0 %v4777_v25  ;;  %4147 = vmatprep.mubr.msk.bf16.mxu0 %vm4365_vm2, %v4363_v1 }
0x5593   :  { %4145 = vmatprep.subr.bf16.mxu0 %v4363_v1 }
0x5596   :  { %4146 = vmatpush3.bf16.msra.mxu0 %v4784_v32 }
0x5651   :  { %v3074_v61 = vpop.f32.mrf.mxu0 }
0x5652   :  { %v3075_v4 = vadd.f32 %v5093_v14, %v3074_v61 }
0x5653   :  { %v4133_v47 = vpop.f32.mrf.mxu0 }
0x5654   :  { %v3393_v3 = vmul.f32 -1.442695, %v3075_v4 }
0x5655   :  { %v3077_v13 = vpop.f32.mrf.mxu0 }
0x5656   :  { %4324 = vpow2.f32 %v3393_v3 }
0x5657   :  { %v4134_v9 = vpop.f32.mrf.mxu0 }
0x5663   :  { %v4325_v52 = vpop.eup %4324 }
0x5664   :  { %v3083_v51 = vadd.f32 1.0, %v4325_v52 }
0x5666   :  { %4326 = vrcp.f32 %v3083_v51 }
0x5673   :  { %v4327_v40 = vpop.eup %4326 }
0x5674   :  { %v3086_v25 = vmul.f32 2.0, %v4327_v40  ;;  %v3088_v32 = vmul.f32 %v4327_v40, %v5263_v11 }
0x5676   :  { %v3394_v54 = vadd.f32 -1.0, %v3086_v25 }
0x5678   :  { %3090 = vrot.lane.b32.xlu0 %v3394_v54, %s4366_s17 }
0x56ea   :  { %v3091_v55 = vpop.permute.xlu0 %3090 }
0x56eb   :  { %v3093_v1 = vmul.f32 %v4327_v40, %v3091_v55 }
0x56ed   :  { %3095 = vrot.lane.b32.xlu1 %v3093_v1, %s4367_s18 }
0x575f   :  { %v3096_v14 = vpop.permute.xlu1 %3095 }
0x5760   :  { %v3098_v56 = vadd.f32 %v3096_v14, %v3088_v32 }
0x5762   :  { %4328 = vtanh.f32 %v3098_v56 }
0x576f   :  { %v4329_v58 = vpop.eup %4328 }
0x5770   :  { %3101 = vrot.lane.b32.xlu0 %v4329_v58, %s4366_s17 }
0x57e2   :  { %v3102_v59 = vpop.permute.xlu0 %3101 }
0x57e3   :  { %v3104_v37 = vmul.f32 %v4327_v40, %v3102_v59 }
0x57e5   :  { %v3105_v60 = vpack.c.bf16 %v3104_v37, %v3104_v37 }
0x57e7   :  { %3107 = vrot.lane.b32.xlu1 %v3105_v60, %s4367_s18 }
0x5859   :  { %v3108_v63 = vpop.permute.xlu1 %3107 }
0x585a   :  { %4140 = vmatmul.mubr.msk.bf16.vlgmr.msra.gmra.mxu1 %vm1020_vm9, %v3108_v63 }
0x585b   :  { %4153 = vmatprep.mubr.msk.bf16.mxu1 %vm1113_vm11, %v3211_v0  ;;  %4152 = vmatpush3.bf16.msra.mxu1 %v3201_v33 }
0x591a   :  { %v3146_v11 = vpop.f32.mrf.mxu1 }
0x591b   :  { %v3147_v7 = vadd.f32 %v5192_v45, %v3146_v11 }
0x591c   :  { %v4141_v10 = vpop.f32.mrf.mxu1 }
0x591d   :  { %v3152_v21 = vmax.f32 %v3147_v7, 0.0 }
0x591e   :  { %v3149_v24 = vpop.f32.mrf.mxu1 }
0x591f   :  { %v3153_v27 = vpack.c.bf16 %v3152_v21, %v3152_v21 }
0x5920   :  { %v4142_v5 = vpop.f32.mrf.mxu1 }
0x5921   :  { %4148 = vmatmul.mubr.msk.bf16.vlgmr.msra.gmra.mxu0 %vm1020_vm9, %v3153_v27 }
0x59e1   :  { %v3191_v2 = vpop.f32.mrf.mxu0 }
0x59e2   :  { %v3192_v8 = vadd.f32 %v5206_v28, %v3191_v2 }
0x59e3   :  { %v4149_v16 = vpop.f32.mrf.mxu0 }
0x59e4   :  { %v3197_v12 = vmax.f32 %v3192_v8, 0.0 }
0x59e5   :  { %v3194_v49 = vpop.f32.mrf.mxu0 }
0x59e6   :  { %3198 = vst.msk [vmem:[#allocation3 + $0x1c] sm:$0xf] %vm1110_vm10, %v3197_v12 }
0x59e7   :  { %v4150_v45 = vpop.f32.mrf.mxu0 }
0x59ed   :  { %v3210_v50 = vld [vmem:[#allocation3 + $0x18] sm:$0xff] }
0x59ee   :  { %v3212_v19 = vpack.c.bf16 %v3210_v50, %v3209_v15 }
0x59f0   :  { %4154 = vmatmul.mubr.msk.bf16.vlgmr.msra.gmra.mxu1 %vm1113_vm11, %v3212_v19 }
0x5ab0   :  { %v4155_v17 = vpop.f32.mrf.mxu1 }
0x5ab1   :  { %v3262_v34 = vadd.f32 %v4155_v17, %v3397_v20 }
0x5ab2   :  { %v3253_v57 = vpop.f32.mrf.mxu1 }
0x5ab3   :  { %v3254_v48 = vadd.f32 %v3397_v20, %v3253_v57  ;;  %v3281_v38 = vrot.slane %v3262_v34, 4 }
0x5ab4   :  { %v4156_v28 = vpop.f32.mrf.mxu1 }
0x5ab5   :  { %v3269_v22 = vadd.f32 %v3268_v62, %v3254_v48  ;;  %v3271_v29 = vrot.slane %v3254_v48, 4  ;;  %v3265_v39 = vadd.f32 %v4156_v28, %v3397_v20 }
0x5ab6   :  { %v3256_v30 = vpop.f32.mrf.mxu1 }
0x5ab7   :  { %3290 = vst.msk [vmem:[%s5379_s2] sm:$0xf] %vm3289_vm12, %v3269_v22  ;;  %v3257_v23 = vadd.f32 %v3397_v20, %v3256_v30  ;;  %v3273_v26 = vadd.f32 %v3271_v29, %v3269_v22  ;;  %v3286_v44 = vrot.slane %v3265_v39, 4 }
0x5ab9   :  { %v3274_v53 = vadd.f32 %v3273_v26, %v3257_v23  ;;  %v3276_v31 = vrot.slane %v3257_v23, 4  ;;  %3291 = vst.msk [vmem:[%s5379_s2 + $0x4] sm:$0xf] %vm3289_vm12, %v3273_v26 }
0x5abb   :  { %v3278_v35 = vadd.f32 %v3276_v31, %v3274_v53  ;;  %3292 = vst.msk [vmem:[%s5379_s2 + $0x8] sm:$0xf] %vm3289_vm12, %v3274_v53 }
0x5abd   :  { %v3279_v42 = vadd.f32 %v3278_v35, %v3262_v34  ;;  %3293 = vst.msk [vmem:[%s5379_s2 + $0xc] sm:$0xf] %vm3289_vm12, %v3278_v35 }
0x5abf   :  { %v3283_v43 = vadd.f32 %v3281_v38, %v3279_v42  ;;  %3294 = vst.msk [vmem:[%s5379_s2 + $0x10] sm:$0xf] %vm3289_vm12, %v3279_v42 }
0x5ac1   :  { %v3284_v41 = vadd.f32 %v3283_v43, %v3265_v39  ;;  %3295 = vst.msk [vmem:[%s5379_s2 + $0x14] sm:$0xf] %vm3289_vm12, %v3283_v43 }
0x5ac3   :  { %v3288_v61 = vadd.f32 %v3286_v44, %v3284_v41  ;;  %3296 = vst.msk [vmem:[%s5379_s2 + $0x18] sm:$0xf] %vm3289_vm12, %v3284_v41 }
0x5ac5   :  { %3297 = vst.msk [vmem:[%s5379_s2 + $0x1c] sm:$0xf] %vm3289_vm12, %v3288_v61 }
0x5ac6   :  { %3302 = vsyncpa [#allocation5], 1 }

</bundles_post_ra>
